<compile_context>
chip_gen: v6e
topology: v6e:2x2x1
jax: 0.10.0
libtpu: 0.0.40
codegen_flags: <defaults>
</compile_context>

<pallas_src>
import functools
import math

import jax
import jax.numpy as jnp
from jax.experimental import pallas as pl
from jax.experimental.pallas import tpu as pltpu

NUM_CLASSES = 751
NC_PAD = 768          # 751 padded to 6*128 for lane-dense stores / MXU N
C_IN = 512            # channels of layer4 / layer7 / layer8 side outputs
C_RD = 256            # _cbr2 reduce width
C_CHUNK = 128         # channel slab width for the in-kernel f32 working set
BN_EPS = 1e-5
NORM_EPS = 1e-12      # F.normalize eps


# ----------------------------- kernel ---------------------------------------

def _branch_head_kernel(x_ref, wr_ref, bconv_ref, wcls_ref, bcls_ref,
                        side_ref, rd_ref, sm_ref,
                        pooled_acc, *, hw_total):
    """One DRN2 head branch.

    Grid: (batch_tile, hw_tile), HW axis innermost (reduction, "arbitrary").

    x_ref     : (BT, C_IN, HT)   feature-map tile (native dtype, zero-padded HW)
    wr_ref    : (C_IN, C_RD)     BN-folded 1x1-conv weight, bf16
    bconv_ref : (1, C_RD)        BN-folded conv bias, f32
    wcls_ref  : (C_RD, NC_PAD)   classifier weight (lane padded), bf16
    bcls_ref  : (1, NC_PAD)      classifier bias (lane padded), f32
    side_ref  : (BT, HW_PAD)     resident across the HW axis (accumulator)
    rd_ref    : (BT, C_RD)
    sm_ref    : (BT, NC_PAD)
    pooled_acc: VMEM (BT, C_IN) f32 scratch (global-avg-pool numerator)
    """
    k = pl.program_id(1)
    nk = pl.num_programs(1)
    bt, c_in, ht = x_ref.shape

    @pl.when(k == 0)
    def _init():
        pooled_acc[...] = jnp.zeros_like(pooled_acc)

    # Stream this HW tile: channel-energy map (sum_c x^2) and global-average-
    # pool numerator (sum_hw x).  The channel axis is processed in 128-wide
    # static slabs so the f32 upcast / x*x intermediates never have to hold the
    # whole (BT, 512, HT) tile at once (matters most under v7x's 64 MiB VMEM).
    cc = C_CHUNK if c_in % C_CHUNK == 0 else c_in
    msum = jnp.zeros((bt, ht), jnp.float32)
    for c0 in range(0, c_in, cc):
        xc = x_ref[:, c0:c0 + cc, :].astype(jnp.float32)        # (BT, cc, HT)
        msum = msum + jnp.sum(xc * xc, axis=1)                  # (BT, HT)
        pooled_acc[:, c0:c0 + cc] += jnp.sum(xc, axis=2)        # (BT, cc)

    start = pl.multiple_of(k * ht, ht)
    side_ref[:, pl.ds(start, ht)] = msum * (1.0 / c_in)

    @pl.when(k == nk - 1)
    def _finalize():
        # F.normalize over H*W:  m / max(||m||_2, eps)  (rsqrt -> EUP slot).
        # Zero-padded lanes contribute 0 to the norm and stay 0 afterwards.
        m = side_ref[...]
        ssq = jnp.sum(m * m, axis=1, keepdims=True)
        side_ref[...] = m * jax.lax.rsqrt(jnp.maximum(ssq, NORM_EPS * NORM_EPS))

        # Global average pool, 1x1 conv (+ folded BN) and classifier (MXU,
        # bf16 operands, f32 accumulation).
        pooled = (pooled_acc[...] * (1.0 / hw_total)).astype(jnp.bfloat16)
        rd = jnp.dot(pooled, wr_ref[...],
                     preferred_element_type=jnp.float32) + bconv_ref[...]
        rd_ref[...] = rd
        sm_ref[...] = jnp.dot(rd.astype(jnp.bfloat16), wcls_ref[...],
                              preferred_element_type=jnp.float32) + bcls_ref[...]


# ----------------------------- tiling helpers --------------------------------

def _vmem_limit_bytes():
    """Scoped-VMEM budget per chip generation: <=64 MiB on 128 MiB parts
    (v5e/v6e), <=~48 MiB on 64 MiB parts (v7x)."""
    cap = 128 * 1024 * 1024
    try:
        cap = int(pltpu.get_tpu_info().vmem_capacity_bytes)
    except Exception:
        pass
    return int(min(64 * 1024 * 1024, (cap * 3) // 4))


def _ht_cap(bt, hw_pad, itemsize, vmem_limit):
    """Max HT (in lanes) whose per-step working set fits the VMEM budget."""
    out_bytes = 2 * bt * (hw_pad + C_RD + NC_PAD) * 4            # 2x-buffered outputs
    w_bytes = (2 * (C_IN * C_RD + C_RD * NC_PAD) * 2             # bf16 weights (2x worst case)
               + 2 * (C_RD + NC_PAD) * 4)                        # f32 biases
    fixed = out_bytes + w_bytes + bt * C_IN * 4 + (4 << 20)      # pooled scratch + headroom
    budget = vmem_limit - fixed
    # x double-buffer (native dtype) + ~1 full f32 tile of compute scratch.
    per_ht = bt * C_IN * (2 * itemsize + 4)
    return max(budget // per_ht, 0)


def _pick_tiles(batch, hw_pad, itemsize, vmem_limit):
    """Pick (BT, HT): BT a multiple-of-8 divisor of B up to 32 (else full B),
    HT the largest multiple of 128 dividing hw_pad that fits the budget."""
    bt_cands = [bt for bt in (32, 16, 8) if batch % bt == 0] or [batch]
    bt = bt_cands[-1]
    for cand in bt_cands:
        if _ht_cap(cand, hw_pad, itemsize, vmem_limit) >= 128:
            bt = cand
            break
    cap = _ht_cap(bt, hw_pad, itemsize, vmem_limit)
    ht = min(hw_pad, max(128, (cap // 128) * 128))
    while ht > 128 and hw_pad % ht != 0:
        ht -= 128
    return bt, ht


# ---------------- trace-time parameter preprocessing -------------------------

def _fold_bn(reduce_params):
    """Fold inference-mode BatchNorm into the 1x1-conv weight/bias.
    Weight is stored in bf16 (MXU operand), bias stays f32."""
    wr, bconv, gamma, beta, rmean, rvar = reduce_params
    scale = gamma * jax.lax.rsqrt(rvar + BN_EPS)                 # (C_RD,)
    wr_eff = (wr * scale[None, :]).astype(jnp.bfloat16)          # (C_IN, C_RD)
    b_eff = ((bconv - rmean) * scale + beta).astype(jnp.float32)
    return wr_eff, b_eff.reshape(1, C_RD)


def _pad_classifier(cls_params):
    w, bias = cls_params                                         # (C_RD, 751), (751,)
    w_p = jnp.pad(w, ((0, 0), (0, NC_PAD - NUM_CLASSES))).astype(jnp.bfloat16)
    b_p = jnp.pad(bias.astype(jnp.float32), ((0, NC_PAD - NUM_CLASSES),))
    return w_p, b_p.reshape(1, NC_PAD)


# ----------------------------- per-branch runner ------------------------------

def _run_branch(x, wr, bconv, wcls, bcls, vmem_limit):
    """x: (B, C_IN, H, W) side output.  Returns (side (B,1,H,W), rd, scores)."""
    B, C, H, W = x.shape
    assert C == C_IN
    HW = H * W
    HW_PAD = max(((HW + 127) // 128) * 128, 128)

    x2 = x.reshape(B, C, HW)
    if HW_PAD != HW:
        # Zero pad: contributes 0 to both sum(x) and sum(x^2); GAP divisor uses
        # the real HW below.
        x2 = jnp.pad(x2, ((0, 0), (0, 0), (0, HW_PAD - HW)))

    itemsize = jnp.dtype(x.dtype).itemsize
    BT, HT = _pick_tiles(B, HW_PAD, itemsize, vmem_limit)
    grid = (B // BT, HW_PAD // HT)

    side_pad, rd, sm_pad = pl.pallas_call(
        functools.partial(_branch_head_kernel, hw_total=HW),
        out_shape=(
            jax.ShapeDtypeStruct((B, HW_PAD), jnp.float32),
            jax.ShapeDtypeStruct((B, C_RD), jnp.float32),
            jax.ShapeDtypeStruct((B, NC_PAD), jnp.float32),
        ),
        grid_spec=pltpu.PrefetchScalarGridSpec(
            num_scalar_prefetch=0,
            grid=grid,
            in_specs=[
                pl.BlockSpec((BT, C_IN, HT), lambda bb, k: (bb, 0, k)),
                pl.BlockSpec((C_IN, C_RD), lambda bb, k: (0, 0)),
                pl.BlockSpec((1, C_RD), lambda bb, k: (0, 0)),
                pl.BlockSpec((C_RD, NC_PAD), lambda bb, k: (0, 0)),
                pl.BlockSpec((1, NC_PAD), lambda bb, k: (0, 0)),
            ],
            out_specs=[
                pl.BlockSpec((BT, HW_PAD), lambda bb, k: (bb, 0)),
                pl.BlockSpec((BT, C_RD), lambda bb, k: (bb, 0)),
                pl.BlockSpec((BT, NC_PAD), lambda bb, k: (bb, 0)),
            ],
            scratch_shapes=[pltpu.VMEM((BT, C_IN), jnp.float32)],
        ),
        compiler_params=pltpu.CompilerParams(
            dimension_semantics=("parallel", "arbitrary"),
            vmem_limit_bytes=vmem_limit,
        ),
    )(x2, wr, bconv, wcls, bcls)

    side = side_pad[:, :HW].reshape(B, 1, H, W)
    return side, rd, sm_pad[:, :NUM_CLASSES]


# ----------------------------- DRN2.forward (head portion) -------------------

def drn2_forward(side_l4, side_l7, side_l8, params, norm=False):
    vmem_limit = _vmem_limit_bytes()

    wr_g, bc_g = _fold_bn(params["g_reduce"])
    wr_4, bc_4 = _fold_bn(params["l4_reduce"])
    wr_7, bc_7 = _fold_bn(params["l7_reduce"])
    wcls_g, bcls_g = _pad_classifier(params["g_classifier"])
    wcls_7, bcls_7 = _pad_classifier(params["l7_classifier"])
    # NOTE: as in the reference forward, the layer4 branch is routed through
    # g_classifier; l4_classifier exists in the module but is unused.

    # g branch: layer8 -> g_reduce -> g_classifier   (l4_side in torch naming)
    l4_side, g_rd, g_sm = _run_branch(side_l8, wr_g, bc_g, wcls_g, bcls_g, vmem_limit)
    # l4 branch: layer4 -> l4_reduce -> g_classifier (l2_side)
    l2_side, l4_rd, l4_sm = _run_branch(side_l4, wr_4, bc_4, wcls_g, bcls_g, vmem_limit)
    # l7 branch: layer7 -> l7_reduce -> l7_classifier (l3_side)
    l3_side, l7_rd, l7_sm = _run_branch(side_l7, wr_7, bc_7, wcls_7, bcls_7, vmem_limit)

    scores = [g_sm, l7_sm, l4_sm]
    fea_trip = [g_rd, l7_rd, l4_rd]
    fea_for_test = jnp.concatenate([g_rd, l7_rd, l4_rd], axis=1)
    if norm:
        n = jnp.sqrt(jnp.sum(fea_for_test * fea_for_test, axis=1, keepdims=True))
        fea_for_test = fea_for_test / jnp.maximum(n, NORM_EPS)
    return scores, fea_trip, l2_side, l3_side, l4_side, fea_for_test


# ---------------- deterministic parameter init (mirrors reset_params) --------

def init_cbr2(key):
    """nn.Conv2d(512,256,1) kaiming_normal(fan_out) + zero bias; BatchNorm2d(256)
    with gamma=1, beta=0 and fresh running stats (inference mode)."""
    std = math.sqrt(2.0 / C_RD)                        # fan_out = out_channels*1*1
    w = std * jax.random.normal(key, (C_RD, C_IN), jnp.float32)   # torch (O, I)
    wr = w.T                                                      # (C_IN, C_RD)
    bconv = jnp.zeros((C_RD,), jnp.float32)
    gamma = jnp.ones((C_RD,), jnp.float32)
    beta = jnp.zeros((C_RD,), jnp.float32)
    rmean = jnp.zeros((C_RD,), jnp.float32)
    rvar = jnp.ones((C_RD,), jnp.float32)
    return (wr, bconv, gamma, beta, rmean, rvar)


def init_linear(key):
    """nn.Linear(256, 751): normal(std=0.001) weight, zero bias."""
    w = 0.001 * jax.random.normal(key, (NUM_CLASSES, C_RD), jnp.float32)
    return (w.T, jnp.zeros((NUM_CLASSES,), jnp.float32))


if __name__ == "__main__":
    key = jax.random.PRNGKey(0)
    ks = jax.random.split(key, 9)

    params = {
        "g_reduce": init_cbr2(ks[0]),
        "g_classifier": init_linear(ks[1]),
        "l4_reduce": init_cbr2(ks[2]),
        "l4_classifier": init_linear(ks[3]),   # present in the module, unused by forward
        "l7_reduce": init_cbr2(ks[4]),
        "l7_classifier": init_linear(ks[5]),
    }

    # Small synthetic side outputs of drn_d_54 (layer4 / layer7 / layer8),
    # all 512-channel maps at the same (stride-8) spatial resolution.
    B, H, W = 2, 8, 8
    x_layer4 = jax.random.normal(ks[6], (B, C_IN, H, W), jnp.float32)
    x_layer7 = jax.random.normal(ks[7], (B, C_IN, H, W), jnp.float32)
    x_layer8 = jax.random.normal(ks[8], (B, C_IN, H, W), jnp.float32)

    fwd = jax.jit(functools.partial(drn2_forward, norm=False))
    out = fwd(x_layer4, x_layer7, x_layer8, params)
    scores, fea_trip, l2_side, l3_side, l4_side, fea_for_test = out
    jax.tree_util.tree_map(jax.block_until_ready, out)

    assert scores[0].shape == (B, NUM_CLASSES)
    assert fea_trip[0].shape == (B, C_RD)
    assert l2_side.shape == (B, 1, H, W)
    assert l3_side.shape == (B, 1, H, W)
    assert l4_side.shape == (B, 1, H, W)
    assert fea_for_test.shape == (B, 3 * C_RD)
    print("KERNEL_OK")
</pallas_src>

<mosaic_0001>
module attributes {stable_mosaic.version = 11 : i64} {
  func.func @_branch_head_kernel(%arg0: i32, %arg1: i32, %arg2: memref<2x512x128xf32, #tpu.memory_space<vmem>>, %arg3: memref<512x256xbf16, #tpu.memory_space<vmem>>, %arg4: memref<1x256xf32, #tpu.memory_space<vmem>>, %arg5: memref<256x768xbf16, #tpu.memory_space<vmem>>, %arg6: memref<1x768xf32, #tpu.memory_space<vmem>>, %arg7: memref<2x128xf32, #tpu.memory_space<vmem>>, %arg8: memref<2x256xf32, #tpu.memory_space<vmem>>, %arg9: memref<2x768xf32, #tpu.memory_space<vmem>>, %arg10: memref<2x512xf32, #tpu.memory_space<vmem>>) attributes {dimension_semantics = [#tpu.dimension_semantics<parallel>, #tpu.dimension_semantics<arbitrary>], iteration_bounds = array<i64: 1, 1>, scalar_prefetch = 0 : i64, scratch_operands = 1 : i64, tpu.core_type = #tpu.core_type<tc>, window_params = [{transform_indices = @transform_0, window_bounds = array<i64: 2, 512, 128>}, {pipeline_mode = #tpu.pipeline_mode<synchronous>, transform_indices = @transform_1, window_bounds = array<i64: 512, 256>}, {pipeline_mode = #tpu.pipeline_mode<synchronous>, transform_indices = @transform_2, window_bounds = array<i64: 1, 256>}, {pipeline_mode = #tpu.pipeline_mode<synchronous>, transform_indices = @transform_3, window_bounds = array<i64: 256, 768>}, {pipeline_mode = #tpu.pipeline_mode<synchronous>, transform_indices = @transform_4, window_bounds = array<i64: 1, 768>}, {transform_indices = @transform_5, window_bounds = array<i64: 2, 128>}, {transform_indices = @transform_6, window_bounds = array<i64: 2, 256>}, {transform_indices = @transform_7, window_bounds = array<i64: 2, 768>}]} {
    %c0_i32 = arith.constant 0 : i32
    %0 = arith.cmpi eq, %arg1, %c0_i32 : i32
    %1 = arith.extui %0 : i1 to i32
    %c0_i32_0 = arith.constant 0 : i32
    %2 = arith.cmpi ne, %1, %c0_i32_0 : i32
    scf.if %2 {
      %cst_37 = arith.constant 0.000000e+00 : f32
      %45 = vector.broadcast %cst_37 : f32 to vector<2x512xf32>
      %c0_38 = arith.constant 0 : index
      %c0_39 = arith.constant 0 : index
      %46 = vector.load %arg10[%c0_38, %c0_39] : memref<2x512xf32, #tpu.memory_space<vmem>>, vector<2x512xf32>
      tpu.vector_store %arg10[%c0_38, %c0_39], %45 {strides = array<i32>} : memref<2x512xf32, #tpu.memory_space<vmem>>, vector<2x512xf32>,
    } else {
    }
    %cst = arith.constant 0.000000e+00 : f32
    %3 = vector.broadcast %cst : f32 to vector<2x128xf32>
    %c0 = arith.constant 0 : index
    %c0_1 = arith.constant 0 : index
    %c0_2 = arith.constant 0 : index
    %4 = vector.load %arg2[%c0, %c0_1, %c0_2] : memref<2x512x128xf32, #tpu.memory_space<vmem>>, vector<2x128x128xf32>
    %5 = arith.mulf %4, %4 : vector<2x128x128xf32>
    %cst_3 = arith.constant dense<0.000000e+00> : vector<2x128xf32>
    %6 = vector.multi_reduction <add>, %5, %cst_3 [1] : vector<2x128x128xf32> to vector<2x128xf32>
    %7 = arith.addf %3, %6 : vector<2x128xf32>
    %c0_4 = arith.constant 0 : index
    %c0_5 = arith.constant 0 : index
    %8 = vector.load %arg10[%c0_4, %c0_5] : memref<2x512xf32, #tpu.memory_space<vmem>>, vector<2x128xf32>
    %cst_6 = arith.constant dense<0.000000e+00> : vector<2x128xf32>
    %9 = vector.multi_reduction <add>, %4, %cst_6 [2] : vector<2x128x128xf32> to vector<2x128xf32>
    %10 = arith.addf %8, %9 : vector<2x128xf32>
    %c0_7 = arith.constant 0 : index
    %c0_8 = arith.constant 0 : index
    %11 = vector.load %arg10[%c0_7, %c0_8] : memref<2x512xf32, #tpu.memory_space<vmem>>, vector<2x128xf32>
    tpu.vector_store %arg10[%c0_7, %c0_8], %10 {strides = array<i32>} : memref<2x512xf32, #tpu.memory_space<vmem>>, vector<2x128xf32>,
    %c0_9 = arith.constant 0 : index
    %c128 = arith.constant 128 : index
    %c0_10 = arith.constant 0 : index
    %12 = vector.load %arg2[%c0_9, %c128, %c0_10] : memref<2x512x128xf32, #tpu.memory_space<vmem>>, vector<2x128x128xf32>
    %13 = arith.mulf %12, %12 : vector<2x128x128xf32>
    %cst_11 = arith.constant dense<0.000000e+00> : vector<2x128xf32>
    %14 = vector.multi_reduction <add>, %13, %cst_11 [1] : vector<2x128x128xf32> to vector<2x128xf32>
    %15 = arith.addf %7, %14 : vector<2x128xf32>
    %c0_12 = arith.constant 0 : index
    %c128_13 = arith.constant 128 : index
    %16 = vector.load %arg10[%c0_12, %c128_13] : memref<2x512xf32, #tpu.memory_space<vmem>>, vector<2x128xf32>
    %cst_14 = arith.constant dense<0.000000e+00> : vector<2x128xf32>
    %17 = vector.multi_reduction <add>, %12, %cst_14 [2] : vector<2x128x128xf32> to vector<2x128xf32>
    %18 = arith.addf %16, %17 : vector<2x128xf32>
    %c0_15 = arith.constant 0 : index
    %c128_16 = arith.constant 128 : index
    %19 = vector.load %arg10[%c0_15, %c128_16] : memref<2x512xf32, #tpu.memory_space<vmem>>, vector<2x128xf32>
    tpu.vector_store %arg10[%c0_15, %c128_16], %18 {strides = array<i32>} : memref<2x512xf32, #tpu.memory_space<vmem>>, vector<2x128xf32>,
    %c0_17 = arith.constant 0 : index
    %c256 = arith.constant 256 : index
    %c0_18 = arith.constant 0 : index
    %20 = vector.load %arg2[%c0_17, %c256, %c0_18] : memref<2x512x128xf32, #tpu.memory_space<vmem>>, vector<2x128x128xf32>
    %21 = arith.mulf %20, %20 : vector<2x128x128xf32>
    %cst_19 = arith.constant dense<0.000000e+00> : vector<2x128xf32>
    %22 = vector.multi_reduction <add>, %21, %cst_19 [1] : vector<2x128x128xf32> to vector<2x128xf32>
    %23 = arith.addf %15, %22 : vector<2x128xf32>
    %c0_20 = arith.constant 0 : index
    %c256_21 = arith.constant 256 : index
    %24 = vector.load %arg10[%c0_20, %c256_21] : memref<2x512xf32, #tpu.memory_space<vmem>>, vector<2x128xf32>
    %cst_22 = arith.constant dense<0.000000e+00> : vector<2x128xf32>
    %25 = vector.multi_reduction <add>, %20, %cst_22 [2] : vector<2x128x128xf32> to vector<2x128xf32>
    %26 = arith.addf %24, %25 : vector<2x128xf32>
    %c0_23 = arith.constant 0 : index
    %c256_24 = arith.constant 256 : index
    %27 = vector.load %arg10[%c0_23, %c256_24] : memref<2x512xf32, #tpu.memory_space<vmem>>, vector<2x128xf32>
    tpu.vector_store %arg10[%c0_23, %c256_24], %26 {strides = array<i32>} : memref<2x512xf32, #tpu.memory_space<vmem>>, vector<2x128xf32>,
    %c0_25 = arith.constant 0 : index
    %c384 = arith.constant 384 : index
    %c0_26 = arith.constant 0 : index
    %28 = vector.load %arg2[%c0_25, %c384, %c0_26] : memref<2x512x128xf32, #tpu.memory_space<vmem>>, vector<2x128x128xf32>
    %29 = arith.mulf %28, %28 : vector<2x128x128xf32>
    %cst_27 = arith.constant dense<0.000000e+00> : vector<2x128xf32>
    %30 = vector.multi_reduction <add>, %29, %cst_27 [1] : vector<2x128x128xf32> to vector<2x128xf32>
    %31 = arith.addf %23, %30 : vector<2x128xf32>
    %c0_28 = arith.constant 0 : index
    %c384_29 = arith.constant 384 : index
    %32 = vector.load %arg10[%c0_28, %c384_29] : memref<2x512xf32, #tpu.memory_space<vmem>>, vector<2x128xf32>
    %cst_30 = arith.constant dense<0.000000e+00> : vector<2x128xf32>
    %33 = vector.multi_reduction <add>, %28, %cst_30 [2] : vector<2x128x128xf32> to vector<2x128xf32>
    %34 = arith.addf %32, %33 : vector<2x128xf32>
    %c0_31 = arith.constant 0 : index
    %c384_32 = arith.constant 384 : index
    %35 = vector.load %arg10[%c0_31, %c384_32] : memref<2x512xf32, #tpu.memory_space<vmem>>, vector<2x128xf32>
    tpu.vector_store %arg10[%c0_31, %c384_32], %34 {strides = array<i32>} : memref<2x512xf32, #tpu.memory_space<vmem>>, vector<2x128xf32>,
    %c128_i32 = arith.constant 128 : i32
    %36 = arith.muli %arg1, %c128_i32 : i32
    %37 = tpu.assume_multiple %36, 128 : i32
    %cst_33 = arith.constant 0.001953125 : f32
    %38 = vector.broadcast %cst_33 : f32 to vector<2x128xf32>
    %39 = arith.mulf %31, %38 : vector<2x128xf32>
    %c0_34 = arith.constant 0 : index
    %40 = arith.index_cast %37 : i32 to index
    %41 = vector.load %arg7[%c0_34, %40] : memref<2x128xf32, #tpu.memory_space<vmem>>, vector<2x128xf32>
    tpu.vector_store %arg7[%c0_34, %40], %39 {strides = array<i32>} : memref<2x128xf32, #tpu.memory_space<vmem>>, vector<2x128xf32>,
    %c0_i32_35 = arith.constant 0 : i32
    %42 = arith.cmpi eq, %arg1, %c0_i32_35 : i32
    %43 = arith.extui %42 : i1 to i32
    %c0_i32_36 = arith.constant 0 : i32
    %44 = arith.cmpi ne, %43, %c0_i32_36 : i32
    scf.if %44 {
      %c0_37 = arith.constant 0 : index
      %c0_38 = arith.constant 0 : index
      %45 = vector.load %arg7[%c0_37, %c0_38] : memref<2x128xf32, #tpu.memory_space<vmem>>, vector<2x128xf32>
      %46 = arith.mulf %45, %45 : vector<2x128xf32>
      %cst_39 = arith.constant dense<0.000000e+00> : vector<2xf32>
      %47 = vector.multi_reduction <add>, %46, %cst_39 [1] : vector<2x128xf32> to vector<2xf32>
      %48 = vector.shape_cast %47 : vector<2xf32> to vector<2x1xf32>
      %cst_40 = arith.constant 1.000000e-24 : f32
      %49 = vector.broadcast %cst_40 : f32 to vector<2x1xf32>
      %50 = arith.maximumf %48, %49 : vector<2x1xf32>
      %51 = math.rsqrt %50 : vector<2x1xf32>
      %52 = vector.broadcast %51 : vector<2x1xf32> to vector<2x128xf32>
      %53 = arith.mulf %45, %52 : vector<2x128xf32>
      %c0_41 = arith.constant 0 : index
      %c0_42 = arith.constant 0 : index
      %54 = vector.load %arg7[%c0_41, %c0_42] : memref<2x128xf32, #tpu.memory_space<vmem>>, vector<2x128xf32>
      tpu.vector_store %arg7[%c0_41, %c0_42], %53 {strides = array<i32>} : memref<2x128xf32, #tpu.memory_space<vmem>>, vector<2x128xf32>,
      %c0_43 = arith.constant 0 : index
      %c0_44 = arith.constant 0 : index
      %55 = vector.load %arg10[%c0_43, %c0_44] : memref<2x512xf32, #tpu.memory_space<vmem>>, vector<2x512xf32>
      %cst_45 = arith.constant 1.562500e-02 : f32
      %56 = vector.broadcast %cst_45 : f32 to vector<2x512xf32>
      %57 = arith.mulf %55, %56 : vector<2x512xf32>
      %58 = arith.truncf %57 : vector<2x512xf32> to vector<2x512xbf16>
      %c0_46 = arith.constant 0 : index
      %c0_47 = arith.constant 0 : index
      %59 = vector.load %arg3[%c0_46, %c0_47] : memref<512x256xbf16, #tpu.memory_space<vmem>>, vector<512x256xbf16>
      %cst_48 = arith.constant dense<0.000000e+00> : vector<2x256xf32>
      %60 = tpu.matmul %58, %59, %cst_48 {dimension_numbers = #tpu.dot_dimension_numbers<[1], [0], [0], [1], [0, 0, 1, 1], [], []>} : vector<2x512xbf16>, vector<512x256xbf16>, vector<2x256xf32> -> vector<2x256xf32>
      %c0_49 = arith.constant 0 : index
      %c0_50 = arith.constant 0 : index
      %61 = vector.load %arg4[%c0_49, %c0_50] : memref<1x256xf32, #tpu.memory_space<vmem>>, vector<1x256xf32>
      %62 = vector.broadcast %61 : vector<1x256xf32> to vector<2x256xf32>
      %63 = arith.addf %60, %62 : vector<2x256xf32>
      %c0_51 = arith.constant 0 : index
      %c0_52 = arith.constant 0 : index
      %64 = vector.load %arg8[%c0_51, %c0_52] : memref<2x256xf32, #tpu.memory_space<vmem>>, vector<2x256xf32>
      tpu.vector_store %arg8[%c0_51, %c0_52], %63 {strides = array<i32>} : memref<2x256xf32, #tpu.memory_space<vmem>>, vector<2x256xf32>,
      %65 = arith.truncf %63 : vector<2x256xf32> to vector<2x256xbf16>
      %c0_53 = arith.constant 0 : index
      %c0_54 = arith.constant 0 : index
      %66 = vector.load %arg5[%c0_53, %c0_54] : memref<256x768xbf16, #tpu.memory_space<vmem>>, vector<256x768xbf16>
      %cst_55 = arith.constant dense<0.000000e+00> : vector<2x768xf32>
      %67 = tpu.matmul %65, %66, %cst_55 {dimension_numbers = #tpu.dot_dimension_numbers<[1], [0], [0], [1], [0, 0, 1, 1], [], []>} : vector<2x256xbf16>, vector<256x768xbf16>, vector<2x768xf32> -> vector<2x768xf32>
      %c0_56 = arith.constant 0 : index
      %c0_57 = arith.constant 0 : index
      %68 = vector.load %arg6[%c0_56, %c0_57] : memref<1x768xf32, #tpu.memory_space<vmem>>, vector<1x768xf32>
      %69 = vector.broadcast %68 : vector<1x768xf32> to vector<2x768xf32>
      %70 = arith.addf %67, %69 : vector<2x768xf32>
      %c0_58 = arith.constant 0 : index
      %c0_59 = arith.constant 0 : index
      %71 = vector.load %arg9[%c0_58, %c0_59] : memref<2x768xf32, #tpu.memory_space<vmem>>, vector<2x768xf32>
      tpu.vector_store %arg9[%c0_58, %c0_59], %70 {strides = array<i32>} : memref<2x768xf32, #tpu.memory_space<vmem>>, vector<2x768xf32>,
    } else {
    }
    return
  }
  func.func @transform_0(%arg0: i32, %arg1: i32) -> (i32, i32, i32) {
    %c0_i32 = arith.constant 0 : i32
    %c0_i32_0 = arith.constant 0 : i32
    return %arg0, %c0_i32, %arg1 : i32, i32, i32
  }
  func.func @transform_1(%arg0: i32, %arg1: i32) -> (i32, i32) {
    %c0_i32 = arith.constant 0 : i32
    %c0_i32_0 = arith.constant 0 : i32
    %c0_i32_1 = arith.constant 0 : i32
    return %c0_i32, %c0_i32_0 : i32, i32
  }
  func.func @transform_2(%arg0: i32, %arg1: i32) -> (i32, i32) {
    %c0_i32 = arith.constant 0 : i32
    %c0_i32_0 = arith.constant 0 : i32
    %c0_i32_1 = arith.constant 0 : i32
    return %c0_i32, %c0_i32_0 : i32, i32
  }
  func.func @transform_3(%arg0: i32, %arg1: i32) -> (i32, i32) {
    %c0_i32 = arith.constant 0 : i32
    %c0_i32_0 = arith.constant 0 : i32
    %c0_i32_1 = arith.constant 0 : i32
    return %c0_i32, %c0_i32_0 : i32, i32
  }
  func.func @transform_4(%arg0: i32, %arg1: i32) -> (i32, i32) {
    %c0_i32 = arith.constant 0 : i32
    %c0_i32_0 = arith.constant 0 : i32
    %c0_i32_1 = arith.constant 0 : i32
    return %c0_i32, %c0_i32_0 : i32, i32
  }
  func.func @transform_5(%arg0: i32, %arg1: i32) -> (i32, i32) {
    %c0_i32 = arith.constant 0 : i32
    %c0_i32_0 = arith.constant 0 : i32
    return %arg0, %c0_i32 : i32, i32
  }
  func.func @transform_6(%arg0: i32, %arg1: i32) -> (i32, i32) {
    %c0_i32 = arith.constant 0 : i32
    %c0_i32_0 = arith.constant 0 : i32
    return %arg0, %c0_i32 : i32, i32
  }
  func.func @transform_7(%arg0: i32, %arg1: i32) -> (i32, i32) {
    %c0_i32 = arith.constant 0 : i32
    %c0_i32_0 = arith.constant 0 : i32
    return %arg0, %c0_i32 : i32, i32
  }
}

</mosaic_0001>

<bundles_post_ra>
// kernel: drn2_forward.4
= control target key start
LH: loop header
LB: loop body
LE: loop exit
PB: predicated region body
PF: predicated region fallthrough
CT: control target
= control target key end

     0   :  { %s13824_s0 = inlined_call_operand.vmem [shape: f32[2,512,128], index: 0, kind: input, shape index: {}]   ;;  %s13825_s1 = inlined_call_operand.vmem [shape: bf16[512,256], index: 1, kind: input, shape index: {}]   ;;  %s13826_s2 = inlined_call_operand.vmem [shape: f32[1,256], index: 2, kind: input, shape index: {}]   ;;  %s13827_s3 = inlined_call_operand.vmem [shape: bf16[256,768], index: 3, kind: input, shape index: {}]   ;;  %s13828_s4 = inlined_call_operand.vmem [shape: f32[1,768], index: 4, kind: input, shape index: {}]   ;;  %s13829_s5 = inlined_call_operand.vmem [shape: f32[2,128], index: 5, kind: output, shape index: {0}]   ;;  %s13830_s6 = inlined_call_operand.vmem [shape: f32[2,256], index: 6, kind: output, shape index: {1}]   ;;  %s13831_s7 = inlined_call_operand.hbm [shape: f32[2,768], index: 7, kind: output, shape index: {2}]  }
   0x1   :  { %v31_v0 = vld [vmem:[%s13824_s0 + $0x10] sm:$0xff]  ;;  %v29_v1 = vld [vmem:[%s13824_s0] sm:$0xff]  ;;  %v30_v3 = vld [vmem:[%s13824_s0 + $0x8] sm:$0xff] }
   0x2   :  { %142 = vadd.xlane.f32.xlu1 %v31_v0  ;;  %138 = vadd.xlane.f32.xlu0 %v29_v1  ;;  %v61_v2 = vmul.f32 %v29_v1, %v29_v1  ;;  %v63_v4 = vmul.f32 %v31_v0, %v31_v0  ;;  %v32_v5 = vld [vmem:[%s13824_s0 + $0x18] sm:$0xff]  ;;  %v62_v6 = vmul.f32 %v30_v3, %v30_v3  ;;  %v33_v9 = vld [vmem:[%s13824_s0 + $0x20] sm:$0xff]  ;;  %v9538_v10 = vld [vmem:[%s13824_s0 + $0x208] sm:$0xff] }
   0x3   :  { %v64_v7 = vmul.f32 %v32_v5, %v32_v5  ;;  %v9543_v11 = vld [vmem:[%s13824_s0 + $0x200] sm:$0xff]  ;;  %v34_v13 = vld [vmem:[%s13824_s0 + $0x28] sm:$0xff]  ;;  %v65_v14 = vmul.f32 %v33_v9, %v33_v9  ;;  %v78_v15 = vmul.f32 %v9538_v10, %v9538_v10  ;;  %v9555_v17 = vld [vmem:[%s13824_s0 + $0x210] sm:$0xff] }
   0x4   :  { %v93_v8 = vadd.f32 %v62_v6, %v61_v2  ;;  %v77_v16 = vmul.f32 %v9543_v11, %v9543_v11  ;;  %v9560_v18 = vld [vmem:[%s13824_s0 + $0x218] sm:$0xff]  ;;  %v79_v19 = vmul.f32 %v9555_v17, %v9555_v17  ;;  %v66_v20 = vmul.f32 %v34_v13, %v34_v13  ;;  %v35_v24 = vld [vmem:[%s13824_s0 + $0x30] sm:$0xff]  ;;  %v9572_v25 = vld [vmem:[%s13824_s0 + $0x220] sm:$0xff] }
   0x5   :  { %v80_v23 = vmul.f32 %v9560_v18, %v9560_v18  ;;  %v36_v27 = vld [vmem:[%s13824_s0 + $0x38] sm:$0xff]  ;;  %v67_v28 = vmul.f32 %v35_v24, %v35_v24  ;;  %v9580_v30 = vld [vmem:[%s13824_s0 + $0x228] sm:$0xff]  ;;  %v81_v31 = vmul.f32 %v9572_v25, %v9572_v25  ;;  %v9589_v34 = vld [vmem:[%s13824_s0 + $0x80] sm:$0xff] }
   0x6   :  { %144 = vadd.xlane.f32.xlu1 %v32_v5  ;;  %140 = vadd.xlane.f32.xlu0 %v30_v3  ;;  %v94_v12 = vadd.f32 %v93_v8, %v63_v4  ;;  %v114_v22 = vadd.f32 %v78_v15, %v77_v16  ;;  %v68_v32 = vmul.f32 %v36_v27, %v36_v27  ;;  %v9594_v35 = vld [vmem:[%s13824_s0 + $0x88] sm:$0xff]  ;;  %v37_v37 = vld [vmem:[%s13824_s0 + $0x40] sm:$0xff]  ;;  %v9602_v39 = vld [vmem:[%s13824_s0 + $0x230] sm:$0xff] }
   0x7   :  { %v82_v33 = vmul.f32 %v9580_v30, %v9580_v30  ;;  %v2004_v40 = vmul.f32 %v9589_v34, %v9589_v34  ;;  %v2005_v41 = vmul.f32 %v9594_v35, %v9594_v35  ;;  %v9611_v42 = vld [vmem:[%s13824_s0 + $0x90] sm:$0xff]  ;;  %v69_v43 = vmul.f32 %v37_v37, %v37_v37  ;;  %v9618_v45 = vld [vmem:[%s13824_s0 + $0x98] sm:$0xff]  ;;  %v38_v48 = vld [vmem:[%s13824_s0 + $0x48] sm:$0xff] }
   0x8   :  { %v95_v21 = vadd.f32 %v94_v12, %v64_v7  ;;  %v115_v29 = vadd.f32 %v114_v22, %v79_v19  ;;  %v83_v44 = vmul.f32 %v9602_v39, %v9602_v39  ;;  %v2006_v46 = vmul.f32 %v9611_v42, %v9611_v42  ;;  %v9628_v50 = vld [vmem:[%s13824_s0 + $0x238] sm:$0xff]  ;;  %v9637_v55 = vld [vmem:[%s13824_s0 + $0xa0] sm:$0xff]  ;;  %v39_v57 = vld [vmem:[%s13824_s0 + $0x50] sm:$0xff] }
   0x9   :  { %v2036_v51 = vadd.f32 %v2005_v41, %v2004_v40  ;;  %v2007_v52 = vmul.f32 %v9618_v45, %v9618_v45  ;;  %v70_v53 = vmul.f32 %v38_v48, %v38_v48  ;;  %v84_v54 = vmul.f32 %v9628_v50, %v9628_v50  ;;  %v9645_v59 = vld [vmem:[%s13824_s0 + $0x240] sm:$0xff]  ;;  %v9654_v0 = vld [vmem:[%s13824_s0 + $0xa8] sm:$0xff]  ;;  %v40_v2 = vld [vmem:[%s13824_s0 + $0x58] sm:$0xff] }
   0xa   :  { %148 = vadd.xlane.f32.xlu1 %v34_v13  ;;  %146 = vadd.xlane.f32.xlu0 %v33_v9  ;;  %v96_v26 = vadd.f32 %v95_v21, %v65_v14  ;;  %v116_v38 = vadd.f32 %v115_v29, %v80_v23  ;;  %v2008_v61 = vmul.f32 %v9637_v55, %v9637_v55  ;;  %v54_v4 = vld [vmem:[%s13824_s0 + $0x248] sm:$0xff]  ;;  %v9667_v9 = vld [vmem:[%s13824_s0 + $0xb0] sm:$0xff]  ;;  %v41_v13 = vld [vmem:[%s13824_s0 + $0x60] sm:$0xff] }
   0xb   :  { %v2037_v60 = vadd.f32 %v2036_v51, %v2006_v46  ;;  %v71_v62 = vmul.f32 %v39_v57, %v39_v57  ;;  %v85_v63 = vmul.f32 %v9645_v59, %v9645_v59  ;;  %v2009_v5 = vmul.f32 %v9654_v0, %v9654_v0  ;;  %v55_v15 = vld [vmem:[%s13824_s0 + $0x250] sm:$0xff]  ;;  %v1979_v22 = vld [vmem:[%s13824_s0 + $0xb8] sm:$0xff] }
   0xc   :  { %v97_v36 = vadd.f32 %v96_v26, %v66_v20  ;;  %v117_v49 = vadd.f32 %v116_v38, %v81_v31  ;;  %v72_v7 = vmul.f32 %v40_v2, %v40_v2  ;;  %v86_v8 = vmul.f32 %v54_v4, %v54_v4  ;;  %v56_v31 = vld [vmem:[%s13824_s0 + $0x258] sm:$0xff] }
   0xd   :  { %v2038_v6 = vadd.f32 %v2037_v60, %v2007_v52  ;;  %v2010_v19 = vmul.f32 %v9667_v9, %v9667_v9  ;;  %v73_v20 = vmul.f32 %v41_v13, %v41_v13  ;;  %v87_v21 = vmul.f32 %v55_v15, %v55_v15  ;;  %v44_v40 = vld [vmem:[%s13824_s0 + $0x78] sm:$0xff] }
   0xe   :  { %152 = vadd.xlane.f32.xlu1 %v36_v27  ;;  %150 = vadd.xlane.f32.xlu0 %v35_v24  ;;  %v98_v47 = vadd.f32 %v97_v36, %v67_v28  ;;  %v118_v58 = vadd.f32 %v117_v49, %v82_v33  ;;  %v42_v24 = vld [vmem:[%s13824_s0 + $0x68] sm:$0xff]  ;;  %v2011_v27 = vmul.f32 %v1979_v22, %v1979_v22  ;;  %v43_v33 = vld [vmem:[%s13824_s0 + $0x70] sm:$0xff] }
   0xf   :  { %v2039_v16 = vadd.f32 %v2038_v6, %v2008_v61  ;;  %v74_v29 = vmul.f32 %v42_v24, %v42_v24  ;;  %v88_v36 = vmul.f32 %v56_v31, %v56_v31  ;;  %v75_v41 = vmul.f32 %v43_v33, %v43_v33 }
  0x10   :  { %v99_v56 = vadd.f32 %v98_v47, %v68_v32  ;;  %v119_v3 = vadd.f32 %v118_v58, %v83_v44  ;;  %v57_v44 = vld [vmem:[%s13824_s0 + $0x260] sm:$0xff]  ;;  %v76_v51 = vmul.f32 %v44_v40, %v44_v40 }
  0x11   :  { %v2040_v28 = vadd.f32 %v2039_v16, %v2009_v5 }
  0x12   :  { %156 = vadd.xlane.f32.xlu1 %v38_v48  ;;  %154 = vadd.xlane.f32.xlu0 %v37_v37  ;;  %v100_v1 = vadd.f32 %v99_v56, %v69_v43  ;;  %v120_v14 = vadd.f32 %v119_v3, %v84_v54  ;;  %v58_v43 = vld [vmem:[%s13824_s0 + $0x268] sm:$0xff]  ;;  %v89_v48 = vmul.f32 %v57_v44, %v57_v44  ;;  %v59_v56 = vld [vmem:[%s13824_s0 + $0x270] sm:$0xff] }
  0x13   :  { %v2041_v38 = vadd.f32 %v2040_v28, %v2010_v19  ;;  %v91_v61 = vmul.f32 %v59_v56, %v59_v56 }
  0x14   :  { %v101_v12 = vadd.f32 %v100_v1, %v70_v53  ;;  %v121_v26 = vadd.f32 %v120_v14, %v85_v63  ;;  %v90_v53 = vmul.f32 %v58_v43, %v58_v43 }
  0x15   :  { %v2042_v49 = vadd.f32 %v2041_v38, %v2011_v27 }
  0x16   :  { %160 = vadd.xlane.f32.xlu1 %v40_v2  ;;  %158 = vadd.xlane.f32.xlu0 %v39_v57  ;;  %v102_v23 = vadd.f32 %v101_v12, %v71_v62  ;;  %v122_v37 = vadd.f32 %v121_v26, %v86_v8  ;;  %v60_v57 = vld [vmem:[%s13824_s0 + $0x278] sm:$0xff] }
  0x17   :  { %v92_v63 = vmul.f32 %v60_v57, %v60_v57 }
  0x18   :  { %v103_v32 = vadd.f32 %v102_v23, %v72_v7  ;;  %v123_v47 = vadd.f32 %v122_v37, %v87_v21 }
  0x1a   :  { %164 = vadd.xlane.f32.xlu1 %v42_v24  ;;  %162 = vadd.xlane.f32.xlu0 %v41_v13  ;;  %v104_v46 = vadd.f32 %v103_v32, %v73_v20  ;;  %v124_v54 = vadd.f32 %v123_v47, %v88_v36 }
  0x1c   :  { %v105_v52 = vadd.f32 %v104_v46, %v74_v29  ;;  %v125_v60 = vadd.f32 %v124_v54, %v89_v48 }
  0x1e   :  { %168 = vadd.xlane.f32.xlu1 %v44_v40  ;;  %166 = vadd.xlane.f32.xlu0 %v43_v33  ;;  %v106_v58 = vadd.f32 %v105_v52, %v75_v41  ;;  %v126_v1 = vadd.f32 %v125_v60, %v90_v53 }
  0x20   :  { %v9704_v62 = vadd.f32 %v106_v58, %v76_v51  ;;  %v127_v2 = vadd.f32 %v126_v1, %v91_v61 }
  0x22   :  { %172 = vadd.xlane.f32.xlu1 %v9538_v10  ;;  %170 = vadd.xlane.f32.xlu0 %v9543_v11  ;;  %v9708_v3 = vadd.f32 %v127_v2, %v92_v63  ;;  %v1981_v10 = vld [vmem:[%s13824_s0 + $0xc8] sm:$0xff]  ;;  %v1980_v11 = vld [vmem:[%s13824_s0 + $0xc0] sm:$0xff] }
  0x26   :  { %176 = vadd.xlane.f32.xlu1 %v9560_v18  ;;  %174 = vadd.xlane.f32.xlu0 %v9555_v17  ;;  %v1983_v17 = vld [vmem:[%s13824_s0 + $0xd8] sm:$0xff]  ;;  %v1982_v18 = vld [vmem:[%s13824_s0 + $0xd0] sm:$0xff] }
  0x2a   :  { %180 = vadd.xlane.f32.xlu1 %v9580_v30  ;;  %178 = vadd.xlane.f32.xlu0 %v9572_v25  ;;  %v9739_v25 = vld [vmem:[%s13824_s0 + $0xe8] sm:$0xff]  ;;  %v1984_v30 = vld [vmem:[%s13824_s0 + $0xe0] sm:$0xff] }
  0x2e   :  { %184 = vadd.xlane.f32.xlu1 %v9628_v50  ;;  %182 = vadd.xlane.f32.xlu0 %v9602_v39  ;;  %v9751_v39 = vld [vmem:[%s13824_s0 + $0xf0] sm:$0xff] }
  0x32   :  { %188 = vadd.xlane.f32.xlu1 %v54_v4  ;;  %186 = vadd.xlane.f32.xlu0 %v9645_v59 }
  0x36   :  { %192 = vadd.xlane.f32.xlu1 %v56_v31  ;;  %190 = vadd.xlane.f32.xlu0 %v55_v15 }
  0x3a   :  { %196 = vadd.xlane.f32.xlu1 %v58_v43  ;;  %194 = vadd.xlane.f32.xlu0 %v57_v44 }
  0x3e   :  { %200 = vadd.xlane.f32.xlu1 %v60_v57  ;;  %198 = vadd.xlane.f32.xlu0 %v59_v56 }
  0x42   :  { %2081 = vadd.xlane.f32.xlu1 %v9589_v34  ;;  %2083 = vadd.xlane.f32.xlu0 %v9594_v35  ;;  %v2012_v34 = vmul.f32 %v1980_v11, %v1980_v11  ;;  %v1988_v35 = vld [vmem:[%s13824_s0 + $0x280] sm:$0xff] }
  0x46   :  { %2087 = vadd.xlane.f32.xlu1 %v9618_v45  ;;  %2085 = vadd.xlane.f32.xlu0 %v9611_v42  ;;  %v1989_v42 = vld [vmem:[%s13824_s0 + $0x288] sm:$0xff] }
  0x4a   :  { %2091 = vadd.xlane.f32.xlu1 %v9654_v0  ;;  %2089 = vadd.xlane.f32.xlu0 %v9637_v55 }
  0x4e   :  { %2095 = vadd.xlane.f32.xlu1 %v1979_v22  ;;  %2093 = vadd.xlane.f32.xlu0 %v9667_v9 }
  0x52   :  { %2099 = vadd.xlane.f32.xlu1 %v1981_v10  ;;  %2097 = vadd.xlane.f32.xlu0 %v1980_v11 }
  0x56   :  { %2103 = vadd.xlane.f32.xlu1 %v1983_v17  ;;  %2101 = vadd.xlane.f32.xlu0 %v1982_v18 }
  0x5a   :  { %2107 = vadd.xlane.f32.xlu1 %v9739_v25  ;;  %2105 = vadd.xlane.f32.xlu0 %v1984_v30 }
  0x5b   :  { %13 = vsyncpa [#allocation4], 0  ;;  %v2013_v45 = vmul.f32 %v1981_v10, %v1981_v10  ;;  %v2043_v50 = vadd.f32 %v2042_v49, %v2012_v34  ;;  %v2020_v55 = vmul.f32 %v1988_v35, %v1988_v35  ;;  %v2021_v59 = vmul.f32 %v1989_v42, %v1989_v42  ;;  %v3898_v0 = vld [vmem:[%s13824_s0 + $0x300] sm:$0xff]  ;;  %v3899_v4 = vld [vmem:[%s13824_s0 + $0x308] sm:$0xff] }
  0x5c   :  { %v3882_v5 = vld [vmem:[%s13824_s0 + $0x100] sm:$0xff]  ;;  %v3930_v6 = vmul.f32 %v3898_v0, %v3898_v0  ;;  %v3931_v7 = vmul.f32 %v3899_v4, %v3899_v4  ;;  %v9769_v8 = vld [vmem:[%s13824_s0 + $0x290] sm:$0xff]  ;;  %v2014_v9 = vmul.f32 %v1982_v18, %v1982_v18  ;;  %v3883_v15 = vld [vmem:[%s13824_s0 + $0x108] sm:$0xff]  ;;  %v2015_v24 = vmul.f32 %v1983_v17, %v1983_v17 }
  0x5d   :  { %v2044_v12 = vadd.f32 %v2043_v50, %v2013_v45  ;;  %v2057_v13 = vadd.f32 %v2021_v59, %v2020_v55  ;;  %v2022_v14 = vmul.f32 %v9769_v8, %v9769_v8  ;;  %v9779_v16 = vld [vmem:[%s13824_s0 + $0x310] sm:$0xff]  ;;  %v3914_v19 = vmul.f32 %v3882_v5, %v3882_v5  ;;  %v9786_v23 = vld [vmem:[%s13824_s0 + $0x298] sm:$0xff]  ;;  %v5792_v27 = vld [vmem:[%s13824_s0 + $0x180] sm:$0xff] }
  0x5e   :  { %2113 = vadd.xlane.f32.xlu1 %v1988_v35  ;;  %2109 = vadd.xlane.f32.xlu0 %v9751_v39  ;;  %v3915_v20 = vmul.f32 %v3883_v15, %v3883_v15  ;;  %v3967_v21 = vadd.f32 %v3931_v7, %v3930_v6  ;;  %v3932_v22 = vmul.f32 %v9779_v16, %v9779_v16  ;;  %v5793_v28 = vld [vmem:[%s13824_s0 + $0x188] sm:$0xff]  ;;  %v5808_v33 = vld [vmem:[%s13824_s0 + $0x380] sm:$0xff]  ;;  %v9805_v41 = vld [vmem:[%s13824_s0 + $0x110] sm:$0xff]  ;;  %vm1781_vm0 = vcmask 130112  }
  0x5f   :  { %v2045_v26 = vadd.f32 %v2044_v12, %v2014_v9  ;;  %v2058_v29 = vadd.f32 %v2057_v13, %v2022_v14  ;;  %v2023_v31 = vmul.f32 %v9786_v23, %v9786_v23  ;;  %v5824_v32 = vmul.f32 %v5792_v27, %v5792_v27  ;;  %v5809_v37 = vld [vmem:[%s13824_s0 + $0x388] sm:$0xff]  ;;  %v9810_v43 = vld [vmem:[%s13824_s0 + $0x318] sm:$0xff]  ;;  %v9819_v49 = vld [vmem:[%s13824_s0 + $0x2a0] sm:$0xff] }
  0x60   :  { %v5825_v36 = vmul.f32 %v5793_v28, %v5793_v28  ;;  %v5840_v38 = vmul.f32 %v5808_v33, %v5808_v33  ;;  %v5841_v40 = vmul.f32 %v5809_v37, %v5809_v37  ;;  %v3946_v44 = vadd.f32 %v3915_v20, %v3914_v19  ;;  %v9824_v53 = vld [vmem:[%s13824_s0 + $0x190] sm:$0xff]  ;;  %v9840_v1 = vld [vmem:[%s13824_s0 + $0x118] sm:$0xff]  ;;  %v9845_v2 = vld [vmem:[%s13824_s0 + $0x320] sm:$0xff] }
  0x61   :  { %v3968_v46 = vadd.f32 %v3967_v21, %v3932_v22  ;;  %v3916_v47 = vmul.f32 %v9805_v41, %v9805_v41  ;;  %v3933_v48 = vmul.f32 %v9810_v43, %v9810_v43  ;;  %v2016_v51 = vmul.f32 %v1984_v30, %v1984_v30  ;;  %v9831_v58 = vld [vmem:[%s13824_s0 + $0x390] sm:$0xff]  ;;  %v9854_v30 = vld [vmem:[%s13824_s0 + $0x2a8] sm:$0xff]  ;;  %v9878_v6 = vld [vmem:[%s13824_s0 + $0x120] sm:$0xff] }
  0x62   :  { %3991 = vadd.xlane.f32.xlu1 %v3882_v5  ;;  %2115 = vadd.xlane.f32.xlu0 %v1989_v42  ;;  %v2046_v52 = vadd.f32 %v2045_v26, %v2015_v24  ;;  %v2059_v54 = vadd.f32 %v2058_v29, %v2023_v31  ;;  %v2024_v56 = vmul.f32 %v9819_v49, %v9819_v49  ;;  %v9861_v42 = vld [vmem:[%s13824_s0 + $0x198] sm:$0xff]  ;;  %v9883_v7 = vld [vmem:[%s13824_s0 + $0x328] sm:$0xff]  ;;  %v9899_v21 = vld [vmem:[%s13824_s0 + $0x1a0] sm:$0xff]  ;;  %vm1788_vm1 = vcmask 195712  }
  0x63   :  { %v5856_v57 = vadd.f32 %v5825_v36, %v5824_v32  ;;  %v5826_v60 = vmul.f32 %v9824_v53, %v9824_v53  ;;  %v5877_v61 = vadd.f32 %v5841_v40, %v5840_v38  ;;  %v5842_v63 = vmul.f32 %v9831_v58, %v9831_v58  ;;  %v9917_v32 = vld [vmem:[%s13824_s0 + $0x128] sm:$0xff]  ;;  %v9931_v38 = vld [vmem:[%s13824_s0 + $0x2b8] sm:$0xff] }
  0x64   :  { %v3947_v10 = vadd.f32 %v3946_v44, %v3916_v47  ;;  %v3917_v11 = vmul.f32 %v9840_v1, %v9840_v1  ;;  %v3969_v17 = vadd.f32 %v3968_v46, %v3933_v48  ;;  %v3934_v18 = vmul.f32 %v9845_v2, %v9845_v2  ;;  %v9936_v44 = vld [vmem:[%s13824_s0 + $0x1a8] sm:$0xff] }
  0x65   :  { %v2017_v34 = vmul.f32 %v9739_v25, %v9739_v25  ;;  %v2047_v35 = vadd.f32 %v2046_v52, %v2016_v51  ;;  %v2060_v45 = vadd.f32 %v2059_v54, %v2024_v56  ;;  %v2025_v50 = vmul.f32 %v9854_v30, %v9854_v30  ;;  %v9945_v52 = vld [vmem:[%s13824_s0 + $0x3a8] sm:$0xff]  ;;  %v1987_v54 = vld [vmem:[%s13824_s0 + $0xf8] sm:$0xff] }
  0x66   :  { %4023 = vadd.xlane.f32.xlu1 %v3898_v0  ;;  %3993 = vadd.xlane.f32.xlu0 %v3883_v15  ;;  %v5857_v55 = vadd.f32 %v5856_v57, %v5826_v60  ;;  %v5827_v59 = vmul.f32 %v9861_v42, %v9861_v42  ;;  %v9870_v0 = vld [vmem:[%s13824_s0 + $0x398] sm:$0xff]  ;;  %v108_v25 = vrot.slane %v9704_v62, 4  ;;  %v3948_v9 = vadd.f32 %v3947_v10, %v3917_v11  ;;  %v9892_v15 = vld [vmem:[%s13824_s0 + $0x2b0] sm:$0xff] }
  0x67   :  { %v5843_v5 = vmul.f32 %v9870_v0, %v9870_v0  ;;  %v3970_v12 = vadd.f32 %v3969_v17, %v3934_v18  ;;  %v3918_v13 = vmul.f32 %v9878_v6, %v9878_v6  ;;  %v3935_v14 = vmul.f32 %v9883_v7, %v9883_v7  ;;  %v9971_v18 = vld [vmem:[%s13824_s0 + $0x2c0] sm:$0xff] }
  0x68   :  { %v2018_v19 = vmul.f32 %v9751_v39, %v9751_v39  ;;  %v2048_v20 = vadd.f32 %v2047_v35, %v2017_v34  ;;  %v2061_v22 = vadd.f32 %v2060_v45, %v2025_v50  ;;  %v2026_v24 = vmul.f32 %v9892_v15, %v9892_v15  ;;  %v9976_v34 = vld [vmem:[%s13824_s0 + $0x1b0] sm:$0xff] }
  0x69   :  { %v5858_v26 = vadd.f32 %v5857_v55, %v5827_v59  ;;  %v109_v39 = vadd.f32 %v108_v25, %v9704_v62  ;;  %v3949_v36 = vadd.f32 %v3948_v9, %v3918_v13  ;;  %v3919_v62 = vmul.f32 %v9917_v32, %v9917_v32  ;;  %v9983_v59 = vld [vmem:[%s13824_s0 + $0x3b0] sm:$0xff]  ;;  %v9999_v13 = vld [vmem:[%s13824_s0 + $0x340] sm:$0xff] }
  0x6a   :  { %5901 = vadd.xlane.f32.xlu1 %v5792_v27  ;;  %4025 = vadd.xlane.f32.xlu0 %v3899_v4  ;;  %v5878_v4 = vadd.f32 %v5877_v61, %v5842_v63  ;;  %v9906_v27 = vld [vmem:[%s13824_s0 + $0x3a0] sm:$0xff]  ;;  %v2049_v40 = vadd.f32 %v2048_v20, %v2018_v19  ;;  %v2062_v46 = vadd.f32 %v2061_v22, %v2026_v24  ;;  %v9957_v61 = vld [vmem:[%s13824_s0 + $0x130] sm:$0xff]  ;;  %v9962_v63 = vld [vmem:[%s13824_s0 + $0x338] sm:$0xff]  ;;  %vm1795_vm2 = vcmask 261312  }
  0x6b   :  { %v5844_v31 = vmul.f32 %v9906_v27, %v9906_v27  ;;  %v2027_v47 = vmul.f32 %v9931_v38, %v9931_v38  ;;  %v5829_v51 = vmul.f32 %v9936_v44, %v9936_v44  ;;  %v110_v56 = vrot.slane %v109_v39, 2  ;;  %v10008_v22 = vld [vmem:[%s13824_s0 + $0x2c8] sm:$0xff]  ;;  %v10013_v24 = vld [vmem:[%s13824_s0 + $0x1b8] sm:$0xff] }
  0x6c   :  { %v5879_v29 = vadd.f32 %v5878_v4, %v5843_v5  ;;  %v5845_v60 = vmul.f32 %v9945_v52, %v9945_v52  ;;  %v2019_v10 = vmul.f32 %v1987_v54, %v1987_v54  ;;  %v3950_v11 = vadd.f32 %v3949_v36, %v3919_v62  ;;  %v10022_v36 = vld [vmem:[%s13824_s0 + $0x3b8] sm:$0xff]  ;;  %v10045_v54 = vld [vmem:[%s13824_s0 + $0x2d0] sm:$0xff] }
  0x6d   :  { %v2063_v35 = vadd.f32 %v2062_v46, %v2027_v47  ;;  %v2028_v45 = vmul.f32 %v9971_v18, %v9971_v18  ;;  %v5830_v25 = vmul.f32 %v9976_v34, %v9976_v34  ;;  %v111_v4 = vadd.f32 %v110_v56, %v109_v39  ;;  %v10036_v46 = vld [vmem:[%s13824_s0 + $0x348] sm:$0xff]  ;;  %v10050_v56 = vld [vmem:[%s13824_s0 + $0x1c0] sm:$0xff] }
  0x6e   :  { %5933 = vadd.xlane.f32.xlu1 %v5808_v33  ;;  %5903 = vadd.xlane.f32.xlu0 %v5793_v28  ;;  %v5828_v28 = vmul.f32 %v9899_v21, %v9899_v21  ;;  %v9922_v33 = vld [vmem:[%s13824_s0 + $0x330] sm:$0xff]  ;;  %v5880_v57 = vadd.f32 %v5879_v29, %v5844_v31  ;;  %v2050_v50 = vadd.f32 %v2049_v40, %v2019_v10  ;;  %v10031_v40 = vld [vmem:[%s13824_s0 + $0x140] sm:$0xff]  ;;  %vm1960_vm3 = vcmask 1041409  }
  0x6f   :  { %v5846_v9 = vmul.f32 %v9983_v59, %v9983_v59  ;;  %v3938_v20 = vmul.f32 %v9999_v13, %v9999_v13  ;;  %v5831_v31 = vmul.f32 %v10013_v24, %v10013_v24  ;;  %v112_v62 = vrot.slane %v111_v4, 1 }
  0x70   :  { %v5859_v48 = vadd.f32 %v5858_v26, %v5828_v28  ;;  %v5881_v5 = vadd.f32 %v5880_v57, %v5845_v60  ;;  %v2064_v26 = vadd.f32 %v2063_v35, %v2028_v45  ;;  %v2029_v28 = vmul.f32 %v10008_v22, %v10008_v22 }
  0x71   :  { %v2030_v60 = vmul.f32 %v10045_v54, %v10045_v54  ;;  %vm1802_vm4 = vcmask 326912   ;;  %vm1809_vm5 = vcmask 392512   ;;  %vm1816_vm6 = vcmask 458112  }
  0x72   :  { %2117 = vadd.xlane.f32.xlu1 %v9769_v8  ;;  %5935 = vadd.xlane.f32.xlu0 %v5809_v37  ;;  %v3971_v8 = vadd.f32 %v3970_v12, %v3935_v14  ;;  %v3936_v37 = vmul.f32 %v9922_v33, %v9922_v33  ;;  %v5860_v55 = vadd.f32 %v5859_v48, %v5829_v51  ;;  %v9994_v12 = vld [vmem:[%s13824_s0 + $0x138] sm:$0xff]  ;;  %v2051_v14 = vrot.slane %v2050_v50, 4 }
  0x73   :  { %v2065_v57 = vadd.f32 %v2064_v26, %v2029_v28  ;;  %v10096_v28 = vld [vmem:[%s13824_s0 + $0x3c8] sm:$0xff]  ;;  %vm1823_vm7 = vcmask 523712   ;;  %vm1830_vm8 = vcmask 589312   ;;  %vm1837_vm9 = vcmask 654912  }
  0x74   :  { %v3972_v17 = vadd.f32 %v3971_v8, %v3936_v37  ;;  %v2052_v39 = vadd.f32 %v2051_v14, %v2050_v50  ;;  %v5861_v29 = vadd.f32 %v5860_v55, %v5830_v25  ;;  %v5882_v8 = vadd.f32 %v5881_v5, %v5846_v9  ;;  %v10068_v50 = vld [vmem:[%s13824_s0 + $0x148] sm:$0xff] }
  0x75   :  { %v5847_v37 = vmul.f32 %v10022_v36, %v10022_v36  ;;  %v3923_v5 = vmul.f32 %v10068_v50, %v10068_v50  ;;  %v2066_v14 = vadd.f32 %v2065_v57, %v2030_v60  ;;  %v10128_v57 = vld [vmem:[%s13824_s0 + $0x3d0] sm:$0xff]  ;;  %vm1844_vm10 = vcmask 720512  }
  0x76   :  { %4027 = vadd.xlane.f32.xlu1 %v9779_v16  ;;  %3995 = vadd.xlane.f32.xlu0 %v9805_v41  ;;  %v3920_v16 = vmul.f32 %v9957_v61, %v9957_v61  ;;  %v3937_v41 = vmul.f32 %v9962_v63, %v9962_v63  ;;  %v2053_v47 = vrot.slane %v2052_v39, 2  ;;  %v10133_v60 = vld [vmem:[%s13824_s0 + $0x1d0] sm:$0xff]  ;;  %vm1851_vm11 = vcmask 786112  }
  0x77   :  { %v5883_v35 = vadd.f32 %v5882_v8, %v5847_v37  ;;  %vm1858_vm12 = vcmask 851712   ;;  %vm1865_vm13 = vcmask 917312   ;;  %vm1872_vm14 = vcmask 982912  }
  0x78   :  { %v3951_v19 = vadd.f32 %v3950_v11, %v3920_v16  ;;  %v2054_v10 = vadd.f32 %v2053_v47, %v2052_v39  ;;  %v5862_v11 = vadd.f32 %v5861_v29, %v5831_v31  ;;  %v5832_v16 = vmul.f32 %v10050_v56, %v10050_v56  ;;  %v10105_v31 = vld [vmem:[%s13824_s0 + $0x150] sm:$0xff] }
  0x79   :  { %v5849_v29 = vmul.f32 %v10096_v28, %v10096_v28  ;;  %v3924_v37 = vmul.f32 %v10105_v31, %v10105_v31  ;;  %vm1879_vm15 = vcmask 1048512  }
  0x7a   :  { %5937 = vadd.xlane.f32.xlu1 %v9831_v58  ;;  %5905 = vadd.xlane.f32.xlu0 %v9824_v53  ;;  %v3921_v58 = vmul.f32 %v9994_v12, %v9994_v12  ;;  %v3973_v53 = vadd.f32 %v3972_v17, %v3937_v41  ;;  %v10057_v17 = vld [vmem:[%s13824_s0 + $0x3c0] sm:$0xff]  ;;  %v113_v41 = vadd.f32 %v112_v62, %v111_v4  ;;  %v2055_v55 = vrot.slane %v2054_v10, 1  ;;  %v10085_v4 = vld [vmem:[%s13824_s0 + $0x1c8] sm:$0xff] }
  0x7b   :  { %v5848_v45 = vmul.f32 %v10057_v17, %v10057_v17  ;;  %v5833_v26 = vmul.f32 %v10085_v4, %v10085_v4 }
  0x7c   :  { %v3952_v48 = vadd.f32 %v3951_v19, %v3921_v58  ;;  %v3974_v51 = vadd.f32 %v3973_v53, %v3938_v20  ;;  %v2056_v53 = vadd.f32 %v2055_v55, %v2054_v10  ;;  %v5863_v20 = vadd.f32 %v5862_v11, %v5832_v16 }
  0x7d   :  { %v5884_v39 = vadd.f32 %v5883_v35, %v5848_v45  ;;  %v5850_v11 = vmul.f32 %v10128_v57, %v10128_v57  ;;  %v5834_v16 = vmul.f32 %v10133_v60, %v10133_v60 }
  0x7e   :  { %3997 = vadd.xlane.f32.xlu1 %v9840_v1  ;;  %2119 = vadd.xlane.f32.xlu0 %v9786_v23  ;;  %v3922_v23 = vmul.f32 %v10031_v40, %v10031_v40  ;;  %v3939_v1 = vmul.f32 %v10036_v46, %v10036_v46  ;;  %v10107_v62 = vadd.f32 %v2056_v53, %v113_v41  ;;  %v10144_v41 = vld [vmem:[%s13824_s0 + $0x158] sm:$0xff] }
  0x7f   :  { %v5885_v10 = vadd.f32 %v5884_v39, %v5849_v29  ;;  %v10183_v29 = vld [vmem:[%s13824_s0 + $0x160] sm:$0xff] }
  0x80   :  { %v3953_v25 = vadd.f32 %v3952_v48, %v3922_v23  ;;  %v3975_v9 = vadd.f32 %v3974_v51, %v3939_v1  ;;  %v5864_v1 = vadd.f32 %v5863_v20, %v5833_v26  ;;  %v10176_v26 = vld [vmem:[%s13824_s0 + $0x1d8] sm:$0xff]  ;;  %13928 = vst [vmem:[#allocation10_spill] sm:$0xff] %v10183_v29 }
  0x81   :  { %v5886_v53 = vadd.f32 %v5885_v10, %v5850_v11 }
  0x82   :  { %5907 = vadd.xlane.f32.xlu1 %v9861_v42  ;;  %4029 = vadd.xlane.f32.xlu0 %v9810_v43  ;;  %v10075_v42 = vld [vmem:[%s13824_s0 + $0x350] sm:$0xff]  ;;  %v10080_v43 = vld [vmem:[%s13824_s0 + $0x2d8] sm:$0xff]  ;;  %v3954_v8 = vadd.f32 %v3953_v25, %v3923_v5  ;;  %v10160_v25 = vld [vmem:[%s13824_s0 + $0x2e8] sm:$0xff]  ;;  %v5865_v20 = vadd.f32 %v5864_v1, %v5834_v16 }
  0x83   :  { %v3940_v19 = vmul.f32 %v10075_v42, %v10075_v42  ;;  %v2031_v58 = vmul.f32 %v10080_v43, %v10080_v43  ;;  %13926 = vst [vmem:[#allocation8_spill] sm:$0xff] %v10160_v25 }
  0x84   :  { %v3955_v55 = vadd.f32 %v3954_v8, %v3924_v37  ;;  %v5835_v37 = vmul.f32 %v10176_v26, %v10176_v26 }
  0x85   :  { %v3976_v47 = vadd.f32 %v3975_v9, %v3940_v19  ;;  %v2067_v48 = vadd.f32 %v2066_v14, %v2031_v58  ;;  %v2033_v19 = vmul.f32 %v10160_v25, %v10160_v25  ;;  %v10169_v58 = vld [vmem:[%s13824_s0 + $0x3d8] sm:$0xff] }
  0x86   :  { %2121 = vadd.xlane.f32.xlu1 %v9819_v49  ;;  %5939 = vadd.xlane.f32.xlu0 %v9870_v0  ;;  %v10114_v49 = vld [vmem:[%s13824_s0 + $0x358] sm:$0xff]  ;;  %v10119_v0 = vld [vmem:[%s13824_s0 + $0x2e0] sm:$0xff]  ;;  %13927 = vst [vmem:[#allocation9_spill] sm:$0xff] %v10169_v58  ;;  %v5851_v39 = vmul.f32 %v10169_v58, %v10169_v58 }
  0x87   :  { %13924 = vst [vmem:[#allocation6_spill] sm:$0xff] %v10119_v0  ;;  %v3941_v51 = vmul.f32 %v10114_v49, %v10114_v49  ;;  %v2032_v23 = vmul.f32 %v10119_v0, %v10119_v0 }
  0x89   :  { %v3977_v5 = vadd.f32 %v3976_v47, %v3941_v51  ;;  %v2068_v9 = vadd.f32 %v2067_v48, %v2032_v23  ;;  %v3926_v47 = vmul.f32 %v10183_v29, %v10183_v29  ;;  %v10196_v48 = vld [vmem:[%s13824_s0 + $0x368] sm:$0xff]  ;;  %v10201_v51 = vld [vmem:[%s13824_s0 + $0x2f0] sm:$0xff]  ;;  %v9472_v23 = vmov 0  }
  0x8a   :  { %4031 = vadd.xlane.f32.xlu1 %v9845_v2  ;;  %3999 = vadd.xlane.f32.xlu0 %v9878_v6  ;;  %v3925_v2 = vmul.f32 %v10144_v41, %v10144_v41  ;;  %v10155_v6 = vld [vmem:[%s13824_s0 + $0x360] sm:$0xff]  ;;  %13929 = vst [vmem:[#allocation11_spill] sm:$0xff] %v10196_v48  ;;  %13930 = vst [vmem:[#allocation12_spill] sm:$0xff] %v10201_v51  ;;  %v3943_v11 = vmul.f32 %v10196_v48, %v10196_v48  ;;  %v10242_v48 = vld [vmem:[%s13824_s0 + $0x2f8] sm:$0xff] }
  0x8b   :  { %v10146_v35 = vpop.xlane.xlu1 %142  ;;  %v10148_v45 = vpop.xlane.xlu0 %138  ;;  %13925 = vst [vmem:[#allocation7_spill] sm:$0xff] %v10155_v6  ;;  %v3942_v14 = vmul.f32 %v10155_v6, %v10155_v6  ;;  %9206 = vset.pattern.permute.xlu1 %v9472_v23  ;;  %9205 = vset.pattern.permute.xlu0 %v9472_v23  ;;  %v2069_v10 = vadd.f32 %v2068_v9, %v2033_v19  ;;  %v10219_v9 = vld [vmem:[%s13824_s0 + $0x1e0] sm:$0xff]  ;;  %13935 = vst [vmem:[#allocation17_spill] sm:$0xff] %v10242_v48 }
  0x8c   :  { %v2034_v16 = vmul.f32 %v10201_v51, %v10201_v51  ;;  %13932 = vst [vmem:[#allocation14_spill] sm:$0xff] %v10219_v9  ;;  %v10237_v51 = vld [vmem:[%s13824_s0 + $0x370] sm:$0xff] }
  0x8d   :  { %v3978_v1 = vadd.f32 %v3977_v5, %v3942_v14  ;;  %v10224_v14 = vld [vmem:[%s13824_s0 + $0x168] sm:$0xff]  ;;  %13934 = vst [vmem:[#allocation16_spill] sm:$0xff] %v10237_v51 }
  0x8e   :  { %5941 = vadd.xlane.f32.xlu1 %v9906_v27  ;;  %5909 = vadd.xlane.f32.xlu0 %v9899_v21  ;;  %v3956_v21 = vadd.f32 %v3955_v55, %v3925_v2  ;;  %v10210_v55 = vld [vmem:[%s13824_s0 + $0x3e0] sm:$0xff]  ;;  %v5887_v2 = vadd.f32 %v5886_v53, %v5851_v39  ;;  %13933 = vst [vmem:[#allocation15_spill] sm:$0xff] %v10224_v14 }
  0x8f   :  { %v10185_v8 = vpop.xlane.xlu1 %144  ;;  %v10187_v27 = vpop.xlane.xlu0 %140  ;;  %13931 = vst [vmem:[#allocation13_spill] sm:$0xff] %v10210_v55  ;;  %v5852_v5 = vmul.f32 %v10210_v55, %v10210_v55  ;;  %v5836_v53 = vmul.f32 %v10219_v9, %v10219_v9  ;;  %v3927_v39 = vmul.f32 %v10224_v14, %v10224_v14  ;;  %v3979_v25 = vadd.f32 %v3978_v1, %v3943_v11 }
  0x90   :  { %v2070_v55 = vadd.f32 %v2069_v10, %v2034_v16  ;;  %v10260_v10 = vld [vmem:[%s13824_s0 + $0x170] sm:$0xff] }
  0x91   :  { %13937 = vst [vmem:[#allocation19_spill] sm:$0xff] %v10260_v10 }
  0x92   :  { %4001 = vadd.xlane.f32.xlu1 %v9917_v32  ;;  %2123 = vadd.xlane.f32.xlu0 %v9854_v30  ;;  %v5866_v32 = vadd.f32 %v5865_v20, %v5835_v37  ;;  %v3957_v30 = vadd.f32 %v3956_v21, %v3926_v47  ;;  %v3944_v20 = vmul.f32 %v10237_v51, %v10237_v51  ;;  %v10251_v37 = vld [vmem:[%s13824_s0 + $0x3e8] sm:$0xff] }
  0x93   :  { %v10226_v19 = vpop.xlane.xlu1 %148  ;;  %v10228_v23 = vpop.xlane.xlu0 %146  ;;  %v2035_v21 = vmul.f32 %v10242_v48, %v10242_v48  ;;  %13936 = vst [vmem:[#allocation18_spill] sm:$0xff] %v10251_v37  ;;  %v5888_v47 = vadd.f32 %v5887_v2, %v5852_v5  ;;  %v5853_v1 = vmul.f32 %v10251_v37, %v10251_v37  ;;  %v10276_v2 = vld [vmem:[%s13824_s0 + $0x378] sm:$0xff] }
  0x94   :  { %v5867_v48 = vadd.f32 %v5866_v32, %v5836_v53  ;;  %v3958_v51 = vadd.f32 %v3957_v30, %v3927_v39  ;;  %13939 = vst [vmem:[#allocation21_spill] sm:$0xff] %v10276_v2  ;;  %v3980_v37 = vadd.f32 %v3979_v25, %v3944_v20  ;;  %v3945_v32 = vmul.f32 %v10276_v2, %v10276_v2  ;;  %v10285_v30 = vld [vmem:[%s13824_s0 + $0x3f0] sm:$0xff]  ;;  %v10294_v25 = vld [vmem:[%s13824_s0 + $0x178] sm:$0xff] }
  0x95   :  { %v2071_v14 = vadd.f32 %v2070_v55, %v2035_v21  ;;  %13940 = vst [vmem:[#allocation22_spill] sm:$0xff] %v10285_v30  ;;  %v5889_v53 = vadd.f32 %v5888_v47, %v5853_v1  ;;  %v5854_v39 = vmul.f32 %v10285_v30, %v10285_v30  ;;  %13941 = vst [vmem:[#allocation23_spill] sm:$0xff] %v10294_v25  ;;  %v129_v55 = vrot.slane %v9708_v3, 4 }
  0x96   :  { %5911 = vadd.xlane.f32.xlu1 %v9936_v44  ;;  %4033 = vadd.xlane.f32.xlu0 %v9883_v7  ;;  %v10269_v44 = vld [vmem:[%s13824_s0 + $0x1e8] sm:$0xff]  ;;  %v3928_v7 = vmul.f32 %v10260_v10, %v10260_v10  ;;  %v3981_v10 = vadd.f32 %v3980_v37, %v3945_v32  ;;  %v10327_v32 = vld [vmem:[%s13824_s0 + $0x1f8] sm:$0xff] }
  0x97   :  { %v10262_v11 = vpop.xlane.xlu1 %152  ;;  %v10264_v16 = vpop.xlane.xlu0 %150  ;;  %13938 = vst [vmem:[#allocation20_spill] sm:$0xff] %v10269_v44  ;;  %v5837_v5 = vmul.f32 %v10269_v44, %v10269_v44  ;;  %v2072_v30 = vrot.slane %v2071_v14, 4  ;;  %v10313_v44 = vld [vmem:[%s13824_s0 + $0x3f8] sm:$0xff]  ;;  %13944 = vst [vmem:[#allocation26_spill] sm:$0xff] %v10327_v32 }
  0x98   :  { %v3959_v2 = vadd.f32 %v3958_v51, %v3928_v7  ;;  %13943 = vst [vmem:[#allocation25_spill] sm:$0xff] %v10313_v44  ;;  %v5890_v51 = vadd.f32 %v5889_v53, %v5854_v39  ;;  %v5855_v7 = vmul.f32 %v10313_v44, %v10313_v44  ;;  %v3982_v9 = vrot.slane %v3981_v10, 4 }
  0x99   :  { %v5868_v47 = vadd.f32 %v5867_v48, %v5837_v5  ;;  %v130_v48 = vadd.f32 %v129_v55, %v9708_v3 }
  0x9a   :  { %2125 = vadd.xlane.f32.xlu1 %v9892_v15  ;;  %5943 = vadd.xlane.f32.xlu0 %v9945_v52  ;;  %v10304_v15 = vld [vmem:[%s13824_s0 + $0x1f0] sm:$0xff]  ;;  %v3929_v52 = vmul.f32 %v10294_v25, %v10294_v25  ;;  %v5891_v3 = vadd.f32 %v5890_v51, %v5855_v7  ;;  %v3983_v44 = vadd.f32 %v3982_v9, %v3981_v10  ;;  %v9474_v10 = vmov 842150450  }
  0x9b   :  { %v10297_v20 = vpop.xlane.xlu1 %156  ;;  %v10299_v21 = vpop.xlane.xlu0 %154  ;;  %13942 = vst [vmem:[#allocation24_spill] sm:$0xff] %v10304_v15  ;;  %v5838_v1 = vmul.f32 %v10304_v15, %v10304_v15  ;;  %v131_v55 = vrot.slane %v130_v48, 2 }
  0x9c   :  { %v3960_v37 = vadd.f32 %v3959_v2, %v3929_v52  ;;  %v3984_v51 = vrot.slane %v3983_v44, 2 }
  0x9d   :  { %v5869_v15 = vadd.f32 %v5868_v47, %v5838_v1  ;;  %v132_v47 = vadd.f32 %v131_v55, %v130_v48  ;;  %v9475_v55 = vmov 1414812756  }
  0x9e   :  { %4035 = vadd.xlane.f32.xlu1 %v9922_v33  ;;  %4003 = vadd.xlane.f32.xlu0 %v9957_v61  ;;  %v2073_v33 = vadd.f32 %v2072_v30, %v2071_v14  ;;  %v5839_v61 = vmul.f32 %v10327_v32, %v10327_v32  ;;  %v3961_v2 = vrot.slane %v3960_v37, 4  ;;  %v5892_v14 = vrot.slane %v5891_v3, 4 }
  0x9f   :  { %v10320_v5 = vpop.xlane.xlu1 %160  ;;  %v10322_v25 = vpop.xlane.xlu0 %158  ;;  %v9473_v32 = vmov 269488144  }
  0xa0   :  { %v2074_v52 = vrot.slane %v2073_v33, 2  ;;  %v5870_v29 = vadd.f32 %v5869_v15, %v5839_v61  ;;  %v235_v6 = vunpack.c.l.s4 %v9473_v32  ;;  %v5893_v9 = vadd.f32 %v5892_v14, %v5891_v3 }
  0xa1   :  { %v9476_v32 = vmov 1987475062  }
  0xa2   :  { %5945 = vadd.xlane.f32.xlu1 %v9983_v59  ;;  %5913 = vadd.xlane.f32.xlu0 %v9976_v34  ;;  %v3962_v34 = vadd.f32 %v3961_v2, %v3960_v37  ;;  %v2075_v1 = vadd.f32 %v2074_v52, %v2073_v33  ;;  %v5871_v7 = vrot.slane %v5870_v29, 4  ;;  %v133_v37 = vrot.slane %v132_v47, 1 }
  0xa3   :  { %v10333_v53 = vpop.xlane.xlu1 %164  ;;  %v10335_v39 = vpop.xlane.xlu0 %162  ;;  %v3985_v33 = vadd.f32 %v3984_v51, %v3983_v44  ;;  %v249_v52 = vunpack.c.l.s4 %v9475_v55  ;;  %v256_v0 = vunpack.c.l.s4 %v9476_v32 }
  0xa4   :  { %v3963_v58 = vrot.slane %v3962_v34, 2  ;;  %v2076_v48 = vrot.slane %v2075_v1, 1  ;;  %v5872_v2 = vadd.f32 %v5871_v7, %v5870_v29  ;;  %v9477_v29 = vmov 1983009808  }
  0xa5   :  { %v1133_v51 = vunpack.c.l.s4 %v9477_v29  ;;  %v134_v7 = vadd.f32 %v133_v37, %v132_v47  ;;  %v3986_v32 = vrot.slane %v3985_v33, 1 }
  0xa6   :  { %4005 = vadd.xlane.f32.xlu1 %v9994_v12  ;;  %2127 = vadd.xlane.f32.xlu0 %v9931_v38  ;;  %v13855_v12 = vlaneseq  ;;  %v242_v38 = vunpack.c.l.s4 %v9474_v10  ;;  %v3964_v44 = vadd.f32 %v3963_v58, %v3962_v34  ;;  %v2077_v55 = vadd.f32 %v2076_v48, %v2075_v1 }
  0xa7   :  { %v10339_v30 = vpop.xlane.xlu1 %168  ;;  %v10341_v59 = vpop.xlane.xlu0 %166  ;;  %v1134_v34 = vunpack.c.0.s8 %v1133_v51  ;;  %v3987_v37 = vadd.f32 %v3986_v32, %v3985_v33 }
  0xa8   :  { %v10352_v3 = vshrl.u32 %v13855_v12, 7  ;;  %v243_v14 = vunpack.c.0.s8 %v242_v38  ;;  %v3965_v58 = vrot.slane %v3964_v44, 1  ;;  %v2079_v1 = vadd.f32 %v2077_v55, %v134_v7 }
  0xaa   :  { %5915 = vadd.xlane.f32.xlu1 %v10013_v24  ;;  %4037 = vadd.xlane.f32.xlu0 %v9962_v63  ;;  %v236_v24 = vunpack.c.0.s8 %v235_v6  ;;  %v5894_v63 = vrot.slane %v5893_v9, 2  ;;  %13947 = vst [vmem:[#allocation29_spill] sm:$0xff] %v10352_v3  ;;  %v5873_v6 = vrot.slane %v5872_v2, 2  ;;  %v10368_v47 = vsub.s32 %v243_v14, %v10352_v3 }
  0xab   :  { %v10345_v15 = vpop.xlane.xlu1 %172  ;;  %v10347_v61 = vpop.xlane.xlu0 %170 }
  0xac   :  { %13945 = vst [vmem:[#allocation27_spill] sm:$0xff] %v10345_v15  ;;  %13946 = vst [vmem:[#allocation28_spill] sm:$0xff] %v10347_v61  ;;  %v250_v15 = vunpack.c.0.s8 %v249_v52  ;;  %v10361_v38 = vsub.s32 %v236_v24, %v10352_v3  ;;  %v3966_v24 = vadd.f32 %v3965_v58, %v3964_v44  ;;  %v303_v33 = vrot.slane %v10146_v35, %v10368_v47 }
  0xad   :  { %13950 = vst [vmem:[#allocation32_spill] sm:$0xff] %v10368_v47  ;;  %v247_v29 = vrot.slane %v10148_v45, %v10368_v47  ;;  %v275_v32 = vrot.slane %v10187_v27, %v10368_v47 }
  0xae   :  { %2129 = vadd.xlane.f32.xlu1 %v9971_v18  ;;  %5947 = vadd.xlane.f32.xlu0 %v10022_v36  ;;  %v257_v18 = vunpack.c.0.s8 %v256_v0  ;;  %v5895_v36 = vadd.f32 %v5894_v63, %v5893_v9  ;;  %13949 = vst [vmem:[#allocation31_spill] sm:$0xff] %v10361_v38  ;;  %v5874_v0 = vadd.f32 %v5873_v6, %v5872_v2 }
  0xaf   :  { %v10354_v10 = vpop.xlane.xlu1 %176  ;;  %v10356_v61 = vpop.xlane.xlu0 %174  ;;  %v10383_v63 = vsub.s32 %v1134_v34, %v10352_v3  ;;  %v3989_v2 = vadd.f32 %v3987_v37, %v2079_v1  ;;  %v240_v44 = vrot.slane %v10148_v45, %v10361_v38 }
  0xb0   :  { %13948 = vst [vmem:[#allocation30_spill] sm:$0xff] %v10356_v61  ;;  %v5896_v9 = vrot.slane %v5895_v36, 1  ;;  %v5875_v14 = vrot.slane %v5874_v0, 1 }
  0xb2   :  { %4039 = vadd.xlane.f32.xlu1 %v9999_v13  ;;  %4007 = vadd.xlane.f32.xlu0 %v10031_v40  ;;  %v10371_v13 = vsub.s32 %v250_v15, %v10352_v3  ;;  %v10374_v40 = vsub.s32 %v257_v18, %v10352_v3  ;;  %v296_v15 = vrot.slane %v10146_v35, %v10361_v38 }
  0xb3   :  { %v10363_v12 = vpop.xlane.xlu1 %180  ;;  %v10365_v61 = vpop.xlane.xlu0 %178  ;;  %v5897_v55 = vadd.f32 %v5896_v9, %v5895_v36  ;;  %v5876_v9 = vadd.f32 %v5875_v14, %v5874_v0  ;;  %v10428_v3 = vcombine.low %v240_v44, %v247_v29 }
  0xb4   :  { %13951 = vst [vmem:[#allocation33_spill] sm:$0xff] %v10371_v13  ;;  %13952 = vst [vmem:[#allocation34_spill] sm:$0xff] %v10374_v40  ;;  %v254_v51 = vrot.slane %v10148_v45, %v10371_v13  ;;  %v261_v7 = vrot.slane %v10148_v45, %v10374_v40  ;;  %v282_v6 = vrot.slane %v10187_v27, %v10371_v13 }
  0xb5   :  { %v289_v18 = vrot.slane %v10187_v27, %v10374_v40  ;;  %v338_v36 = vrot.slane %v10185_v8, %v10371_v13  ;;  %v345_v34 = vrot.slane %v10185_v8, %v10374_v40  ;;  %v10423_v1 = vcombine.low %v296_v15, %v303_v33 }
  0xb6   :  { %5949 = vadd.xlane.f32.xlu1 %v10057_v17  ;;  %5917 = vadd.xlane.f32.xlu0 %v10050_v56  ;;  %v310_v56 = vrot.slane %v10146_v35, %v10371_v13  ;;  %v317_v17 = vrot.slane %v10146_v35, %v10374_v40  ;;  %v268_v35 = vrot.slane %v10187_v27, %v10361_v38 }
  0xb7   :  { %v10378_v48 = vpop.xlane.xlu1 %184  ;;  %v10380_v52 = vpop.xlane.xlu0 %182  ;;  %v3988_v27 = vadd.f32 %v3966_v24, %v10107_v62  ;;  %v401_v15 = vrot.slane %v10226_v19, %v10374_v40  ;;  %v1148_v0 = vcombine.low %v282_v6, %v289_v18  ;;  %v1172_v29 = vrot.slane %v10423_v1, %v10383_v63 }
  0xb8   :  { %v10425_v37 = vcombine.low %v310_v56, %v317_v17  ;;  %v1147_v62 = vcombine.low %v268_v35, %v275_v32  ;;  %v10446_v56 = vcombine.low %v338_v36, %v345_v34  ;;  %v10448_v17 = vcombine.low %v254_v51, %v261_v7 }
  0xb9   :  { %v10456_v44 = vadd.f32 %v5876_v9, %v3988_v27  ;;  %v366_v32 = vrot.slane %v10228_v23, %v10371_v13  ;;  %v436_v7 = vrot.slane %v10262_v11, %v10361_v38  ;;  %v422_v36 = vrot.slane %v10264_v16, %v10371_v13 }
  0xba   :  { %4009 = vadd.xlane.f32.xlu1 %v10068_v50  ;;  %2131 = vadd.xlane.f32.xlu0 %v10008_v22  ;;  %v324_v22 = vrot.slane %v10185_v8, %v10361_v38  ;;  %v331_v50 = vrot.slane %v10185_v8, %v10368_v47  ;;  %v394_v8 = vrot.slane %v10226_v19, %v10371_v13 }
  0xbb   :  { %v10411_v58 = vpop.xlane.xlu1 %188  ;;  %v10413_v45 = vpop.xlane.xlu0 %186  ;;  %13956 = vst [vmem:[#allocation38_spill] sm:$0xff] %v10456_v44  ;;  %v1155_v18 = vrot.slane %v1147_v62, %v10383_v63  ;;  %v429_v34 = vrot.slane %v10264_v16, %v10374_v40  ;;  %v499_v1 = vrot.slane %v10297_v20, %v10368_v47  ;;  %v513_v27 = vrot.slane %v10297_v20, %v10374_v40 }
  0xbc   :  { %13953 = vst [vmem:[#allocation35_spill] sm:$0xff] %v10411_v58  ;;  %13954 = vst [vmem:[#allocation36_spill] sm:$0xff] %v10413_v45  ;;  %v380_v45 = vrot.slane %v10226_v19, %v10361_v38  ;;  %v387_v58 = vrot.slane %v10226_v19, %v10368_v47  ;;  %v10444_v14 = vcombine.low %v324_v22, %v331_v50 }
  0xbd   :  { %v359_v19 = vrot.slane %v10228_v23, %v10368_v47  ;;  %v10468_v51 = vcombine.low %v394_v8, %v401_v15  ;;  %v492_v22 = vrot.slane %v10297_v20, %v10361_v38  ;;  %v415_v50 = vrot.slane %v10264_v16, %v10368_v47 }
  0xbe   :  { %5919 = vadd.xlane.f32.xlu1 %v10085_v4  ;;  %4041 = vadd.xlane.f32.xlu0 %v10036_v46  ;;  %v10450_v4 = vadd.f32 %v5897_v55, %v3989_v2  ;;  %v352_v46 = vrot.slane %v10228_v23, %v10361_v38  ;;  %v10460_v35 = vcombine.low %v380_v45, %v387_v58 }
  0xbf   :  { %v10440_v24 = vpop.xlane.xlu1 %192  ;;  %v10442_v33 = vpop.xlane.xlu0 %190  ;;  %v373_v2 = vrot.slane %v10228_v23, %v10374_v40  ;;  %v1162_v58 = vrot.slane %v1148_v0, %v10383_v63  ;;  %v443_v23 = vrot.slane %v10262_v11, %v10368_v47  ;;  %v408_v45 = vrot.slane %v10264_v16, %v10361_v38 }
  0xc0   :  { %13955 = vst [vmem:[#allocation37_spill] sm:$0xff] %v10450_v4  ;;  %v10502_v9 = vcombine.low %v352_v46, %v359_v19  ;;  %v464_v8 = vrot.slane %v10299_v21, %v10361_v38  ;;  %v471_v16 = vrot.slane %v10299_v21, %v10368_v47  ;;  %v1179_v0 = vrot.slane %v10425_v37, %v10383_v63 }
  0xc1   :  { %v10520_v46 = vcombine.low %v1155_v18, %v1162_v58  ;;  %v10522_v19 = vcombine.low %v408_v45, %v415_v50  ;;  %v10524_v44 = vcombine.low %v422_v36, %v429_v34  ;;  %v478_v4 = vrot.slane %v10299_v21, %v10371_v13 }
  0xc2   :  { %2133 = vadd.xlane.f32.xlu1 %v10045_v54  ;;  %5951 = vadd.xlane.f32.xlu0 %v10096_v28  ;;  %v450_v54 = vrot.slane %v10262_v11, %v10371_v13  ;;  %v457_v28 = vrot.slane %v10262_v11, %v10374_v40  ;;  %v506_v11 = vrot.slane %v10297_v20, %v10371_v13 }
  0xc3   :  { %v10472_v55 = vpop.xlane.xlu1 %196  ;;  %v10474_v6 = vpop.xlane.xlu0 %194  ;;  %v10514_v20 = vcombine.low %v436_v7, %v443_v23  ;;  %13959 = vst [vmem:[#allocation41_spill] sm:$0xff] %v10520_v46  ;;  %v10540_v7 = vcombine.low %v464_v8, %v471_v16  ;;  %v1145_v23 = vrot.slane %v10448_v17, %v10383_v63  ;;  %v534_v17 = vrot.slane %v10322_v25, %v10371_v13 }
  0xc4   :  { %v10532_v37 = vcombine.low %v506_v11, %v513_v27  ;;  %v541_v45 = vrot.slane %v10322_v25, %v10374_v40  ;;  %v625_v50 = vrot.slane %v10333_v53, %v10374_v40  ;;  %v576_v36 = vrot.slane %v10335_v39, %v10361_v38 }
  0xc5   :  { %v583_v34 = vrot.slane %v10335_v39, %v10368_v47  ;;  %v1189_v11 = vrot.slane %v10444_v14, %v10383_v63 }
  0xc6   :  { %4043 = vadd.xlane.f32.xlu1 %v10075_v42  ;;  %4011 = vadd.xlane.f32.xlu0 %v10105_v31  ;;  %v10516_v42 = vcombine.low %v450_v54, %v457_v28  ;;  %v10518_v31 = vcombine.low %v366_v32, %v373_v2  ;;  %v485_v32 = vrot.slane %v10299_v21, %v10374_v40 }
  0xc7   :  { %v10508_v15 = vpop.xlane.xlu1 %200  ;;  %v10510_v62 = vpop.xlane.xlu0 %198  ;;  %v548_v2 = vrot.slane %v10320_v5, %v10361_v38  ;;  %v555_v21 = vrot.slane %v10320_v5, %v10368_v47  ;;  %v520_v54 = vrot.slane %v10322_v25, %v10361_v38  ;;  %v604_v28 = vrot.slane %v10333_v53, %v10361_v38 }
  0xc8   :  { %13957 = vst [vmem:[#allocation39_spill] sm:$0xff] %v10508_v15  ;;  %13958 = vst [vmem:[#allocation40_spill] sm:$0xff] %v10510_v62  ;;  %v1138_v62 = vrot.slane %v10428_v3, %v10383_v63  ;;  %v10530_v15 = vcombine.low %v492_v22, %v499_v1  ;;  %v10546_v3 = vcombine.low %v1172_v29, %v1179_v0 }
  0xc9   :  { %v527_v29 = vrot.slane %v10322_v25, %v10368_v47  ;;  %v611_v22 = vrot.slane %v10333_v53, %v10368_v47  ;;  %v10586_v27 = vcombine.low %v548_v2, %v555_v21  ;;  %v10596_v0 = vcombine.low %v534_v17, %v541_v45 }
  0xca   :  { %5953 = vadd.xlane.f32.xlu1 %v10128_v57  ;;  %5921 = vadd.xlane.f32.xlu0 %v10133_v60  ;;  %13960 = vst [vmem:[#allocation42_spill] sm:$0xff] %v10546_v3  ;;  %v562_v57 = vrot.slane %v10320_v5, %v10371_v13  ;;  %v569_v60 = vrot.slane %v10320_v5, %v10374_v40 }
  0xcb   :  { %v10542_v18 = vpop.xlane.xlu1 %2081  ;;  %v10544_v58 = vpop.xlane.xlu0 %2083  ;;  %v618_v5 = vrot.slane %v10333_v53, %v10371_v13  ;;  %v1196_v53 = vrot.slane %v10446_v56, %v10383_v63  ;;  %v10592_v8 = vcombine.low %v1138_v62, %v1145_v23  ;;  %v10594_v16 = vcombine.low %v520_v54, %v527_v29 }
  0xcc   :  { %v590_v3 = vrot.slane %v10335_v39, %v10371_v13  ;;  %v1291_v14 = vrot.slane %v10530_v15, %v10383_v63  ;;  %v10602_v46 = vcombine.low %v604_v28, %v611_v22  ;;  %v660_v62 = vrot.slane %v10339_v30, %v10361_v38  ;;  %v13966_v22 = vld [vmem:[#allocation6_spill] sm:$0xff] }
  0xcd   :  { %13961 = vst [vmem:[#allocation43_spill] sm:$0xff] %v10592_v8  ;;  %v10604_v56 = vcombine.low %v618_v5, %v625_v50  ;;  %v10618_v15 = vcombine.low %v1189_v11, %v1196_v53  ;;  %v1298_v21 = vrot.slane %v10532_v37, %v10383_v63  ;;  %v639_v28 = vrot.slane %v10341_v59, %v10368_v47  ;;  %v13967_v5 = vld [vmem:[#allocation9_spill] sm:$0xff]  ;;  %v13968_v50 = vld [vmem:[#allocation28_spill] sm:$0xff] }
  0xce   :  { %4013 = vadd.xlane.f32.xlu1 %v10144_v41  ;;  %2135 = vadd.xlane.f32.xlu0 %v10080_v43  ;;  %v10588_v41 = vcombine.low %v562_v57, %v569_v60  ;;  %v10590_v43 = vcombine.low %v478_v4, %v485_v32  ;;  %v597_v4 = vrot.slane %v10335_v39, %v10374_v40  ;;  %v13965_v60 = vld [vmem:[#allocation27_spill] sm:$0xff] }
  0xcf   :  { %v10578_v25 = vpop.xlane.xlu1 %2087  ;;  %v10580_v1 = vpop.xlane.xlu0 %2085  ;;  %v10612_v32 = vcombine.low %v576_v36, %v583_v34  ;;  %13964 = vst [vmem:[#allocation46_spill] sm:$0xff] %v10618_v15  ;;  %v667_v39 = vrot.slane %v10339_v30, %v10368_v47  ;;  %v632_v57 = vrot.slane %v10341_v59, %v10361_v38  ;;  %v716_v54 = vrot.slane %v13965_v60, %v10361_v38 }
  0xd0   :  { %v646_v37 = vrot.slane %v10341_v59, %v10371_v13  ;;  %v653_v29 = vrot.slane %v10341_v59, %v10374_v40  ;;  %v723_v17 = vrot.slane %v13965_v60, %v10368_v47  ;;  %v737_v45 = vrot.slane %v13965_v60, %v10374_v40 }
  0xd1   :  { %13962 = vst [vmem:[#allocation44_spill] sm:$0xff] %v10612_v32  ;;  %v688_v36 = vrot.slane %v13968_v50, %v10361_v38  ;;  %v695_v34 = vrot.slane %v13968_v50, %v10368_v47  ;;  %v1206_v53 = vrot.slane %v10502_v9, %v10383_v63  ;;  %v10658_v15 = vcombine.low %v660_v62, %v667_v39 }
  0xd2   :  { %5923 = vadd.xlane.f32.xlu1 %v10176_v26  ;;  %4045 = vadd.xlane.f32.xlu0 %v10114_v49  ;;  %v674_v49 = vrot.slane %v10339_v30, %v10371_v13  ;;  %v681_v26 = vrot.slane %v10339_v30, %v10374_v40  ;;  %v730_v30 = vrot.slane %v13965_v60, %v10371_v13 }
  0xd3   :  { %v10614_v2 = vpop.xlane.xlu1 %2091  ;;  %v10616_v23 = vpop.xlane.xlu0 %2089  ;;  %v1213_v60 = vrot.slane %v10518_v31, %v10383_v63  ;;  %v10664_v8 = vcombine.low %v1291_v14, %v1298_v21  ;;  %v10666_v32 = vcombine.low %v632_v57, %v639_v28  ;;  %v1325_v9 = vrot.slane %v10586_v27, %v10383_v63  ;;  %v13975_v14 = vld [vmem:[#allocation10_spill] sm:$0xff] }
  0xd4   :  { %13963 = vst [vmem:[#allocation45_spill] sm:$0xff] %v10616_v23  ;;  %v10668_v23 = vcombine.low %v646_v37, %v653_v29  ;;  %v10676_v31 = vcombine.low %v730_v30, %v737_v45  ;;  %v772_v62 = vrot.slane %v10354_v10, %v10361_v38  ;;  %v10684_v21 = vcombine.low %v688_v36, %v695_v34  ;;  %v13978_v37 = vld [vmem:[#allocation30_spill] sm:$0xff]  ;;  %v13979_v34 = vld [vmem:[#allocation13_spill] sm:$0xff] }
  0xd5   :  { %13971 = vst [vmem:[#allocation9_spill] sm:$0xff] %v10664_v8  ;;  %13972 = vst [vmem:[#allocation28_spill] sm:$0xff] %v10666_v32  ;;  %v10690_v27 = vcombine.low %v1206_v53, %v1213_v60  ;;  %v779_v57 = vrot.slane %v10354_v10, %v10368_v47  ;;  %v793_v28 = vrot.slane %v10354_v10, %v10374_v40  ;;  %v13980_v53 = vld [vmem:[#allocation14_spill] sm:$0xff] }
  0xd6   :  { %2137 = vadd.xlane.f32.xlu1 %v13966_v22  ;;  %5955 = vadd.xlane.f32.xlu0 %v13967_v5  ;;  %v10660_v22 = vcombine.low %v674_v49, %v681_v26  ;;  %v10662_v5 = vcombine.low %v590_v3, %v597_v4  ;;  %13973 = vst [vmem:[#allocation47_spill] sm:$0xff] %v10668_v23  ;;  %v13974_v4 = vld [vmem:[#allocation7_spill] sm:$0xff] }
  0xd7   :  { %v10650_v59 = vpop.xlane.xlu1 %2095  ;;  %v10652_v11 = vpop.xlane.xlu0 %2093  ;;  %v709_v3 = vrot.slane %v13968_v50, %v10374_v40  ;;  %13976 = vst [vmem:[#allocation7_spill] sm:$0xff] %v10684_v21  ;;  %13977 = vst [vmem:[#allocation10_spill] sm:$0xff] %v10690_v27  ;;  %v1332_v26 = vrot.slane %v10588_v41, %v10383_v63  ;;  %v744_v29 = vrot.slane %v13978_v37, %v10361_v38 }
  0xd8   :  { %13969 = vst [vmem:[#allocation27_spill] sm:$0xff] %v10650_v59  ;;  %13970 = vst [vmem:[#allocation6_spill] sm:$0xff] %v10652_v11  ;;  %v702_v11 = vrot.slane %v13968_v50, %v10371_v13  ;;  %v10674_v59 = vcombine.low %v716_v54, %v723_v17  ;;  %v786_v54 = vrot.slane %v10354_v10, %v10371_v13 }
  0xd9   :  { %v828_v17 = vrot.slane %v10363_v12, %v10361_v38  ;;  %v751_v30 = vrot.slane %v13978_v37, %v10368_v47  ;;  %v758_v41 = vrot.slane %v13978_v37, %v10371_v13  ;;  %v765_v45 = vrot.slane %v13978_v37, %v10374_v40 }
  0xda   :  { %4047 = vadd.xlane.f32.xlu1 %v13974_v4  ;;  %4015 = vadd.xlane.f32.xlu0 %v13975_v14  ;;  %v835_v50 = vrot.slane %v10363_v12, %v10368_v47  ;;  %v842_v10 = vrot.slane %v10363_v12, %v10371_v13  ;;  %v849_v36 = vrot.slane %v10363_v12, %v10374_v40 }
  0xdb   :  { %v10686_v39 = vpop.xlane.xlu1 %2099  ;;  %v10688_v49 = vpop.xlane.xlu0 %2097  ;;  %v800_v60 = vrot.slane %v10365_v61, %v10361_v38  ;;  %v807_v4 = vrot.slane %v10365_v61, %v10368_v47  ;;  %v1223_v27 = vrot.slane %v10460_v35, %v10383_v63  ;;  %v1230_v12 = vrot.slane %v10468_v51, %v10383_v63 }
  0xdc   :  { %v10730_v8 = vcombine.low %v772_v62, %v779_v57  ;;  %v10736_v21 = vcombine.low %v1325_v9, %v1332_v26  ;;  %v10738_v23 = vcombine.low %v744_v29, %v751_v30  ;;  %v10740_v32 = vcombine.low %v758_v41, %v765_v45  ;;  %v13988_v9 = vld [vmem:[#allocation8_spill] sm:$0xff]  ;;  %v13991_v45 = vld [vmem:[#allocation35_spill] sm:$0xff] }
  0xdd   :  { %v1359_v35 = vrot.slane %v10602_v46, %v10383_v63  ;;  %v10748_v51 = vcombine.low %v842_v10, %v849_v36  ;;  %v10754_v62 = vcombine.low %v800_v60, %v807_v4  ;;  %v1366_v46 = vrot.slane %v10604_v56, %v10383_v63  ;;  %v13992_v36 = vld [vmem:[#allocation20_spill] sm:$0xff] }
  0xde   :  { %5957 = vadd.xlane.f32.xlu1 %v13979_v34  ;;  %5925 = vadd.xlane.f32.xlu0 %v13980_v53  ;;  %v10732_v34 = vcombine.low %v786_v54, %v793_v28  ;;  %v10734_v53 = vcombine.low %v702_v11, %v709_v3  ;;  %13984 = vst [vmem:[#allocation48_spill] sm:$0xff] %v10736_v21  ;;  %13985 = vst [vmem:[#allocation49_spill] sm:$0xff] %v10738_v23  ;;  %v13987_v3 = vld [vmem:[#allocation15_spill] sm:$0xff] }
  0xdf   :  { %v10722_v14 = vpop.xlane.xlu1 %2103  ;;  %v10724_v37 = vpop.xlane.xlu0 %2101  ;;  %13986 = vst [vmem:[#allocation50_spill] sm:$0xff] %v10740_v32  ;;  %v821_v11 = vrot.slane %v10365_v61, %v10374_v40  ;;  %13989 = vst [vmem:[#allocation15_spill] sm:$0xff] %v10754_v62  ;;  %v10760_v54 = vcombine.low %v1223_v27, %v1230_v12  ;;  %v1240_v28 = vrot.slane %v10522_v19, %v10383_v63 }
  0xe0   :  { %13981 = vst [vmem:[#allocation30_spill] sm:$0xff] %v10722_v14  ;;  %13982 = vst [vmem:[#allocation13_spill] sm:$0xff] %v10724_v37  ;;  %v814_v37 = vrot.slane %v10365_v61, %v10371_v13  ;;  %v10746_v14 = vcombine.low %v828_v17, %v835_v50  ;;  %v884_v61 = vrot.slane %v10378_v48, %v10361_v38 }
  0xe1   :  { %13983 = vst [vmem:[#allocation14_spill] sm:$0xff] %v10734_v53  ;;  %13990 = vst [vmem:[#allocation8_spill] sm:$0xff] %v10760_v54  ;;  %v891_v29 = vrot.slane %v10378_v48, %v10368_v47  ;;  %v898_v17 = vrot.slane %v10378_v48, %v10371_v13  ;;  %v905_v30 = vrot.slane %v10378_v48, %v10374_v40  ;;  %v13993_v48 = vld [vmem:[#allocation11_spill] sm:$0xff] }
  0xe2   :  { %4017 = vadd.xlane.f32.xlu1 %v13987_v3  ;;  %2139 = vadd.xlane.f32.xlu0 %v13988_v9  ;;  %v856_v27 = vrot.slane %v10380_v52, %v10361_v38  ;;  %v863_v56 = vrot.slane %v10380_v52, %v10368_v47  ;;  %v870_v19 = vrot.slane %v10380_v52, %v10371_v13 }
  0xe3   :  { %v10756_v26 = vpop.xlane.xlu1 %2107  ;;  %v10758_v57 = vpop.xlane.xlu0 %2105  ;;  %v877_v41 = vrot.slane %v10380_v52, %v10374_v40  ;;  %v940_v50 = vrot.slane %v13991_v45, %v10361_v38  ;;  %v947_v10 = vrot.slane %v13991_v45, %v10368_v47  ;;  %v1247_v60 = vrot.slane %v10524_v44, %v10383_v63  ;;  %v13994_v52 = vld [vmem:[#allocation36_spill] sm:$0xff] }
  0xe4   :  { %v954_v4 = vrot.slane %v13991_v45, %v10371_v13  ;;  %v961_v12 = vrot.slane %v13991_v45, %v10374_v40  ;;  %v912_v3 = vrot.slane %v13994_v52, %v10361_v38  ;;  %v919_v9 = vrot.slane %v13994_v52, %v10368_v47 }
  0xe5   :  { %v10804_v54 = vcombine.low %v814_v37, %v821_v11  ;;  %v926_v44 = vrot.slane %v13994_v52, %v10371_v13  ;;  %v933_v45 = vrot.slane %v13994_v52, %v10374_v40  ;;  %v10810_v32 = vcombine.low %v898_v17, %v905_v30  ;;  %v13999_v11 = vld [vmem:[#allocation12_spill] sm:$0xff] }
  0xe6   :  { %5927 = vadd.xlane.f32.xlu1 %v13992_v36  ;;  %4049 = vadd.xlane.f32.xlu0 %v13993_v48  ;;  %v10802_v48 = vcombine.low %v884_v61, %v891_v29  ;;  %v10812_v21 = vcombine.low %v856_v27, %v863_v56  ;;  %v10814_v23 = vcombine.low %v870_v19, %v877_v41  ;;  %v14000_v29 = vld [vmem:[#allocation18_spill] sm:$0xff] }
  0xe7   :  { %v10798_v62 = vpop.xlane.xlu1 %2113  ;;  %v10800_v36 = vpop.xlane.xlu0 %2109  ;;  %13995 = vst [vmem:[#allocation35_spill] sm:$0xff] %v10804_v54  ;;  %v10816_v53 = vcombine.low %v1359_v35, %v1366_v46  ;;  %v996_v61 = vrot.slane %v10440_v24, %v10361_v38  ;;  %v1003_v37 = vrot.slane %v10440_v24, %v10368_v47  ;;  %v1393_v17 = vrot.slane %v10658_v15, %v10383_v63 }
  0xe8   :  { %13996 = vst [vmem:[#allocation20_spill] sm:$0xff] %v10812_v21  ;;  %13997 = vst [vmem:[#allocation11_spill] sm:$0xff] %v10814_v23  ;;  %v10826_v30 = vcombine.low %v940_v50, %v947_v10  ;;  %v10828_v27 = vcombine.low %v954_v4, %v961_v12  ;;  %v10830_v56 = vcombine.low %v912_v3, %v919_v9  ;;  %v14004_v3 = vld [vmem:[#allocation16_spill] sm:$0xff] }
  0xe9   :  { %13998 = vst [vmem:[#allocation36_spill] sm:$0xff] %v10816_v53  ;;  %v10836_v19 = vcombine.low %v1240_v28, %v1247_v60  ;;  %v1010_v41 = vrot.slane %v10440_v24, %v10371_v13  ;;  %v10840_v52 = vcombine.low %v926_v44, %v933_v45  ;;  %v1400_v15 = vrot.slane %v10660_v22, %v10383_v63  ;;  %v14009_v53 = vld [vmem:[#allocation22_spill] sm:$0xff] }
  0xea   :  { %2141 = vadd.xlane.f32.xlu1 %v13999_v11  ;;  %5959 = vadd.xlane.f32.xlu0 %v14000_v29  ;;  %14001 = vst [vmem:[#allocation12_spill] sm:$0xff] %v10830_v56  ;;  %v1257_v50 = vrot.slane %v10514_v20, %v10383_v63  ;;  %v1017_v10 = vrot.slane %v10440_v24, %v10374_v40  ;;  %v14005_v20 = vld [vmem:[#allocation19_spill] sm:$0xff] }
  0xeb   :  { %v10832_v35 = vpop.xlane.xlu1 %3991  ;;  %v10834_v46 = vpop.xlane.xlu0 %2115  ;;  %14002 = vst [vmem:[#allocation18_spill] sm:$0xff] %v10836_v19  ;;  %14003 = vst [vmem:[#allocation51_spill] sm:$0xff] %v10840_v52  ;;  %v968_v4 = vrot.slane %v10442_v33, %v10361_v38  ;;  %v975_v28 = vrot.slane %v10442_v33, %v10368_v47  ;;  %v982_v60 = vrot.slane %v10442_v33, %v10371_v13 }
  0xec   :  { %v10854_v12 = vcombine.low %v996_v61, %v1003_v37  ;;  %v989_v22 = vrot.slane %v10442_v33, %v10374_v40  ;;  %v1264_v24 = vrot.slane %v10516_v42, %v10383_v63  ;;  %v1052_v9 = vrot.slane %v10472_v55, %v10361_v38 }
  0xed   :  { %v1059_v44 = vrot.slane %v10472_v55, %v10368_v47  ;;  %v1066_v45 = vrot.slane %v10472_v55, %v10371_v13  ;;  %v1073_v61 = vrot.slane %v10472_v55, %v10374_v40  ;;  %v1024_v11 = vrot.slane %v10474_v6, %v10361_v38  ;;  %v14007_v55 = vld [vmem:[#allocation39_spill] sm:$0xff] }
  0xee   :  { %4051 = vadd.xlane.f32.xlu1 %v14004_v3  ;;  %4019 = vadd.xlane.f32.xlu0 %v14005_v20  ;;  %v1031_v42 = vrot.slane %v10474_v6, %v10368_v47  ;;  %v1038_v29 = vrot.slane %v10474_v6, %v10371_v13  ;;  %v1045_v3 = vrot.slane %v10474_v6, %v10374_v40  ;;  %v14010_v6 = vld [vmem:[#allocation24_spill] sm:$0xff] }
  0xef   :  { %v10870_v33 = vpop.xlane.xlu1 %4023  ;;  %v10872_v37 = vpop.xlane.xlu0 %3993  ;;  %v10882_v20 = vcombine.low %v1010_v41, %v1017_v10  ;;  %v10884_v52 = vcombine.low %v968_v4, %v975_v28  ;;  %v1108_v56 = vrot.slane %v14007_v55, %v10361_v38  ;;  %v10888_v23 = vcombine.low %v1393_v17, %v1400_v15 }
  0xf0   :  { %v1115_v21 = vrot.slane %v14007_v55, %v10368_v47  ;;  %v1122_v54 = vrot.slane %v14007_v55, %v10371_v13  ;;  %v1129_v19 = vrot.slane %v14007_v55, %v10374_v40  ;;  %v10898_v41 = vcombine.low %v1052_v9, %v1059_v44  ;;  %v14019_v44 = vld [vmem:[#allocation40_spill] sm:$0xff] }
  0xf1   :  { %14006 = vst [vmem:[#allocation16_spill] sm:$0xff] %v10884_v52  ;;  %14008 = vst [vmem:[#allocation19_spill] sm:$0xff] %v10888_v23  ;;  %v10900_v10 = vcombine.low %v1066_v45, %v1073_v61  ;;  %v10902_v4 = vcombine.low %v982_v60, %v989_v22  ;;  %v1427_v28 = vrot.slane %v10674_v59, %v10383_v63 }
  0xf2   :  { %5961 = vadd.xlane.f32.xlu1 %v14009_v53  ;;  %5929 = vadd.xlane.f32.xlu0 %v14010_v6  ;;  %14011 = vst [vmem:[#allocation39_spill] sm:$0xff] %v10898_v41  ;;  %v10910_v52 = vcombine.low %v1024_v11, %v1031_v42  ;;  %v10912_v55 = vcombine.low %v1038_v29, %v1045_v3 }
  0xf3   :  { %14012 = vst [vmem:[#allocation22_spill] sm:$0xff] %v10900_v10  ;;  %14013 = vst [vmem:[#allocation24_spill] sm:$0xff] %v10902_v4  ;;  %v10904_v17 = vpop.xlane.xlu1 %5901  ;;  %v10906_v15 = vpop.xlane.xlu0 %4025  ;;  %v10914_v53 = vcombine.low %v1257_v50, %v1264_v24  ;;  %v1434_v9 = vrot.slane %v10676_v31, %v10383_v63  ;;  %v1080_v60 = vrot.slane %v14019_v44, %v10361_v38  ;;  %v14022_v31 = vld [vmem:[#allocation17_spill] sm:$0xff]  ;;  %v9449_v24 = vld [vmem:[%s13824_s0 + $0xf8] sm:$0xff] }
  0xf4   :  { %14014 = vst [vmem:[#allocation52_spill] sm:$0xff] %v10904_v17  ;;  %14015 = vst [vmem:[#allocation53_spill] sm:$0xff] %v10906_v15  ;;  %v1087_v22 = vrot.slane %v14019_v44, %v10368_v47  ;;  %v1094_v45 = vrot.slane %v14019_v44, %v10371_v13  ;;  %v1274_v59 = vrot.slane %v10540_v7, %v10383_v63  ;;  %v14025_v4 = vld [vmem:[#allocation21_spill] sm:$0xff] }
  0xf5   :  { %14016 = vst [vmem:[#allocation54_spill] sm:$0xff] %v10910_v52  ;;  %14017 = vst [vmem:[#allocation55_spill] sm:$0xff] %v10912_v55  ;;  %v10926_v61 = vcombine.low %v1108_v56, %v1115_v21  ;;  %v10928_v11 = vcombine.low %v1122_v54, %v1129_v19  ;;  %v1101_v50 = vrot.slane %v14019_v44, %v10374_v40 }
  0xf6   :  { %14018 = vst [vmem:[#allocation56_spill] sm:$0xff] %v10914_v53  ;;  %2143 = vadd.xlane.f32.xlu1 %v14022_v31  ;;  %2111 = vadd.xlane.f32.xlu0 %v9449_v24  ;;  %v2183_v42 = vrot.slane %v10542_v18, %v10361_v38  ;;  %v2190_v7 = vrot.slane %v10542_v18, %v10368_v47  ;;  %v14027_v53 = vld [vmem:[#allocation37_spill] sm:$0xff] }
  0xf7   :  { %14020 = vst [vmem:[#allocation40_spill] sm:$0xff] %v10926_v61  ;;  %14021 = vst [vmem:[#allocation57_spill] sm:$0xff] %v10928_v11  ;;  %v10940_v21 = vpop.xlane.xlu1 %5933  ;;  %v10942_v54 = vpop.xlane.xlu0 %5903  ;;  %v1281_v56 = vrot.slane %v10590_v43, %v10383_v63  ;;  %v1461_v19 = vrot.slane %v10730_v8, %v10383_v63  ;;  %v2197_v29 = vrot.slane %v10542_v18, %v10371_v13  ;;  %v14026_v11 = vld [vmem:[#allocation23_spill] sm:$0xff]  ;;  %v10973_v61 = vmul.f32 0.001953125, %v14027_v53 }
  0xf8   :  { %14023 = vst [vmem:[#allocation17_spill] sm:$0xff] %v10940_v21  ;;  %14024 = vst [vmem:[#allocation58_spill] sm:$0xff] %v10942_v54  ;;  %v2204_v3 = vrot.slane %v10542_v18, %v10374_v40  ;;  %v2211_v6 = vrot.slane %v10544_v58, %v10361_v38  ;;  %v2218_v44 = vrot.slane %v10544_v58, %v10368_v47 }
  0xf9   :  { %v2267_v31 = vrot.slane %v10578_v25, %v10361_v38  ;;  %v2225_v43 = vrot.slane %v10544_v58, %v10371_v13  ;;  %v2232_v8 = vrot.slane %v10544_v58, %v10374_v40  ;;  %v1468_v24 = vrot.slane %v10732_v34, %v10383_v63  ;;  %14028 = vst [vmem:[#allocation21_spill] sm:$0xff] %v10973_v61 }
  0xfa   :  { %v2274_v18 = vrot.slane %v10578_v25, %v10368_v47  ;;  %v2281_v55 = vrot.slane %v10578_v25, %v10371_v13  ;;  %v2288_v52 = vrot.slane %v10578_v25, %v10374_v40  ;;  %4053 = vadd.xlane.f32.xlu1 %v14025_v4  ;;  %4021 = vadd.xlane.f32.xlu0 %v14026_v11 }
  0xfb   :  { %v2239_v58 = vrot.slane %v10580_v1, %v10361_v38  ;;  %v2246_v34 = vrot.slane %v10580_v1, %v10368_v47  ;;  %v2253_v23 = vrot.slane %v10580_v1, %v10371_v13  ;;  %v2260_v54 = vrot.slane %v10580_v1, %v10374_v40  ;;  %v10983_v25 = vpop.xlane.xlu1 %2117  ;;  %v10985_v4 = vpop.xlane.xlu0 %5935 }
  0xfc   :  { %14029 = vst [vmem:[#allocation23_spill] sm:$0xff] %v10983_v25  ;;  %v10987_v11 = vcombine.low %v2183_v42, %v2190_v7  ;;  %v10989_v53 = vcombine.low %v1080_v60, %v1087_v22  ;;  %v10991_v61 = vcombine.low %v1094_v45, %v1101_v50  ;;  %v10993_v10 = vcombine.low %v1427_v28, %v1434_v9  ;;  %v14036_v42 = vld [vmem:[#allocation25_spill] sm:$0xff]  ;;  %v14037_v60 = vld [vmem:[#allocation26_spill] sm:$0xff] }
  0xfd   :  { %v10995_v21 = vcombine.low %v2197_v29, %v2204_v3  ;;  %v10997_v15 = vcombine.low %v2211_v6, %v2218_v44  ;;  %v10999_v41 = vcombine.low %v2225_v43, %v2232_v8  ;;  %v11001_v17 = vcombine.low %v1274_v59, %v1281_v56  ;;  %v14038_v22 = vld [vmem:[#allocation38_spill] sm:$0xff]  ;;  %v14043_v44 = vld [vmem:[#allocation27_spill] sm:$0xff] }
  0xfe   :  { %14030 = vst [vmem:[#allocation37_spill] sm:$0xff] %v10989_v53  ;;  %14031 = vst [vmem:[#allocation59_spill] sm:$0xff] %v10991_v61  ;;  %v11003_v1 = vcombine.low %v2267_v31, %v2274_v18  ;;  %v11005_v25 = vcombine.low %v2281_v55, %v2288_v52  ;;  %5963 = vadd.xlane.f32.xlu1 %v14036_v42  ;;  %5931 = vadd.xlane.f32.xlu0 %v14037_v60  ;;  %v11010_v45 = vmul.f32 0.001953125, %v14038_v22  ;;  %v14064_v53 = vld [vmem:[#allocation41_spill] sm:$0xff] }
  0xff   :  { %14032 = vst [vmem:[#allocation60_spill] sm:$0xff] %v10997_v15  ;;  %14033 = vst [vmem:[#allocation61_spill] sm:$0xff] %v10999_v41  ;;  %v1308_v28 = vrot.slane %v10594_v16, %v10383_v63  ;;  %v11014_v9 = vcombine.low %v2239_v58, %v2246_v34  ;;  %v11016_v50 = vcombine.low %v2253_v23, %v2260_v54  ;;  %v11018_v59 = vpop.xlane.xlu1 %4027  ;;  %v11020_v7 = vpop.xlane.xlu0 %3995  ;;  %v14042_v54 = vld [vmem:[#allocation45_spill] sm:$0xff] }
 0x100   :  { %14034 = vst [vmem:[#allocation62_spill] sm:$0xff] %v11003_v1  ;;  %14035 = vst [vmem:[#allocation63_spill] sm:$0xff] %v11005_v25  ;;  %v11022_v52 = vcombine.low %v1461_v19, %v1468_v24  ;;  %v1315_v55 = vrot.slane %v10596_v0, %v10383_v63  ;;  %v2323_v56 = vrot.slane %v10614_v2, %v10361_v38 }
 0x101   :  { %14039 = vst [vmem:[#allocation25_spill] sm:$0xff] %v11010_v45  ;;  %14040 = vst [vmem:[#allocation26_spill] sm:$0xff] %v11014_v9  ;;  %v2330_v29 = vrot.slane %v10614_v2, %v10368_v47  ;;  %v2337_v16 = vrot.slane %v10614_v2, %v10371_v13  ;;  %v2344_v23 = vrot.slane %v10614_v2, %v10374_v40 }
 0x102   :  { %14041 = vst [vmem:[#allocation38_spill] sm:$0xff] %v11016_v50  ;;  %v2295_v3 = vrot.slane %v14042_v54, %v10361_v38  ;;  %v2302_v19 = vrot.slane %v14042_v54, %v10368_v47  ;;  %v2309_v0 = vrot.slane %v14042_v54, %v10371_v13  ;;  %v1495_v6 = vrot.slane %v10746_v14, %v10383_v63  ;;  %v14044_v14 = vld [vmem:[#allocation6_spill] sm:$0xff] }
 0x103   :  { %v2379_v31 = vrot.slane %v14043_v44, %v10361_v38  ;;  %v2386_v43 = vrot.slane %v14043_v44, %v10368_v47  ;;  %v2316_v2 = vrot.slane %v14042_v54, %v10374_v40  ;;  %v1502_v8 = vrot.slane %v10748_v51, %v10383_v63  ;;  %v11058_v42 = vpop.xlane.xlu1 %5937  ;;  %v11060_v60 = vpop.xlane.xlu0 %5905 }
 0x104   :  { %v2393_v24 = vrot.slane %v14043_v44, %v10371_v13  ;;  %v2400_v18 = vrot.slane %v14043_v44, %v10374_v40  ;;  %v2351_v58 = vrot.slane %v14044_v14, %v10361_v38  ;;  %v2358_v34 = vrot.slane %v14044_v14, %v10368_v47 }
 0x105   :  { %v11062_v22 = vcombine.low %v2323_v56, %v2330_v29  ;;  %v11064_v54 = vcombine.low %v2337_v16, %v2344_v23  ;;  %v2365_v51 = vrot.slane %v14044_v14, %v10371_v13  ;;  %v2372_v44 = vrot.slane %v14044_v14, %v10374_v40  ;;  %v14049_v23 = vld [vmem:[#allocation44_spill] sm:$0xff] }
 0x106   :  { %v11070_v45 = vcombine.low %v2295_v3, %v2302_v19  ;;  %v2435_v25 = vrot.slane %v10686_v39, %v10361_v38  ;;  %v2442_v1 = vrot.slane %v10686_v39, %v10368_v47  ;;  %v11076_v50 = vcombine.low %v1308_v28, %v1315_v55 }
 0x107   :  { %14045 = vst [vmem:[#allocation45_spill] sm:$0xff] %v11062_v22  ;;  %14046 = vst [vmem:[#allocation27_spill] sm:$0xff] %v11064_v54  ;;  %v11078_v56 = vcombine.low %v2309_v0, %v2316_v2  ;;  %v2449_v29 = vrot.slane %v10686_v39, %v10371_v13  ;;  %v2456_v16 = vrot.slane %v10686_v39, %v10374_v40  ;;  %v11092_v22 = vpop.xlane.xlu1 %3997  ;;  %v11094_v28 = vpop.xlane.xlu0 %2119 }
 0x108   :  { %14047 = vst [vmem:[#allocation6_spill] sm:$0xff] %v11070_v45  ;;  %v1342_v3 = vrot.slane %v14049_v23, %v10383_v63  ;;  %v11086_v19 = vcombine.low %v2379_v31, %v2386_v43  ;;  %v11088_v14 = vcombine.low %v2393_v24, %v2400_v18  ;;  %v11090_v54 = vcombine.low %v2351_v58, %v2358_v34  ;;  %v14056_v58 = vld [vmem:[#allocation30_spill] sm:$0xff] }
 0x109   :  { %14048 = vst [vmem:[#allocation64_spill] sm:$0xff] %v11078_v56  ;;  %v11096_v55 = vcombine.low %v1495_v6, %v1502_v8  ;;  %v11098_v0 = vcombine.low %v2365_v51, %v2372_v44  ;;  %v2407_v39 = vrot.slane %v10688_v49, %v10361_v38  ;;  %v1349_v2 = vrot.slane %v10662_v5, %v10383_v63  ;;  %v14058_v44 = vld [vmem:[#allocation13_spill] sm:$0xff] }
 0x10a   :  { %14050 = vst [vmem:[#allocation44_spill] sm:$0xff] %v11086_v19  ;;  %14051 = vst [vmem:[#allocation65_spill] sm:$0xff] %v11088_v14  ;;  %v1529_v31 = vrot.slane %v10802_v48, %v10383_v63  ;;  %v11106_v43 = vcombine.low %v2435_v25, %v2442_v1  ;;  %v2414_v24 = vrot.slane %v10688_v49, %v10368_v47  ;;  %v14057_v48 = vld [vmem:[#allocation28_spill] sm:$0xff] }
 0x10b   :  { %14052 = vst [vmem:[#allocation66_spill] sm:$0xff] %v11090_v54  ;;  %14053 = vst [vmem:[#allocation67_spill] sm:$0xff] %v11098_v0  ;;  %v2421_v6 = vrot.slane %v10688_v49, %v10371_v13  ;;  %v2428_v8 = vrot.slane %v10688_v49, %v10374_v40  ;;  %v11114_v18 = vcombine.low %v2449_v29, %v2456_v16  ;;  %v11130_v16 = vpop.xlane.xlu1 %5907  ;;  %v11132_v23 = vpop.xlane.xlu0 %4029 }
 0x10c   :  { %14054 = vst [vmem:[#allocation68_spill] sm:$0xff] %v11106_v43  ;;  %v2491_v34 = vrot.slane %v14056_v58, %v10361_v38  ;;  %v1536_v5 = vrot.slane %v10810_v32, %v10383_v63  ;;  %v1376_v25 = vrot.slane %v14057_v48, %v10383_v63  ;;  %v2498_v1 = vrot.slane %v14056_v58, %v10368_v47  ;;  %v14059_v43 = vld [vmem:[#allocation47_spill] sm:$0xff] }
 0x10d   :  { %14055 = vst [vmem:[#allocation69_spill] sm:$0xff] %v11114_v18  ;;  %v2505_v51 = vrot.slane %v14056_v58, %v10371_v13  ;;  %v2512_v49 = vrot.slane %v14056_v58, %v10374_v40  ;;  %v2463_v29 = vrot.slane %v14058_v44, %v10361_v38  ;;  %v2470_v32 = vrot.slane %v14058_v44, %v10368_v47 }
 0x10e   :  { %v2477_v48 = vrot.slane %v14058_v44, %v10371_v13  ;;  %v2484_v18 = vrot.slane %v14058_v44, %v10374_v40  ;;  %v1383_v14 = vrot.slane %v14059_v43, %v10383_v63  ;;  %v2547_v58 = vrot.slane %v10756_v26, %v10361_v38 }
 0x10f   :  { %v2554_v19 = vrot.slane %v10756_v26, %v10368_v47  ;;  %v2561_v0 = vrot.slane %v10756_v26, %v10371_v13  ;;  %v2568_v54 = vrot.slane %v10756_v26, %v10374_v40  ;;  %v11150_v56 = vcombine.low %v2407_v39, %v2414_v24  ;;  %v11164_v61 = vpop.xlane.xlu1 %2121  ;;  %1678 = vperm.xlu1 %9206, %v14064_v53   ;;  %v11167_v26 = vpop.xlane.xlu0 %5939 }
 0x110   :  { %v2519_v44 = vrot.slane %v10758_v57, %v10361_v38  ;;  %v2526_v43 = vrot.slane %v10758_v57, %v10368_v47  ;;  %v11156_v45 = vcombine.low %v1342_v3, %v1349_v2  ;;  %v11158_v9 = vcombine.low %v2491_v34, %v2498_v1  ;;  %14065 = vst [vmem:[#allocation41_spill] sm:$0xff] %v11167_v26  ;;  %v14071_v1 = vld [vmem:[#allocation7_spill] sm:$0xff] }
 0x111   :  { %14060 = vst [vmem:[#allocation30_spill] sm:$0xff] %v11150_v56  ;;  %v11160_v41 = vcombine.low %v2505_v51, %v2512_v49  ;;  %v11162_v15 = vcombine.low %v2421_v6, %v2428_v8  ;;  %v11169_v39 = vcombine.low %v1529_v31, %v1536_v5  ;;  %v11171_v24 = vcombine.low %v2463_v29, %v2470_v32  ;;  %v14075_v32 = vld [vmem:[#allocation43_spill] sm:$0xff] }
 0x112   :  { %14061 = vst [vmem:[#allocation28_spill] sm:$0xff] %v11158_v9  ;;  %v11173_v56 = vcombine.low %v2477_v48, %v2484_v18  ;;  %v2533_v3 = vrot.slane %v10758_v57, %v10371_v13  ;;  %v1563_v2 = vrot.slane %v10826_v30, %v10383_v63  ;;  %v11179_v6 = vcombine.low %v2547_v58, %v2554_v19 }
 0x113   :  { %14062 = vst [vmem:[#allocation13_spill] sm:$0xff] %v11160_v41  ;;  %14063 = vst [vmem:[#allocation47_spill] sm:$0xff] %v11162_v15  ;;  %v11181_v8 = vcombine.low %v2561_v0, %v2568_v54  ;;  %v2540_v53 = vrot.slane %v10758_v57, %v10374_v40  ;;  %v11185_v34 = vcombine.low %v1376_v25, %v1383_v14  ;;  %v11203_v0 = vpop.xlane.xlu1 %4031  ;;  %v14073_v25 = vld [vmem:[#allocation42_spill] sm:$0xff] }
 0x114   :  { %14066 = vst [vmem:[#allocation70_spill] sm:$0xff] %v11171_v24  ;;  %14067 = vst [vmem:[#allocation71_spill] sm:$0xff] %v11173_v56  ;;  %v2631_v31 = vrot.slane %v10798_v62, %v10361_v38  ;;  %v11189_v18 = vcombine.low %v2519_v44, %v2526_v43  ;;  %v1570_v5 = vrot.slane %v10828_v27, %v10383_v63  ;;  %1681 = vperm.xlu1 %9206, %v14073_v25   ;;  %v11206_v27 = vpop.xlane.xlu0 %3999 }
 0x115   :  { %14068 = vst [vmem:[#allocation72_spill] sm:$0xff] %v11179_v6  ;;  %14069 = vst [vmem:[#allocation73_spill] sm:$0xff] %v11181_v8  ;;  %v1410_v30 = vrot.slane %v14071_v1, %v10383_v63  ;;  %v2638_v54 = vrot.slane %v10798_v62, %v10368_v47  ;;  %v2645_v19 = vrot.slane %v10798_v62, %v10371_v13  ;;  %1675 = vperm.xlu0 %9205, %v14075_v32  }
 0x116   :  { %14070 = vst [vmem:[#allocation74_spill] sm:$0xff] %v11189_v18  ;;  %v2652_v57 = vrot.slane %v10798_v62, %v10374_v40  ;;  %v2575_v14 = vrot.slane %v10800_v36, %v10361_v38  ;;  %14072 = vst [vmem:[#allocation7_spill] sm:$0xff] %v11203_v0  ;;  %v2582_v51 = vrot.slane %v10800_v36, %v10368_v47  ;;  %v14076_v62 = vld [vmem:[#allocation14_spill] sm:$0xff] }
 0x117   :  { %14074 = vst [vmem:[#allocation42_spill] sm:$0xff] %v11206_v27  ;;  %v2589_v49 = vrot.slane %v10800_v36, %v10371_v13  ;;  %v2596_v29 = vrot.slane %v10800_v36, %v10374_v40  ;;  %v1417_v48 = vrot.slane %v14076_v62, %v10383_v63  ;;  %v4093_v58 = vrot.slane %v10832_v35, %v10361_v38  ;;  %v11239_v41 = vpop.xlane.xlu1 %5941 }
 0x118   :  { %v4100_v44 = vrot.slane %v10832_v35, %v10368_v47  ;;  %v4107_v43 = vrot.slane %v10832_v35, %v10371_v13  ;;  %v4114_v1 = vrot.slane %v10832_v35, %v10374_v40  ;;  %v2659_v36 = vrot.slane %v10834_v46, %v10361_v38  ;;  %14080 = vst [vmem:[#allocation76_spill] sm:$0xff] %v11239_v41  ;;  %v14081_v35 = vld [vmem:[#allocation46_spill] sm:$0xff]  ;;  %v11242_v9 = vpop.xlane.xlu0 %5909 }
 0x119   :  { %v2666_v25 = vrot.slane %v10834_v46, %v10368_v47  ;;  %v2673_v32 = vrot.slane %v10834_v46, %v10371_v13  ;;  %v2680_v62 = vrot.slane %v10834_v46, %v10374_v40  ;;  %v11233_v8 = vcombine.low %v2631_v31, %v2638_v54  ;;  %1684 = vperm.xlu1 %9206, %v14081_v35  }
 0x11a   :  { %v11235_v6 = vcombine.low %v2645_v19, %v2652_v57  ;;  %v11237_v18 = vcombine.low %v2533_v3, %v2540_v53  ;;  %14082 = vst [vmem:[#allocation46_spill] sm:$0xff] %v11242_v9  ;;  %v11244_v56 = vcombine.low %v1563_v2, %v1570_v5  ;;  %v11246_v24 = vcombine.low %v2575_v14, %v2582_v51  ;;  %v14086_v3 = vld [vmem:[#allocation9_spill] sm:$0xff]  ;;  %v14105_v9 = vld [vmem:[#allocation58_spill] sm:$0xff] }
 0x11b   :  { %14077 = vst [vmem:[#allocation43_spill] sm:$0xff] %v11233_v8  ;;  %v11248_v15 = vcombine.low %v2589_v49, %v2596_v29  ;;  %v4541_v46 = vrot.slane %v10870_v33, %v10361_v38  ;;  %v4548_v31 = vrot.slane %v10870_v33, %v10368_v47  ;;  %1702 = vperm.xlu0 %9205, %v14086_v3   ;;  %v14090_v51 = vld [vmem:[#allocation49_spill] sm:$0xff] }
 0x11c   :  { %14078 = vst [vmem:[#allocation14_spill] sm:$0xff] %v11235_v6  ;;  %14079 = vst [vmem:[#allocation75_spill] sm:$0xff] %v11237_v18  ;;  %v11255_v53 = vcombine.low %v4093_v58, %v4100_v44  ;;  %v11257_v54 = vcombine.low %v4107_v43, %v4114_v1  ;;  %v11259_v19 = vcombine.low %v1410_v30, %v1417_v48  ;;  %v11279_v58 = vpop.xlane.xlu1 %4001  ;;  %v14092_v44 = vld [vmem:[#allocation10_spill] sm:$0xff] }
 0x11d   :  { %14083 = vst [vmem:[#allocation77_spill] sm:$0xff] %v11244_v56  ;;  %14084 = vst [vmem:[#allocation78_spill] sm:$0xff] %v11246_v24  ;;  %v1597_v2 = vrot.slane %v10854_v12, %v10383_v63  ;;  %v11263_v5 = vcombine.low %v2659_v36, %v2666_v25  ;;  %v11265_v57 = vcombine.low %v2673_v32, %v2680_v62  ;;  %1687 = vperm.xlu1 %9206, %v14092_v44   ;;  %v14095_v36 = vld [vmem:[#allocation48_spill] sm:$0xff]  ;;  %v14096_v25 = vld [vmem:[#allocation50_spill] sm:$0xff] }
 0x11e   :  { %14085 = vst [vmem:[#allocation79_spill] sm:$0xff] %v11248_v15  ;;  %14087 = vst [vmem:[#allocation9_spill] sm:$0xff] %v11255_v53  ;;  %v1604_v14 = vrot.slane %v10882_v20, %v10383_v63  ;;  %v1444_v49 = vrot.slane %v14090_v51, %v10383_v63  ;;  %v4555_v29 = vrot.slane %v10870_v33, %v10371_v13  ;;  %v11282_v20 = vpop.xlane.xlu0 %2123  ;;  %v14097_v62 = vld [vmem:[#allocation52_spill] sm:$0xff]  ;;  %v14099_v44 = vld [vmem:[#allocation53_spill] sm:$0xff] }
 0x11f   :  { %14088 = vst [vmem:[#allocation80_spill] sm:$0xff] %v11257_v54  ;;  %14089 = vst [vmem:[#allocation81_spill] sm:$0xff] %v11259_v19  ;;  %v4562_v30 = vrot.slane %v10870_v33, %v10374_v40  ;;  %v4121_v48 = vrot.slane %v10872_v37, %v10361_v38  ;;  %v4128_v12 = vrot.slane %v10872_v37, %v10368_v47  ;;  %1708 = vperm.xlu0 %9205, %v14095_v36   ;;  %v14100_v24 = vld [vmem:[#allocation17_spill] sm:$0xff]  ;;  %v14104_v6 = vld [vmem:[#allocation22_spill] sm:$0xff] }
 0x120   :  { %14091 = vst [vmem:[#allocation49_spill] sm:$0xff] %v11279_v58  ;;  %14093 = vst [vmem:[#allocation10_spill] sm:$0xff] %v11282_v20  ;;  %v11284_v43 = vcombine.low %v4541_v46, %v4548_v31  ;;  %v4135_v1 = vrot.slane %v10872_v37, %v10371_v13  ;;  %v4142_v33 = vrot.slane %v10872_v37, %v10374_v40  ;;  %v14098_v31 = vld [vmem:[#allocation39_spill] sm:$0xff]  ;;  %v11315_v54 = vpop.xlane.xlu1 %5911 }
 0x121   :  { %v1451_v32 = vrot.slane %v14096_v25, %v10383_v63  ;;  %v6003_v35 = vrot.slane %v14097_v62, %v10361_v38  ;;  %v6010_v3 = vrot.slane %v14097_v62, %v10368_v47  ;;  %v6017_v46 = vrot.slane %v14097_v62, %v10371_v13  ;;  %14101 = vst [vmem:[#allocation48_spill] sm:$0xff] %v11315_v54  ;;  %v14106_v54 = vld [vmem:[#allocation36_spill] sm:$0xff] }
 0x122   :  { %14094 = vst [vmem:[#allocation82_spill] sm:$0xff] %v11284_v43  ;;  %v1631_v51 = vrot.slane %v14098_v31, %v10383_v63  ;;  %v6024_v37 = vrot.slane %v14097_v62, %v10374_v40  ;;  %v4569_v36 = vrot.slane %v14099_v44, %v10361_v38  ;;  %v4576_v25 = vrot.slane %v14099_v44, %v10368_v47  ;;  %v14102_v62 = vld [vmem:[#allocation8_spill] sm:$0xff]  ;;  %v11318_v53 = vpop.xlane.xlu0 %4033 }
 0x123   :  { %v4583_v15 = vrot.slane %v14099_v44, %v10371_v13  ;;  %v6451_v18 = vrot.slane %v14100_v24, %v10361_v38  ;;  %v6458_v43 = vrot.slane %v14100_v24, %v10368_v47  ;;  %v4590_v31 = vrot.slane %v14099_v44, %v10374_v40  ;;  %1690 = vperm.xlu1 %9206, %v14102_v62  }
 0x124   :  { %14103 = vst [vmem:[#allocation50_spill] sm:$0xff] %v11318_v53  ;;  %v1638_v8 = vrot.slane %v14104_v6, %v10383_v63  ;;  %v6465_v20 = vrot.slane %v14100_v24, %v10371_v13  ;;  %v6472_v58 = vrot.slane %v14100_v24, %v10374_v40  ;;  %v6031_v41 = vrot.slane %v14105_v9, %v10361_v38 }
 0x125   :  { %v6038_v44 = vrot.slane %v14105_v9, %v10368_v47  ;;  %1714 = vperm.xlu0 %9205, %v14106_v54   ;;  %v11331_v62 = vcombine.low %v4555_v29, %v4562_v30  ;;  %v6045_v53 = vrot.slane %v14105_v9, %v10371_v13  ;;  %v6052_v6 = vrot.slane %v14105_v9, %v10374_v40  ;;  %v11351_v29 = vpop.xlane.xlu1 %2125  ;;  %v14113_v30 = vld [vmem:[#allocation18_spill] sm:$0xff] }
 0x126   :  { %v11337_v27 = vcombine.low %v1597_v2, %v1604_v14  ;;  %v11339_v0 = vcombine.low %v6003_v35, %v6010_v3  ;;  %v11341_v24 = vcombine.low %v6017_v46, %v6024_v37  ;;  %v11343_v19 = vcombine.low %v4121_v48, %v4128_v12  ;;  %14112 = vst [vmem:[#allocation22_spill] sm:$0xff] %v11351_v29  ;;  %v14115_v2 = vld [vmem:[#allocation15_spill] sm:$0xff]  ;;  %v14124_v37 = vld [vmem:[#allocation40_spill] sm:$0xff] }
 0x127   :  { %14107 = vst [vmem:[#allocation52_spill] sm:$0xff] %v11331_v62  ;;  %v11345_v56 = vcombine.low %v4135_v1, %v4142_v33  ;;  %v11347_v26 = vcombine.low %v4569_v36, %v4576_v25  ;;  %v11349_v54 = vcombine.low %v4583_v15, %v4590_v31  ;;  %1693 = vperm.xlu1 %9206, %v14113_v30   ;;  %v11354_v62 = vpop.xlane.xlu0 %5943  ;;  %v14119_v1 = vld [vmem:[#allocation19_spill] sm:$0xff]  ;;  %v14126_v25 = vld [vmem:[#allocation56_spill] sm:$0xff] }
 0x128   :  { %14108 = vst [vmem:[#allocation39_spill] sm:$0xff] %v11339_v0  ;;  %14109 = vst [vmem:[#allocation53_spill] sm:$0xff] %v11341_v24  ;;  %v11356_v9 = vcombine.low %v1444_v49, %v1451_v32  ;;  %v1478_v14 = vrot.slane %v14115_v2, %v10383_v63  ;;  %v11360_v35 = vcombine.low %v6451_v18, %v6458_v43  ;;  %v14121_v33 = vld [vmem:[#allocation23_spill] sm:$0xff] }
 0x129   :  { %14110 = vst [vmem:[#allocation17_spill] sm:$0xff] %v11347_v26  ;;  %14111 = vst [vmem:[#allocation8_spill] sm:$0xff] %v11349_v54  ;;  %v11362_v48 = vcombine.low %v6465_v20, %v6472_v58  ;;  %v11364_v12 = vcombine.low %v6031_v41, %v6038_v44  ;;  %1720 = vperm.xlu0 %9205, %v14119_v1   ;;  %v11367_v15 = vcombine.low %v1631_v51, %v1638_v8  ;;  %v14123_v49 = vld [vmem:[#allocation35_spill] sm:$0xff]  ;;  %v11391_v36 = vpop.xlane.xlu1 %4035  ;;  %v14128_v44 = vld [vmem:[#allocation57_spill] sm:$0xff] }
 0x12a   :  { %14114 = vst [vmem:[#allocation58_spill] sm:$0xff] %v11354_v62  ;;  %14116 = vst [vmem:[#allocation36_spill] sm:$0xff] %v11360_v35  ;;  %v2687_v3 = vrot.slane %v14121_v33, %v10361_v38  ;;  %v11371_v46 = vcombine.low %v6045_v53, %v6052_v6  ;;  %v1485_v32 = vrot.slane %v14123_v49, %v10383_v63 }
 0x12b   :  { %14117 = vst [vmem:[#allocation18_spill] sm:$0xff] %v11362_v48  ;;  %14118 = vst [vmem:[#allocation15_spill] sm:$0xff] %v11364_v12  ;;  %v1665_v18 = vrot.slane %v14124_v37, %v10383_v63  ;;  %v2694_v58 = vrot.slane %v14121_v33, %v10368_v47  ;;  %v2701_v41 = vrot.slane %v14121_v33, %v10371_v13  ;;  %1696 = vperm.xlu1 %9206, %v14126_v25   ;;  %v11394_v31 = vpop.xlane.xlu0 %4003 }
 0x12c   :  { %14120 = vst [vmem:[#allocation19_spill] sm:$0xff] %v11367_v15  ;;  %14122 = vst [vmem:[#allocation23_spill] sm:$0xff] %v11371_v46  ;;  %v2708_v8 = vrot.slane %v14121_v33, %v10374_v40  ;;  %v6479_v20 = vrot.slane %v10985_v4, %v10361_v38  ;;  %v6486_v53 = vrot.slane %v10985_v4, %v10368_v47 }
 0x12d   :  { %v6493_v43 = vrot.slane %v10985_v4, %v10371_v13  ;;  %v6500_v51 = vrot.slane %v10985_v4, %v10374_v40  ;;  %14125 = vst [vmem:[#allocation35_spill] sm:$0xff] %v11391_v36  ;;  %14127 = vst [vmem:[#allocation40_spill] sm:$0xff] %v11394_v31  ;;  %v1672_v6 = vrot.slane %v14128_v44, %v10383_v63  ;;  %1726 = vperm.xlu0 %9205, %v10993_v10   ;;  %v14129_v4 = vld [vmem:[#allocation20_spill] sm:$0xff]  ;;  %v14130_v10 = vld [vmem:[#allocation11_spill] sm:$0xff]  ;;  %v11431_v36 = vpop.xlane.xlu1 %5945 }
 0x12e   :  { %v4597_v30 = vrot.slane %v11018_v59, %v10361_v38  ;;  %v4604_v2 = vrot.slane %v11018_v59, %v10368_v47  ;;  %v4611_v1 = vrot.slane %v11018_v59, %v10371_v13  ;;  %v1512_v33 = vrot.slane %v14129_v4, %v10383_v63  ;;  %14131 = vst [vmem:[#allocation56_spill] sm:$0xff] %v11431_v36 }
 0x12f   :  { %v4618_v49 = vrot.slane %v11018_v59, %v10374_v40  ;;  %v4149_v37 = vrot.slane %v11020_v7, %v10361_v38  ;;  %v4156_v25 = vrot.slane %v11020_v7, %v10368_v47  ;;  %v4163_v44 = vrot.slane %v11020_v7, %v10371_v13  ;;  %1699 = vperm.xlu1 %9206, %v11001_v17  }
 0x130   :  { %v4170_v48 = vrot.slane %v11020_v7, %v10374_v40  ;;  %v1519_v35 = vrot.slane %v14130_v10, %v10383_v63  ;;  %v3081_v4 = vrot.slane %v10987_v11, %v10383_v63  ;;  %v3088_v59 = vrot.slane %v10995_v21, %v10383_v63  ;;  %v11434_v11 = vpop.xlane.xlu0 %5913 }
 0x131   :  { %v6507_v24 = vrot.slane %v11058_v42, %v10361_v38  ;;  %v6514_v0 = vrot.slane %v11058_v42, %v10368_v47  ;;  %v6521_v31 = vrot.slane %v11058_v42, %v10371_v13  ;;  %v6528_v7 = vrot.slane %v11058_v42, %v10374_v40  ;;  %14132 = vst [vmem:[#allocation57_spill] sm:$0xff] %v11434_v11 }
 0x132   :  { %v6059_v21 = vrot.slane %v11060_v60, %v10361_v38  ;;  %v6066_v10 = vrot.slane %v11060_v60, %v10368_v47  ;;  %v6073_v62 = vrot.slane %v11060_v60, %v10371_v13  ;;  %v6080_v29 = vrot.slane %v11060_v60, %v10374_v40  ;;  %1732 = vperm.xlu0 %9205, %v11022_v52  }
 0x133   :  { %v11445_v42 = vcombine.low %v2687_v3, %v2694_v58  ;;  %v11447_v36 = vcombine.low %v2701_v41, %v2708_v8  ;;  %v11449_v17 = vcombine.low %v6479_v20, %v6486_v53  ;;  %v11451_v11 = vcombine.low %v1478_v14, %v1485_v32  ;;  %v11469_v58 = vpop.xlane.xlu1 %4005  ;;  %1705 = vperm.xlu1 %9206, %v11076_v50   ;;  %v14139_v50 = vld [vmem:[#allocation12_spill] sm:$0xff]  ;;  %v14140_v20 = vld [vmem:[#allocation51_spill] sm:$0xff] }
 0x134   :  { %v11453_v46 = vcombine.low %v4597_v30, %v4604_v2  ;;  %v11455_v12 = vcombine.low %v4611_v1, %v4618_v49  ;;  %v11457_v15 = vcombine.low %v6493_v43, %v6500_v51  ;;  %v11459_v54 = vcombine.low %v1665_v18, %v1672_v6  ;;  %v11472_v14 = vpop.xlane.xlu0 %2127 }
 0x135   :  { %v11461_v26 = vcombine.low %v6507_v24, %v6514_v0  ;;  %v11463_v60 = vcombine.low %v6521_v31, %v6528_v7  ;;  %v11465_v52 = vcombine.low %v4149_v37, %v4156_v25  ;;  %v11467_v3 = vcombine.low %v4163_v44, %v4170_v48 }
 0x136   :  { %v11474_v32 = vcombine.low %v6059_v21, %v6066_v10  ;;  %v11476_v41 = vcombine.low %v6073_v62, %v6080_v29  ;;  %1738 = vperm.xlu0 %9205, %v11096_v55   ;;  %v11479_v0 = vcombine.low %v1512_v33, %v1519_v35  ;;  %v11481_v24 = vcombine.low %v3081_v4, %v3088_v59 }
 0x137   :  { %14133 = vst [vmem:[#allocation20_spill] sm:$0xff] %v11461_v26  ;;  %14134 = vst [vmem:[#allocation11_spill] sm:$0xff] %v11463_v60  ;;  %v4177_v48 = vrot.slane %v11092_v22, %v10361_v38  ;;  %v4184_v18 = vrot.slane %v11092_v22, %v10368_v47  ;;  %v1546_v8 = vrot.slane %v14139_v50, %v10383_v63  ;;  %v11503_v31 = vpop.xlane.xlu1 %5915  ;;  %1711 = vperm.xlu1 %9206, %v11156_v45   ;;  %v14141_v45 = vld [vmem:[#allocation16_spill] sm:$0xff] }
 0x138   :  { %14135 = vst [vmem:[#allocation83_spill] sm:$0xff] %v11465_v52  ;;  %14136 = vst [vmem:[#allocation84_spill] sm:$0xff] %v11467_v3  ;;  %v1553_v53 = vrot.slane %v14140_v20, %v10383_v63  ;;  %v4191_v62 = vrot.slane %v11092_v22, %v10371_v13  ;;  %v4198_v55 = vrot.slane %v11092_v22, %v10374_v40  ;;  %v11506_v6 = vpop.xlane.xlu0 %4037 }
 0x139   :  { %14137 = vst [vmem:[#allocation85_spill] sm:$0xff] %v11474_v32  ;;  %14138 = vst [vmem:[#allocation86_spill] sm:$0xff] %v11476_v41  ;;  %v2715_v29 = vrot.slane %v11094_v28, %v10361_v38  ;;  %v2722_v35 = vrot.slane %v11094_v28, %v10368_v47  ;;  %v2729_v43 = vrot.slane %v11094_v28, %v10371_v13  ;;  %v14146_v41 = vld [vmem:[#allocation77_spill] sm:$0xff] }
 0x13a   :  { %v2736_v51 = vrot.slane %v11094_v28, %v10374_v40  ;;  %v3370_v22 = vrot.slane %v11263_v5, %v10383_v63  ;;  %v3377_v30 = vrot.slane %v11265_v57, %v10383_v63  ;;  %v6087_v2 = vrot.slane %v11130_v16, %v10361_v38  ;;  %1744 = vperm.xlu0 %9205, %v11169_v39   ;;  %v14142_v39 = vld [vmem:[#allocation24_spill] sm:$0xff] }
 0x13b   :  { %v6094_v1 = vrot.slane %v11130_v16, %v10368_v47  ;;  %v6101_v28 = vrot.slane %v11130_v16, %v10371_v13  ;;  %v1580_v33 = vrot.slane %v14141_v45, %v10383_v63  ;;  %v6108_v5 = vrot.slane %v11130_v16, %v10374_v40  ;;  %v11545_v10 = vpop.xlane.xlu1 %2129  ;;  %1717 = vperm.xlu1 %9206, %v11185_v34  }
 0x13c   :  { %v4625_v57 = vrot.slane %v11132_v23, %v10361_v38  ;;  %v4632_v49 = vrot.slane %v11132_v23, %v10368_v47  ;;  %v4639_v37 = vrot.slane %v11132_v23, %v10371_v13  ;;  %v4646_v25 = vrot.slane %v11132_v23, %v10374_v40  ;;  %14143 = vst [vmem:[#allocation12_spill] sm:$0xff] %v11545_v10 }
 0x13d   :  { %v1587_v44 = vrot.slane %v14142_v39, %v10383_v63  ;;  %v5008_v4 = vrot.slane %v11343_v19, %v10383_v63  ;;  %v5015_v16 = vrot.slane %v11345_v56, %v10383_v63  ;;  %v2743_v59 = vrot.slane %v11164_v61, %v10361_v38  ;;  %v11548_v19 = vpop.xlane.xlu0 %5947  ;;  %v14145_v56 = vld [vmem:[#allocation41_spill] sm:$0xff] }
 0x13e   :  { %v2750_v7 = vrot.slane %v11164_v61, %v10368_v47  ;;  %v2757_v21 = vrot.slane %v11164_v61, %v10371_v13  ;;  %v2764_v23 = vrot.slane %v11164_v61, %v10374_v40  ;;  %14144 = vst [vmem:[#allocation51_spill] sm:$0xff] %v11548_v19  ;;  %v6535_v50 = vrot.slane %v14145_v56, %v10361_v38 }
 0x13f   :  { %v6542_v20 = vrot.slane %v14145_v56, %v10368_v47  ;;  %v6549_v45 = vrot.slane %v14145_v56, %v10371_v13  ;;  %v6556_v39 = vrot.slane %v14145_v56, %v10374_v40  ;;  %1750 = vperm.xlu0 %9205, %v14146_v41   ;;  %v11559_v61 = vcombine.low %v4177_v48, %v4184_v18  ;;  %v11583_v18 = vpop.xlane.xlu1 %4039 }
 0x140   :  { %v11561_v32 = vcombine.low %v4191_v62, %v4198_v55  ;;  %v11563_v34 = vcombine.low %v2715_v29, %v2722_v35  ;;  %v11565_v3 = vcombine.low %v1546_v8, %v1553_v53  ;;  %v11567_v52 = vcombine.low %v6087_v2, %v6094_v1  ;;  %14157 = vst [vmem:[#allocation93_spill] sm:$0xff] %v11583_v18  ;;  %v14158_v8 = vld [vmem:[#allocation81_spill] sm:$0xff]  ;;  %v14164_v1 = vld [vmem:[#allocation55_spill] sm:$0xff] }
 0x141   :  { %14147 = vst [vmem:[#allocation16_spill] sm:$0xff] %v11559_v61  ;;  %v11569_v19 = vcombine.low %v6101_v28, %v6108_v5  ;;  %v11571_v10 = vcombine.low %v2729_v43, %v2736_v51  ;;  %v11573_v60 = vcombine.low %v3370_v22, %v3377_v30  ;;  %v11575_v26 = vcombine.low %v2743_v59, %v2750_v7  ;;  %v11586_v53 = vpop.xlane.xlu0 %4007  ;;  %v14162_v43 = vld [vmem:[#allocation7_spill] sm:$0xff]  ;;  %v14163_v30 = vld [vmem:[#allocation54_spill] sm:$0xff]  ;;  %v14169_v7 = vld [vmem:[#allocation8_spill] sm:$0xff] }
 0x142   :  { %14148 = vst [vmem:[#allocation24_spill] sm:$0xff] %v11561_v32  ;;  %14149 = vst [vmem:[#allocation41_spill] sm:$0xff] %v11563_v34  ;;  %v11577_v56 = vcombine.low %v2757_v21, %v2764_v23  ;;  %v11579_v41 = vcombine.low %v4625_v57, %v4632_v49  ;;  %v11581_v48 = vcombine.low %v4639_v37, %v4646_v25  ;;  %1723 = vperm.xlu1 %9206, %v14158_v8   ;;  %v14170_v23 = vld [vmem:[#allocation76_spill] sm:$0xff]  ;;  %v14177_v61 = vld [vmem:[#allocation49_spill] sm:$0xff] }
 0x143   :  { %14150 = vst [vmem:[#allocation77_spill] sm:$0xff] %v11567_v52  ;;  %14151 = vst [vmem:[#allocation87_spill] sm:$0xff] %v11569_v19  ;;  %v11588_v62 = vcombine.low %v6535_v50, %v6542_v20  ;;  %v11590_v55 = vcombine.low %v6549_v45, %v6556_v39  ;;  %1756 = vperm.xlu0 %9205, %v11337_v27   ;;  %v11593_v29 = vcombine.low %v1580_v33, %v1587_v44  ;;  %v14165_v33 = vld [vmem:[#allocation42_spill] sm:$0xff]  ;;  %v11617_v44 = vpop.xlane.xlu1 %5949  ;;  %v14171_v39 = vld [vmem:[#allocation19_spill] sm:$0xff] }
 0x144   :  { %14152 = vst [vmem:[#allocation88_spill] sm:$0xff] %v11571_v10  ;;  %14153 = vst [vmem:[#allocation89_spill] sm:$0xff] %v11575_v26  ;;  %v11595_v35 = vcombine.low %v5008_v4, %v5015_v16  ;;  %v4653_v51 = vrot.slane %v14162_v43, %v10361_v38  ;;  %v4660_v22 = vrot.slane %v14162_v43, %v10368_v47  ;;  %v14168_v16 = vld [vmem:[#allocation17_spill] sm:$0xff] }
 0x145   :  { %14154 = vst [vmem:[#allocation90_spill] sm:$0xff] %v11577_v56  ;;  %14155 = vst [vmem:[#allocation91_spill] sm:$0xff] %v11579_v41  ;;  %v1614_v2 = vrot.slane %v14163_v30, %v10383_v63  ;;  %v1621_v28 = vrot.slane %v14164_v1, %v10383_v63  ;;  %v4667_v5 = vrot.slane %v14162_v43, %v10371_v13  ;;  %v11620_v4 = vpop.xlane.xlu0 %5917  ;;  %v14173_v30 = vld [vmem:[#allocation46_spill] sm:$0xff] }
 0x146   :  { %14156 = vst [vmem:[#allocation92_spill] sm:$0xff] %v11581_v48  ;;  %14159 = vst [vmem:[#allocation81_spill] sm:$0xff] %v11586_v53  ;;  %v4674_v27 = vrot.slane %v14162_v43, %v10374_v40  ;;  %v4205_v57 = vrot.slane %v14165_v33, %v10361_v38  ;;  %v4212_v49 = vrot.slane %v14165_v33, %v10368_v47  ;;  %1729 = vperm.xlu1 %9206, %v11356_v9   ;;  %v14172_v9 = vld [vmem:[#allocation37_spill] sm:$0xff] }
 0x147   :  { %14160 = vst [vmem:[#allocation94_spill] sm:$0xff] %v11588_v62  ;;  %14161 = vst [vmem:[#allocation95_spill] sm:$0xff] %v11590_v55  ;;  %v4219_v37 = vrot.slane %v14165_v33, %v10371_v13  ;;  %v4226_v25 = vrot.slane %v14165_v33, %v10374_v40  ;;  %v5280_v59 = vrot.slane %v14168_v16, %v10383_v63  ;;  %1762 = vperm.xlu0 %9205, %v14171_v39   ;;  %v14174_v39 = vld [vmem:[#allocation59_spill] sm:$0xff]  ;;  %v11659_v62 = vpop.xlane.xlu1 %4009 }
 0x148   :  { %14166 = vst [vmem:[#allocation7_spill] sm:$0xff] %v11617_v44  ;;  %14167 = vst [vmem:[#allocation54_spill] sm:$0xff] %v11620_v4  ;;  %v5287_v21 = vrot.slane %v14169_v7, %v10383_v63  ;;  %v6563_v50 = vrot.slane %v14170_v23, %v10361_v38  ;;  %v6570_v20 = vrot.slane %v14170_v23, %v10368_v47 }
 0x149   :  { %v6577_v45 = vrot.slane %v14170_v23, %v10371_v13  ;;  %v1648_v8 = vrot.slane %v14172_v9, %v10383_v63  ;;  %v6584_v43 = vrot.slane %v14170_v23, %v10374_v40  ;;  %v6115_v1 = vrot.slane %v14173_v30, %v10361_v38  ;;  %v14175_v9 = vld [vmem:[#allocation15_spill] sm:$0xff]  ;;  %14178 = vst [vmem:[#allocation55_spill] sm:$0xff] %v11659_v62 }
 0x14a   :  { %v6122_v33 = vrot.slane %v14173_v30, %v10368_v47  ;;  %v6129_v16 = vrot.slane %v14173_v30, %v10371_v13  ;;  %v6136_v7 = vrot.slane %v14173_v30, %v10374_v40  ;;  %v1655_v19 = vrot.slane %v14174_v39, %v10383_v63  ;;  %v14176_v23 = vld [vmem:[#allocation23_spill] sm:$0xff]  ;;  %1735 = vperm.xlu1 %9206, %v11451_v11   ;;  %v11662_v39 = vpop.xlane.xlu0 %2131 }
 0x14b   :  { %v6918_v52 = vrot.slane %v14175_v9, %v10383_v63  ;;  %v6925_v32 = vrot.slane %v14176_v23, %v10383_v63  ;;  %v4233_v56 = vrot.slane %v14177_v61, %v10361_v38  ;;  %v4240_v26 = vrot.slane %v14177_v61, %v10368_v47  ;;  %14179 = vst [vmem:[#allocation42_spill] sm:$0xff] %v11662_v39  ;;  %v14180_v9 = vld [vmem:[#allocation10_spill] sm:$0xff] }
 0x14c   :  { %v4247_v55 = vrot.slane %v14177_v61, %v10371_v13  ;;  %v4254_v30 = vrot.slane %v14177_v61, %v10374_v40  ;;  %v2771_v23 = vrot.slane %v14180_v9, %v10361_v38  ;;  %v2778_v4 = vrot.slane %v14180_v9, %v10368_v47  ;;  %1768 = vperm.xlu0 %9205, %v11459_v54  }
 0x14d   :  { %v2785_v44 = vrot.slane %v14180_v9, %v10371_v13  ;;  %v2792_v48 = vrot.slane %v14180_v9, %v10374_v40  ;;  %v11673_v61 = vcombine.low %v4653_v51, %v4660_v22  ;;  %v11675_v62 = vcombine.low %v4667_v5, %v4674_v27  ;;  %v11697_v22 = vpop.xlane.xlu1 %5919 }
 0x14e   :  { %v11677_v11 = vcombine.low %v4205_v57, %v4212_v49  ;;  %v11679_v39 = vcombine.low %v1614_v2, %v1621_v28  ;;  %v11681_v41 = vcombine.low %v6563_v50, %v6570_v20  ;;  %v11683_v53 = vcombine.low %v6577_v45, %v6584_v43  ;;  %1741 = vperm.xlu1 %9206, %v11479_v0   ;;  %v11700_v2 = vpop.xlane.xlu0 %4041  ;;  %v14192_v0 = vld [vmem:[#allocation60_spill] sm:$0xff]  ;;  %v14196_v45 = vld [vmem:[#allocation22_spill] sm:$0xff] }
 0x14f   :  { %v11685_v10 = vcombine.low %v4219_v37, %v4226_v25  ;;  %v11687_v34 = vcombine.low %v5280_v59, %v5287_v21  ;;  %v11689_v18 = vcombine.low %v4233_v56, %v4240_v26  ;;  %v11691_v9 = vcombine.low %v4247_v55, %v4254_v30  ;;  %v14191_v55 = vld [vmem:[#allocation48_spill] sm:$0xff]  ;;  %v14193_v37 = vld [vmem:[#allocation61_spill] sm:$0xff] }
 0x150   :  { %14181 = vst [vmem:[#allocation17_spill] sm:$0xff] %v11677_v11  ;;  %14182 = vst [vmem:[#allocation8_spill] sm:$0xff] %v11681_v41  ;;  %v11693_v54 = vcombine.low %v6115_v1, %v6122_v33  ;;  %v11695_v51 = vcombine.low %v6129_v16, %v6136_v7  ;;  %v11702_v28 = vcombine.low %v2771_v23, %v2778_v4  ;;  %3618 = vperm.xlu0 %9205, %v11481_v24   ;;  %v14198_v16 = vld [vmem:[#allocation58_spill] sm:$0xff] }
 0x151   :  { %14183 = vst [vmem:[#allocation76_spill] sm:$0xff] %v11683_v53  ;;  %14184 = vst [vmem:[#allocation19_spill] sm:$0xff] %v11685_v10  ;;  %v11704_v5 = vcombine.low %v2785_v44, %v2792_v48  ;;  %v11707_v26 = vcombine.low %v1648_v8, %v1655_v19  ;;  %v11709_v56 = vcombine.low %v6918_v52, %v6925_v32  ;;  %v14194_v52 = vld [vmem:[#allocation50_spill] sm:$0xff]  ;;  %v11731_v59 = vpop.xlane.xlu1 %2133 }
 0x152   :  { %14185 = vst [vmem:[#allocation37_spill] sm:$0xff] %v11689_v18  ;;  %14186 = vst [vmem:[#allocation46_spill] sm:$0xff] %v11691_v9  ;;  %v6143_v27 = vrot.slane %v14191_v55, %v10361_v38  ;;  %v6150_v57 = vrot.slane %v14191_v55, %v10368_v47  ;;  %v3098_v49 = vrot.slane %v14192_v0, %v10383_v63  ;;  %1747 = vperm.xlu1 %9206, %v11565_v3   ;;  %v11734_v21 = vpop.xlane.xlu0 %5951  ;;  %v14197_v3 = vld [vmem:[#allocation43_spill] sm:$0xff] }
 0x153   :  { %14187 = vst [vmem:[#allocation59_spill] sm:$0xff] %v11693_v54  ;;  %14188 = vst [vmem:[#allocation15_spill] sm:$0xff] %v11695_v51  ;;  %v3105_v25 = vrot.slane %v14193_v37, %v10383_v63  ;;  %v6157_v48 = vrot.slane %v14191_v55, %v10371_v13  ;;  %v6164_v24 = vrot.slane %v14191_v55, %v10374_v40 }
 0x154   :  { %14189 = vst [vmem:[#allocation23_spill] sm:$0xff] %v11702_v28  ;;  %14190 = vst [vmem:[#allocation49_spill] sm:$0xff] %v11704_v5  ;;  %v4681_v32 = vrot.slane %v14194_v52, %v10361_v38  ;;  %v4688_v19 = vrot.slane %v14194_v52, %v10368_v47  ;;  %v4695_v44 = vrot.slane %v14194_v52, %v10371_v13  ;;  %3669 = vperm.xlu0 %9205, %v11573_v60   ;;  %v14199_v60 = vld [vmem:[#allocation14_spill] sm:$0xff] }
 0x155   :  { %v4702_v4 = vrot.slane %v14194_v52, %v10374_v40  ;;  %14195 = vst [vmem:[#allocation10_spill] sm:$0xff] %v11734_v21  ;;  %v7190_v50 = vrot.slane %v11449_v17, %v10383_v63  ;;  %v7197_v20 = vrot.slane %v11457_v15, %v10383_v63  ;;  %v2799_v8 = vrot.slane %v14196_v45, %v10361_v38  ;;  %v14200_v52 = vld [vmem:[#allocation35_spill] sm:$0xff]  ;;  %v11773_v18 = vpop.xlane.xlu1 %4043 }
 0x156   :  { %v2806_v43 = vrot.slane %v14196_v45, %v10368_v47  ;;  %v2813_v1 = vrot.slane %v14196_v45, %v10371_v13  ;;  %v3353_v33 = vrot.slane %v14197_v3, %v10383_v63  ;;  %v2820_v17 = vrot.slane %v14196_v45, %v10374_v40  ;;  %14201 = vst [vmem:[#allocation48_spill] sm:$0xff] %v11773_v18 }
 0x157   :  { %v6591_v15 = vrot.slane %v14198_v16, %v10361_v38  ;;  %v6598_v7 = vrot.slane %v14198_v16, %v10368_v47  ;;  %v6605_v30 = vrot.slane %v14198_v16, %v10371_v13  ;;  %v6612_v23 = vrot.slane %v14198_v16, %v10374_v40  ;;  %1753 = vperm.xlu1 %9206, %v11593_v29  }
 0x158   :  { %v3360_v55 = vrot.slane %v14199_v60, %v10383_v63  ;;  %v3387_v0 = vrot.slane %v11445_v42, %v10383_v63  ;;  %v3394_v37 = vrot.slane %v11447_v36, %v10383_v63  ;;  %v4709_v45 = vrot.slane %v14200_v52, %v10361_v38  ;;  %v11776_v42 = vpop.xlane.xlu0 %4011  ;;  %v14203_v36 = vld [vmem:[#allocation40_spill] sm:$0xff]  ;;  %5531 = vperm.xlu0 %9205, %v11595_v35  }
 0x159   :  { %v4716_v3 = vrot.slane %v14200_v52, %v10368_v47  ;;  %v4723_v9 = vrot.slane %v14200_v52, %v10371_v13  ;;  %v4730_v16 = vrot.slane %v14200_v52, %v10374_v40  ;;  %14202 = vst [vmem:[#allocation60_spill] sm:$0xff] %v11776_v42  ;;  %v4261_v60 = vrot.slane %v14203_v36, %v10361_v38 }
 0x15a   :  { %v4268_v51 = vrot.slane %v14203_v36, %v10368_v47  ;;  %v4275_v54 = vrot.slane %v14203_v36, %v10371_v13  ;;  %v4282_v10 = vrot.slane %v14203_v36, %v10374_v40  ;;  %v11787_v52 = vcombine.low %v6143_v27, %v6150_v57  ;;  %v11807_v27 = vpop.xlane.xlu1 %5953 }
 0x15b   :  { %v11789_v11 = vcombine.low %v6157_v48, %v6164_v24  ;;  %v11791_v29 = vcombine.low %v4681_v32, %v4688_v19  ;;  %v3106_v5 = vcombine.low %v3098_v49, %v3105_v25  ;;  %v11793_v28 = vcombine.low %v2799_v8, %v2806_v43  ;;  %1759 = vperm.xlu1 %9206, %v11679_v39   ;;  %v14210_v39 = vld [vmem:[#allocation80_spill] sm:$0xff] }
 0x15c   :  { %14204 = vst [vmem:[#allocation61_spill] sm:$0xff] %v11787_v52  ;;  %v11795_v42 = vcombine.low %v2813_v1, %v2820_v17  ;;  %v11797_v18 = vcombine.low %v4695_v44, %v4702_v4  ;;  %v7198_v53 = vcombine.low %v7190_v50, %v7197_v20  ;;  %v11799_v41 = vcombine.low %v4709_v45, %v4716_v3  ;;  %v11810_v57 = vpop.xlane.xlu0 %5921  ;;  %v14209_v44 = vld [vmem:[#allocation9_spill] sm:$0xff] }
 0x15d   :  { %14205 = vst [vmem:[#allocation50_spill] sm:$0xff] %v11789_v11  ;;  %v11801_v21 = vcombine.low %v4723_v9, %v4730_v16  ;;  %v11803_v36 = vcombine.low %v6591_v15, %v6598_v7  ;;  %v11805_v35 = vcombine.low %v6605_v30, %v6612_v23  ;;  %v11812_v49 = vcombine.low %v4261_v60, %v4268_v51  ;;  %v14208_v9 = vld [vmem:[#allocation56_spill] sm:$0xff] }
 0x15e   :  { %v11814_v25 = vcombine.low %v4275_v54, %v4282_v10  ;;  %5579 = vperm.xlu0 %9205, %v11687_v34   ;;  %v3361_v48 = vcombine.low %v3353_v33, %v3360_v55  ;;  %v3395_v24 = vcombine.low %v3387_v0, %v3394_v37  ;;  %v6619_v32 = vrot.slane %v14208_v9, %v10361_v38  ;;  %v14211_v54 = vld [vmem:[#allocation57_spill] sm:$0xff]  ;;  %v11837_v1 = vpop.xlane.xlu1 %4013 }
 0x15f   :  { %14206 = vst [vmem:[#allocation22_spill] sm:$0xff] %v11812_v49  ;;  %v6626_v19 = vrot.slane %v14208_v9, %v10368_v47  ;;  %v4991_v4 = vrot.slane %v14209_v44, %v10383_v63  ;;  %v4998_v50 = vrot.slane %v14210_v39, %v10383_v63  ;;  %v6633_v10 = vrot.slane %v14208_v9, %v10371_v13  ;;  %v14216_v39 = vld [vmem:[#allocation82_spill] sm:$0xff] }
 0x160   :  { %14207 = vst [vmem:[#allocation43_spill] sm:$0xff] %v11814_v25  ;;  %v6640_v34 = vrot.slane %v14208_v9, %v10374_v40  ;;  %v6171_v51 = vrot.slane %v14211_v54, %v10361_v38  ;;  %v6178_v20 = vrot.slane %v14211_v54, %v10368_v47  ;;  %v6185_v8 = vrot.slane %v14211_v54, %v10371_v13  ;;  %v11840_v33 = vpop.xlane.xlu0 %2135 }
 0x161   :  { %v6192_v43 = vrot.slane %v14211_v54, %v10374_v40  ;;  %1765 = vperm.xlu1 %9206, %v11707_v26   ;;  %v5297_v17 = vrot.slane %v11453_v46, %v10383_v63  ;;  %v5304_v15 = vrot.slane %v11455_v12, %v10383_v63  ;;  %v4289_v7 = vrot.slane %v11469_v58, %v10361_v38  ;;  %v14217_v54 = vld [vmem:[#allocation52_spill] sm:$0xff] }
 0x162   :  { %v4296_v30 = vrot.slane %v11469_v58, %v10368_v47  ;;  %v4303_v23 = vrot.slane %v11469_v58, %v10371_v13  ;;  %v4310_v26 = vrot.slane %v11469_v58, %v10374_v40  ;;  %7441 = vperm.xlu0 %9205, %v11709_v56   ;;  %v2827_v46 = vrot.slane %v11472_v14, %v10361_v38 }
 0x163   :  { %v2834_v12 = vrot.slane %v11472_v14, %v10368_v47  ;;  %v2841_v55 = vrot.slane %v11472_v14, %v10371_v13  ;;  %v2848_v0 = vrot.slane %v11472_v14, %v10374_v40  ;;  %v11863_v37 = vcombine.low %v6619_v32, %v6626_v19  ;;  %v11877_v14 = vpop.xlane.xlu1 %5923 }
 0x164   :  { %v11865_v45 = vcombine.low %v6633_v10, %v6640_v34  ;;  %v11867_v3 = vcombine.low %v6171_v51, %v6178_v20  ;;  %v4999_v58 = vcombine.low %v4991_v4, %v4998_v50  ;;  %v6199_v56 = vrot.slane %v11503_v31, %v10361_v38  ;;  %v11879_v32 = vpop.xlane.xlu0 %4045 }
 0x165   :  { %v6206_v16 = vrot.slane %v11503_v31, %v10368_v47  ;;  %v6213_v60 = vrot.slane %v11503_v31, %v10371_v13  ;;  %v6220_v9 = vrot.slane %v11503_v31, %v10374_v40  ;;  %3621 = vperm.xlu1 %9206, %v3106_v5   ;;  %v11881_v19 = vcombine.low %v4289_v7, %v4296_v30 }
 0x166   :  { %14212 = vst [vmem:[#allocation58_spill] sm:$0xff] %v11867_v3  ;;  %v11883_v44 = vcombine.low %v4303_v23, %v4310_v26  ;;  %v11885_v4 = vcombine.low %v6185_v8, %v6192_v43  ;;  %7489 = vperm.xlu0 %9205, %v7198_v53   ;;  %v5263_v50 = vrot.slane %v14216_v39, %v10383_v63  ;;  %v14218_v8 = vld [vmem:[#allocation20_spill] sm:$0xff]  ;;  %v14219_v43 = vld [vmem:[#allocation11_spill] sm:$0xff] }
 0x167   :  { %14213 = vst [vmem:[#allocation14_spill] sm:$0xff] %v11881_v19  ;;  %v11889_v10 = vcombine.low %v2827_v46, %v2834_v12  ;;  %v11891_v34 = vcombine.low %v2841_v55, %v2848_v0  ;;  %v5305_v31 = vcombine.low %v5297_v17, %v5304_v15  ;;  %v5270_v5 = vrot.slane %v14217_v54, %v10383_v63  ;;  %v11911_v26 = vpop.xlane.xlu1 %2137  ;;  %v14222_v12 = vld [vmem:[#allocation12_spill] sm:$0xff]  ;;  %v14225_v39 = vld [vmem:[#allocation51_spill] sm:$0xff] }
 0x168   :  { %14214 = vst [vmem:[#allocation35_spill] sm:$0xff] %v11883_v44  ;;  %14215 = vst [vmem:[#allocation40_spill] sm:$0xff] %v11885_v4  ;;  %v4737_v51 = vrot.slane %v11506_v6, %v10361_v38  ;;  %v4744_v20 = vrot.slane %v11506_v6, %v10368_v47  ;;  %v7207_v53 = vrot.slane %v14218_v8, %v10383_v63  ;;  %v11913_v46 = vpop.xlane.xlu0 %5955 }
 0x169   :  { %v7214_v7 = vrot.slane %v14219_v43, %v10383_v63  ;;  %v11903_v30 = vcombine.low %v6199_v56, %v6206_v16  ;;  %v11905_v23 = vcombine.low %v6213_v60, %v6220_v9  ;;  %v4751_v17 = vrot.slane %v11506_v6, %v10371_v13  ;;  %3666 = vperm.xlu1 %9206, %v3361_v48   ;;  %v14223_v56 = vld [vmem:[#allocation39_spill] sm:$0xff]  ;;  %v14224_v60 = vld [vmem:[#allocation53_spill] sm:$0xff] }
 0x16a   :  { %v4758_v15 = vrot.slane %v11506_v6, %v10374_v40  ;;  %v2855_v55 = vrot.slane %v14222_v12, %v10361_v38  ;;  %v2862_v0 = vrot.slane %v14222_v12, %v10368_v47  ;;  %3672 = vperm.xlu0 %9205, %v3395_v24   ;;  %v6901_v16 = vrot.slane %v14223_v56, %v10383_v63 }
 0x16b   :  { %14220 = vst [vmem:[#allocation56_spill] sm:$0xff] %v11903_v30  ;;  %14221 = vst [vmem:[#allocation9_spill] sm:$0xff] %v11905_v23  ;;  %v6908_v9 = vrot.slane %v14224_v60, %v10383_v63  ;;  %v2869_v6 = vrot.slane %v14222_v12, %v10371_v13  ;;  %v2876_v48 = vrot.slane %v14222_v12, %v10374_v40  ;;  %v14226_v23 = vld [vmem:[#allocation93_spill] sm:$0xff]  ;;  %v11943_v4 = vpop.xlane.xlu1 %4047 }
 0x16c   :  { %v6647_v54 = vrot.slane %v14225_v39, %v10361_v38  ;;  %v6654_v8 = vrot.slane %v14225_v39, %v10368_v47  ;;  %v6661_v24 = vrot.slane %v14225_v39, %v10371_v13  ;;  %v6668_v43 = vrot.slane %v14225_v39, %v10374_v40  ;;  %v11945_v3 = vpop.xlane.xlu0 %4015 }
 0x16d   :  { %v5271_v56 = vcombine.low %v5263_v50, %v5270_v5  ;;  %v7215_v60 = vcombine.low %v7207_v53, %v7214_v7  ;;  %v4765_v30 = vrot.slane %v14226_v23, %v10361_v38  ;;  %v4772_v12 = vrot.slane %v14226_v23, %v10368_v47  ;;  %5528 = vperm.xlu1 %9206, %v4999_v58   ;;  %v14229_v5 = vld [vmem:[#allocation41_spill] sm:$0xff]  ;;  %v14230_v7 = vld [vmem:[#allocation88_spill] sm:$0xff] }
 0x16e   :  { %v4779_v44 = vrot.slane %v14226_v23, %v10371_v13  ;;  %v4786_v19 = vrot.slane %v14226_v23, %v10374_v40  ;;  %v11947_v39 = vcombine.low %v4737_v51, %v4744_v20  ;;  %v11949_v50 = vcombine.low %v4751_v17, %v4758_v15  ;;  %5582 = vperm.xlu0 %9205, %v5305_v31   ;;  %v14235_v51 = vld [vmem:[#allocation81_spill] sm:$0xff]  ;;  %v14236_v17 = vld [vmem:[#allocation36_spill] sm:$0xff] }
 0x16f   :  { %v3404_v53 = vrot.slane %v14229_v5, %v10383_v63  ;;  %v3411_v25 = vrot.slane %v14230_v7, %v10383_v63  ;;  %v11955_v49 = vcombine.low %v2855_v55, %v2862_v0  ;;  %v11957_v11 = vcombine.low %v2869_v6, %v2876_v48 }
 0x170   :  { %14227 = vst [vmem:[#allocation80_spill] sm:$0xff] %v11947_v39  ;;  %14228 = vst [vmem:[#allocation57_spill] sm:$0xff] %v11949_v50  ;;  %v11959_v23 = vcombine.low %v6647_v54, %v6654_v8  ;;  %v6909_v58 = vcombine.low %v6901_v16, %v6908_v9  ;;  %v11961_v52 = vcombine.low %v6661_v24, %v6668_v43  ;;  %v11977_v9 = vpop.xlane.xlu1 %5957  ;;  %v11979_v6 = vpop.xlane.xlu0 %5925  ;;  %v14240_v54 = vld [vmem:[#allocation18_spill] sm:$0xff]  ;;  %v14243_v43 = vld [vmem:[#allocation7_spill] sm:$0xff] }
 0x171   :  { %14231 = vst [vmem:[#allocation82_spill] sm:$0xff] %v11955_v49  ;;  %14232 = vst [vmem:[#allocation52_spill] sm:$0xff] %v11957_v11  ;;  %v4317_v20 = vrot.slane %v14235_v51, %v10361_v38  ;;  %v4324_v31 = vrot.slane %v14235_v51, %v10368_v47  ;;  %v7173_v15 = vrot.slane %v14236_v17, %v10383_v63  ;;  %5576 = vperm.xlu1 %9206, %v5271_v56   ;;  %v14250_v49 = vld [vmem:[#allocation38_spill] sm:$0xff] }
 0x172   :  { %14233 = vst [vmem:[#allocation20_spill] sm:$0xff] %v11959_v23  ;;  %14234 = vst [vmem:[#allocation11_spill] sm:$0xff] %v11961_v52  ;;  %v11969_v5 = vcombine.low %v4765_v30, %v4772_v12  ;;  %v11971_v55 = vcombine.low %v4779_v44, %v4786_v19  ;;  %v4331_v0 = vrot.slane %v14235_v51, %v10371_v13  ;;  %7492 = vperm.xlu0 %9205, %v7215_v60   ;;  %v14241_v30 = vld [vmem:[#allocation91_spill] sm:$0xff]  ;;  %v14242_v44 = vld [vmem:[#allocation92_spill] sm:$0xff] }
 0x173   :  { %v4338_v16 = vrot.slane %v14235_v51, %v10374_v40  ;;  %14239 = vst [vmem:[#allocation53_spill] sm:$0xff] %v11979_v6  ;;  %v3412_v48 = vcombine.low %v3404_v53, %v3411_v25  ;;  %v7180_v8 = vrot.slane %v14240_v54, %v10383_v63  ;;  %v5314_v19 = vrot.slane %v14241_v30, %v10383_v63  ;;  %v14244_v60 = vld [vmem:[#allocation54_spill] sm:$0xff]  ;;  %v14251_v23 = vld [vmem:[#allocation55_spill] sm:$0xff] }
 0x174   :  { %14237 = vst [vmem:[#allocation12_spill] sm:$0xff] %v11969_v5  ;;  %14238 = vst [vmem:[#allocation39_spill] sm:$0xff] %v11971_v55  ;;  %v5321_v24 = vrot.slane %v14242_v44, %v10383_v63  ;;  %v6675_v12 = vrot.slane %v14243_v43, %v10361_v38  ;;  %v6682_v7 = vrot.slane %v14243_v43, %v10368_v47  ;;  %v12007_v55 = vpop.xlane.xlu1 %4017  ;;  %v14249_v5 = vld [vmem:[#allocation26_spill] sm:$0xff] }
 0x175   :  { %v6689_v56 = vrot.slane %v14243_v43, %v10371_v13  ;;  %v6696_v25 = vrot.slane %v14243_v43, %v10374_v40  ;;  %v6227_v53 = vrot.slane %v14244_v60, %v10361_v38  ;;  %v6234_v51 = vrot.slane %v14244_v60, %v10368_v47  ;;  %14247 = vst [vmem:[#allocation41_spill] sm:$0xff] %v12007_v55  ;;  %v12009_v43 = vpop.xlane.xlu0 %2139  ;;  %v14255_v55 = vld [vmem:[#allocation95_spill] sm:$0xff]  ;;  %v14256_v6 = vld [vmem:[#allocation42_spill] sm:$0xff] }
 0x176   :  { %v6241_v17 = vrot.slane %v14244_v60, %v10371_v13  ;;  %v6248_v54 = vrot.slane %v14244_v60, %v10374_v40  ;;  %v12003_v30 = vcombine.low %v4317_v20, %v4324_v31  ;;  %v12005_v44 = vcombine.low %v4331_v0, %v4338_v16  ;;  %7438 = vperm.xlu1 %9206, %v6909_v58  }
 0x177   :  { %14248 = vst [vmem:[#allocation88_spill] sm:$0xff] %v12009_v43  ;;  %v3115_v11 = vrot.slane %v14249_v5, %v10383_v63  ;;  %v3122_v52 = vrot.slane %v14250_v49, %v10383_v63  ;;  %v4345_v50 = vrot.slane %v14251_v23, %v10361_v38  ;;  %v4352_v20 = vrot.slane %v14251_v23, %v10368_v47 }
 0x178   :  { %14245 = vst [vmem:[#allocation51_spill] sm:$0xff] %v12003_v30  ;;  %14246 = vst [vmem:[#allocation93_spill] sm:$0xff] %v12005_v44  ;;  %v4359_v31 = vrot.slane %v14251_v23, %v10371_v13  ;;  %v4366_v58 = vrot.slane %v14251_v23, %v10374_v40  ;;  %3675 = vperm.xlu0 %9205, %v3412_v48   ;;  %v12023_v0 = vcombine.low %v6675_v12, %v6682_v7  ;;  %v14254_v30 = vld [vmem:[#allocation94_spill] sm:$0xff] }
 0x179   :  { %v12025_v16 = vcombine.low %v6689_v56, %v6696_v25  ;;  %v7181_v5 = vcombine.low %v7173_v15, %v7180_v8  ;;  %v5322_v60 = vcombine.low %v5314_v19, %v5321_v24  ;;  %v12027_v49 = vcombine.low %v6227_v53, %v6234_v51  ;;  %v12043_v19 = vpop.xlane.xlu1 %5927  ;;  %v12045_v24 = vpop.xlane.xlu0 %4049  ;;  %v14259_v56 = vld [vmem:[#allocation83_spill] sm:$0xff] }
 0x17a   :  { %v12029_v44 = vcombine.low %v6241_v17, %v6248_v54  ;;  %v7224_v43 = vrot.slane %v14254_v30, %v10383_v63  ;;  %v7231_v39 = vrot.slane %v14255_v55, %v10383_v63  ;;  %v2883_v23 = vrot.slane %v14256_v6, %v10361_v38  ;;  %v14260_v17 = vld [vmem:[#allocation84_spill] sm:$0xff] }
 0x17b   :  { %14252 = vst [vmem:[#allocation81_spill] sm:$0xff] %v12027_v49  ;;  %v2890_v48 = vrot.slane %v14256_v6, %v10368_v47  ;;  %v2897_v15 = vrot.slane %v14256_v6, %v10371_v13  ;;  %v2904_v8 = vrot.slane %v14256_v6, %v10374_v40  ;;  %7486 = vperm.xlu1 %9206, %v7181_v5  }
 0x17c   :  { %14253 = vst [vmem:[#allocation36_spill] sm:$0xff] %v12029_v44  ;;  %v12047_v12 = vcombine.low %v4345_v50, %v4352_v20  ;;  %v12049_v55 = vcombine.low %v4359_v31, %v4366_v58  ;;  %5585 = vperm.xlu0 %9205, %v5322_v60   ;;  %v3123_v7 = vcombine.low %v3115_v11, %v3122_v52  ;;  %v14261_v11 = vld [vmem:[#allocation89_spill] sm:$0xff]  ;;  %v14262_v20 = vld [vmem:[#allocation90_spill] sm:$0xff] }
 0x17d   :  { %v5025_v25 = vrot.slane %v14259_v56, %v10383_v63  ;;  %v6255_v53 = vrot.slane %v11697_v22, %v10361_v38  ;;  %v6262_v6 = vrot.slane %v11697_v22, %v10368_v47  ;;  %v6269_v51 = vrot.slane %v11697_v22, %v10371_v13  ;;  %v14266_v44 = vld [vmem:[#allocation86_spill] sm:$0xff] }
 0x17e   :  { %14257 = vst [vmem:[#allocation18_spill] sm:$0xff] %v12047_v12  ;;  %14258 = vst [vmem:[#allocation91_spill] sm:$0xff] %v12049_v55  ;;  %v5032_v50 = vrot.slane %v14260_v17, %v10383_v63  ;;  %v6276_v54 = vrot.slane %v11697_v22, %v10374_v40  ;;  %v7232_v30 = vcombine.low %v7224_v43, %v7231_v39  ;;  %v12075_v22 = vpop.xlane.xlu1 %2141  ;;  %v12077_v39 = vpop.xlane.xlu0 %5959  ;;  %v14265_v12 = vld [vmem:[#allocation85_spill] sm:$0xff] }
 0x17f   :  { %v3421_v52 = vrot.slane %v14261_v11, %v10383_v63  ;;  %v3428_v31 = vrot.slane %v14262_v20, %v10383_v63  ;;  %v4793_v58 = vrot.slane %v11700_v2, %v10361_v38  ;;  %v4800_v5 = vrot.slane %v11700_v2, %v10368_v47  ;;  %3624 = vperm.xlu1 %9206, %v3123_v7  }
 0x180   :  { %v4807_v60 = vrot.slane %v11700_v2, %v10371_v13  ;;  %v4814_v56 = vrot.slane %v11700_v2, %v10374_v40  ;;  %v12079_v43 = vcombine.low %v2883_v23, %v2890_v48  ;;  %v12081_v17 = vcombine.low %v2897_v15, %v2904_v8  ;;  %7495 = vperm.xlu0 %9205, %v7232_v30  }
 0x181   :  { %v2911_v11 = vrot.slane %v11731_v59, %v10361_v38  ;;  %v2918_v20 = vrot.slane %v11731_v59, %v10368_v47  ;;  %v2925_v55 = vrot.slane %v11731_v59, %v10371_v13  ;;  %v5033_v2 = vcombine.low %v5025_v25, %v5032_v50 }
 0x182   :  { %14263 = vst [vmem:[#allocation92_spill] sm:$0xff] %v12079_v43  ;;  %14264 = vst [vmem:[#allocation7_spill] sm:$0xff] %v12081_v17  ;;  %v6935_v7 = vrot.slane %v14265_v12, %v10383_v63  ;;  %v6942_v23 = vrot.slane %v14266_v44, %v10383_v63  ;;  %v2932_v48 = vrot.slane %v11731_v59, %v10374_v40  ;;  %v12107_v50 = vpop.xlane.xlu1 %4051  ;;  %v12109_v44 = vpop.xlane.xlu0 %4019  ;;  %v14273_v59 = vld [vmem:[#allocation10_spill] sm:$0xff] }
 0x183   :  { %v3429_v15 = vcombine.low %v3421_v52, %v3428_v31  ;;  %v5331_v8 = vrot.slane %v11673_v61, %v10383_v63  ;;  %v5338_v30 = vrot.slane %v11675_v62, %v10383_v63  ;;  %v12099_v49 = vcombine.low %v6255_v53, %v6262_v6  ;;  %14271 = vst [vmem:[#allocation94_spill] sm:$0xff] %v12107_v50  ;;  %v14279_v50 = vld [vmem:[#allocation76_spill] sm:$0xff] }
 0x184   :  { %v12101_v17 = vcombine.low %v6269_v51, %v6276_v54  ;;  %v12103_v25 = vcombine.low %v4793_v58, %v4800_v5  ;;  %v12105_v12 = vcombine.low %v4807_v60, %v4814_v56  ;;  %5534 = vperm.xlu1 %9206, %v5033_v2   ;;  %14272 = vst [vmem:[#allocation95_spill] sm:$0xff] %v12109_v44  ;;  %v14275_v54 = vld [vmem:[#allocation62_spill] sm:$0xff]  ;;  %v14276_v58 = vld [vmem:[#allocation63_spill] sm:$0xff]  ;;  %v14278_v2 = vld [vmem:[#allocation8_spill] sm:$0xff] }
 0x185   :  { %14267 = vst [vmem:[#allocation54_spill] sm:$0xff] %v12099_v49  ;;  %v6703_v52 = vrot.slane %v14273_v59, %v10361_v38  ;;  %v6710_v61 = vrot.slane %v14273_v59, %v10368_v47  ;;  %v6717_v62 = vrot.slane %v14273_v59, %v10371_v13  ;;  %v6724_v53 = vrot.slane %v14273_v59, %v10374_v40  ;;  %v14289_v49 = vld [vmem:[#allocation49_spill] sm:$0xff] }
 0x186   :  { %14268 = vst [vmem:[#allocation26_spill] sm:$0xff] %v12101_v17  ;;  %14269 = vst [vmem:[#allocation38_spill] sm:$0xff] %v12103_v25  ;;  %3678 = vperm.xlu0 %9205, %v3429_v15   ;;  %v12119_v6 = vcombine.low %v2911_v11, %v2918_v20  ;;  %v6943_v51 = vcombine.low %v6935_v7, %v6942_v23  ;;  %v3132_v31 = vrot.slane %v14275_v54, %v10383_v63  ;;  %v14280_v15 = vld [vmem:[#allocation48_spill] sm:$0xff]  ;;  %v12139_v23 = vpop.xlane.xlu1 %5961 }
 0x187   :  { %14270 = vst [vmem:[#allocation55_spill] sm:$0xff] %v12105_v12  ;;  %v3139_v5 = vrot.slane %v14276_v58, %v10383_v63  ;;  %v12125_v60 = vcombine.low %v2925_v55, %v2932_v48  ;;  %v5339_v56 = vcombine.low %v5331_v8, %v5338_v30  ;;  %v7241_v44 = vrot.slane %v14278_v2, %v10383_v63  ;;  %v12141_v48 = vpop.xlane.xlu0 %5929 }
 0x188   :  { %14274 = vst [vmem:[#allocation42_spill] sm:$0xff] %v12119_v6  ;;  %v7248_v17 = vrot.slane %v14279_v50, %v10383_v63  ;;  %v4821_v11 = vrot.slane %v14280_v15, %v10361_v38  ;;  %v4828_v20 = vrot.slane %v14280_v15, %v10368_v47  ;;  %v4835_v7 = vrot.slane %v14280_v15, %v10371_v13  ;;  %v14285_v50 = vld [vmem:[#allocation60_spill] sm:$0xff] }
 0x189   :  { %14277 = vst [vmem:[#allocation83_spill] sm:$0xff] %v12125_v60  ;;  %v4842_v55 = vrot.slane %v14280_v15, %v10374_v40  ;;  %14281 = vst [vmem:[#allocation84_spill] sm:$0xff] %v12139_v23  ;;  %7444 = vperm.xlu1 %9206, %v6943_v51   ;;  %v12143_v8 = vcombine.low %v6703_v52, %v6710_v61  ;;  %v12145_v30 = vcombine.low %v6717_v62, %v6724_v53  ;;  %v14286_v15 = vld [vmem:[#allocation16_spill] sm:$0xff]  ;;  %v14288_v53 = vld [vmem:[#allocation23_spill] sm:$0xff] }
 0x18a   :  { %14282 = vst [vmem:[#allocation89_spill] sm:$0xff] %v12141_v48  ;;  %v4373_v59 = vrot.slane %v14285_v50, %v10361_v38  ;;  %v4380_v54 = vrot.slane %v14285_v50, %v10368_v47  ;;  %5588 = vperm.xlu0 %9205, %v5339_v56   ;;  %v4387_v58 = vrot.slane %v14285_v50, %v10371_v13  ;;  %v14287_v48 = vld [vmem:[#allocation24_spill] sm:$0xff] }
 0x18b   :  { %14283 = vst [vmem:[#allocation90_spill] sm:$0xff] %v12143_v8  ;;  %14284 = vst [vmem:[#allocation85_spill] sm:$0xff] %v12145_v30  ;;  %v3140_v2 = vcombine.low %v3132_v31, %v3139_v5  ;;  %v5042_v51 = vrot.slane %v14286_v15, %v10383_v63  ;;  %v5049_v52 = vrot.slane %v14287_v48, %v10383_v63  ;;  %v12171_v48 = vpop.xlane.xlu1 %2143  ;;  %v14295_v15 = vld [vmem:[#allocation87_spill] sm:$0xff] }
 0x18c   :  { %v4394_v61 = vrot.slane %v14285_v50, %v10374_v40  ;;  %v7249_v62 = vcombine.low %v7241_v44, %v7248_v17  ;;  %v3438_v23 = vrot.slane %v14288_v53, %v10383_v63  ;;  %v3445_v56 = vrot.slane %v14289_v49, %v10383_v63  ;;  %14292 = vst [vmem:[#allocation62_spill] sm:$0xff] %v12171_v48  ;;  %v12173_v17 = vpop.xlane.xlu0 %2111  ;;  %v14294_v50 = vld [vmem:[#allocation77_spill] sm:$0xff] }
 0x18d   :  { %v12163_v60 = vcombine.low %v4821_v11, %v4828_v20  ;;  %v12165_v6 = vcombine.low %v4835_v7, %v4842_v55  ;;  %v6731_v31 = vrot.slane %v11807_v27, %v10361_v38  ;;  %v6738_v5 = vrot.slane %v11807_v27, %v10368_v47  ;;  %3627 = vperm.xlu1 %9206, %v3140_v2  }
 0x18e   :  { %14293 = vst [vmem:[#allocation63_spill] sm:$0xff] %v12173_v17  ;;  %v6745_v44 = vrot.slane %v11807_v27, %v10371_v13  ;;  %v6752_v49 = vrot.slane %v11807_v27, %v10374_v40  ;;  %v6283_v11 = vrot.slane %v11810_v57, %v10361_v38  ;;  %v6290_v20 = vrot.slane %v11810_v57, %v10368_v47 }
 0x18f   :  { %14290 = vst [vmem:[#allocation86_spill] sm:$0xff] %v12163_v60  ;;  %14291 = vst [vmem:[#allocation10_spill] sm:$0xff] %v12165_v6  ;;  %7498 = vperm.xlu0 %9205, %v7249_v62   ;;  %v6297_v7 = vrot.slane %v11810_v57, %v10371_v13  ;;  %v5050_v55 = vcombine.low %v5042_v51, %v5049_v52  ;;  %v6952_v2 = vrot.slane %v14294_v50, %v10383_v63 }
 0x190   :  { %v6959_v53 = vrot.slane %v14295_v15, %v10383_v63  ;;  %v6304_v27 = vrot.slane %v11810_v57, %v10374_v40  ;;  %v3446_v17 = vcombine.low %v3438_v23, %v3445_v56  ;;  %v5348_v48 = vrot.slane %v11791_v29, %v10383_v63  ;;  %v12203_v57 = vpop.xlane.xlu1 %4053  ;;  %v12205_v23 = vpop.xlane.xlu0 %4021 }
 0x191   :  { %v5355_v62 = vrot.slane %v11797_v18, %v10383_v63  ;;  %v4401_v6 = vrot.slane %v11837_v1, %v10361_v38  ;;  %v4408_v51 = vrot.slane %v11837_v1, %v10368_v47  ;;  %v4415_v52 = vrot.slane %v11837_v1, %v10371_v13  ;;  %14296 = vst [vmem:[#allocation8_spill] sm:$0xff] %v12203_v57 }
 0x192   :  { %v4422_v50 = vrot.slane %v11837_v1, %v10374_v40  ;;  %5537 = vperm.xlu1 %9206, %v5050_v55   ;;  %14297 = vst [vmem:[#allocation76_spill] sm:$0xff] %v12205_v23  ;;  %v2939_v18 = vrot.slane %v11840_v33, %v10361_v38  ;;  %v2946_v29 = vrot.slane %v11840_v33, %v10368_v47  ;;  %v14298_v55 = vld [vmem:[#allocation6_spill] sm:$0xff]  ;;  %v14299_v23 = vld [vmem:[#allocation64_spill] sm:$0xff] }
 0x193   :  { %v2953_v56 = vrot.slane %v11840_v33, %v10371_v13  ;;  %v2960_v15 = vrot.slane %v11840_v33, %v10374_v40  ;;  %3681 = vperm.xlu0 %9205, %v3446_v17   ;;  %v12215_v60 = vcombine.low %v4373_v59, %v4380_v54  ;;  %v6960_v1 = vcombine.low %v6952_v2, %v6959_v53 }
 0x194   :  { %v3149_v57 = vrot.slane %v14298_v55, %v10383_v63  ;;  %v3156_v30 = vrot.slane %v14299_v23, %v10383_v63  ;;  %v12221_v8 = vcombine.low %v4387_v58, %v4394_v61  ;;  %v5356_v12 = vcombine.low %v5348_v48, %v5355_v62  ;;  %v12235_v2 = vpop.xlane.xlu1 %5963 }
 0x195   :  { %v7258_v25 = vrot.slane %v11803_v36, %v10383_v63  ;;  %v7265_v43 = vrot.slane %v11805_v35, %v10383_v63  ;;  %v12227_v33 = vcombine.low %v6731_v31, %v6738_v5  ;;  %v12229_v59 = vcombine.low %v6745_v44, %v6752_v49  ;;  %14302 = vst [vmem:[#allocation16_spill] sm:$0xff] %v12235_v2  ;;  %v12247_v5 = vpop.xlane.xlu0 %5931  ;;  %v14306_v44 = vld [vmem:[#allocation17_spill] sm:$0xff] }
 0x196   :  { %v12231_v54 = vcombine.low %v6283_v11, %v6290_v20  ;;  %v12233_v17 = vcombine.low %v6297_v7, %v6304_v27  ;;  %7447 = vperm.xlu1 %9206, %v6960_v1   ;;  %v12237_v58 = vcombine.low %v4401_v6, %v4408_v51  ;;  %v12239_v61 = vcombine.low %v4415_v52, %v4422_v50  ;;  %v14307_v11 = vld [vmem:[#allocation19_spill] sm:$0xff] }
 0x197   :  { %v12241_v48 = vcombine.low %v2939_v18, %v2946_v29  ;;  %v12243_v36 = vcombine.low %v2953_v56, %v2960_v15  ;;  %5591 = vperm.xlu0 %9205, %v5356_v12   ;;  %v6311_v35 = vrot.slane %v11877_v14, %v10361_v38  ;;  %v3157_v31 = vcombine.low %v3149_v57, %v3156_v30  ;;  %v14308_v57 = vld [vmem:[#allocation59_spill] sm:$0xff] }
 0x198   :  { %14300 = vst [vmem:[#allocation48_spill] sm:$0xff] %v12231_v54  ;;  %14301 = vst [vmem:[#allocation60_spill] sm:$0xff] %v12233_v17  ;;  %v5059_v49 = vrot.slane %v14306_v44, %v10383_v63  ;;  %v5066_v6 = vrot.slane %v14307_v11, %v10383_v63  ;;  %v6318_v20 = vrot.slane %v11877_v14, %v10368_v47  ;;  %v12267_v52 = vpop.permute.xlu1 %1678  ;;  %v14309_v18 = vld [vmem:[#allocation15_spill] sm:$0xff]  ;;  %v14347_v54 = vld [vmem:[#allocation58_spill] sm:$0xff] }
 0x199   :  { %14303 = vst [vmem:[#allocation24_spill] sm:$0xff] %v12237_v58  ;;  %14304 = vst [vmem:[#allocation23_spill] sm:$0xff] %v12239_v61  ;;  %v7266_v7 = vcombine.low %v7258_v25, %v7265_v43  ;;  %v3455_v53 = vrot.slane %v11793_v28, %v10383_v63  ;;  %v3462_v12 = vrot.slane %v11795_v42, %v10383_v63  ;;  %v12299_v11 = vpop.permute.xlu0 %1675  ;;  %v14323_v61 = vld [vmem:[#allocation57_spill] sm:$0xff] }
 0x19a   :  { %14305 = vst [vmem:[#allocation49_spill] sm:$0xff] %v12247_v5  ;;  %v6325_v30 = vrot.slane %v11877_v14, %v10371_v13  ;;  %v6332_v27 = vrot.slane %v11877_v14, %v10374_v40  ;;  %v4849_v62 = vrot.slane %v11879_v32, %v10361_v38  ;;  %v4856_v51 = vrot.slane %v11879_v32, %v10368_v47 }
 0x19b   :  { %3630 = vperm.xlu1 %9206, %v3157_v31   ;;  %v2967_v28 = vrot.slane %v11911_v26, %v10361_v38  ;;  %v2974_v42 = vrot.slane %v11911_v26, %v10368_v47  ;;  %v4863_v43 = vrot.slane %v11879_v32, %v10371_v13  ;;  %v4870_v14 = vrot.slane %v11879_v32, %v10374_v40 }
 0x19c   :  { %7501 = vperm.xlu0 %9205, %v7266_v7   ;;  %v2981_v25 = vrot.slane %v11911_v26, %v10371_v13  ;;  %v5067_v50 = vcombine.low %v5059_v49, %v5066_v6  ;;  %v6969_v23 = vrot.slane %v14308_v57, %v10383_v63  ;;  %v6976_v29 = vrot.slane %v14309_v18, %v10383_v63  ;;  %v14312_v57 = vld [vmem:[#allocation45_spill] sm:$0xff]  ;;  %v14313_v18 = vld [vmem:[#allocation27_spill] sm:$0xff] }
 0x19d   :  { %v2988_v56 = vrot.slane %v11911_v26, %v10374_v40  ;;  %v3463_v15 = vcombine.low %v3455_v53, %v3462_v12  ;;  %v5365_v1 = vrot.slane %v11799_v41, %v10383_v63  ;;  %v5372_v32 = vrot.slane %v11801_v21, %v10383_v63  ;;  %v12297_v26 = vpop.permute.xlu1 %1681 }
 0x19e   :  { %v6759_v55 = vrot.slane %v11913_v46, %v10361_v38  ;;  %v6766_v31 = vrot.slane %v11913_v46, %v10368_v47  ;;  %v6773_v44 = vrot.slane %v11913_v46, %v10371_v13  ;;  %v6780_v49 = vrot.slane %v11913_v46, %v10374_v40 }
 0x19f   :  { %5540 = vperm.xlu1 %9206, %v5067_v50   ;;  %v12301_v41 = vcombine.low %v6311_v35, %v6318_v20  ;;  %v12303_v21 = vcombine.low %v6325_v30, %v6332_v27  ;;  %v12305_v6 = vcombine.low %v4849_v62, %v4856_v51  ;;  %v12307_v7 = vcombine.low %v4863_v43, %v4870_v14  ;;  %v12331_v43 = vpop.permute.xlu0 %1702 }
 0x1a0   :  { %3684 = vperm.xlu0 %9205, %v3463_v15   ;;  %v12309_v53 = vcombine.low %v2967_v28, %v2974_v42  ;;  %v6977_v12 = vcombine.low %v6969_v23, %v6976_v29  ;;  %v3166_v46 = vrot.slane %v14312_v57, %v10383_v63  ;;  %v3173_v50 = vrot.slane %v14313_v18, %v10383_v63 }
 0x1a1   :  { %14310 = vst [vmem:[#allocation77_spill] sm:$0xff] %v12301_v41  ;;  %14311 = vst [vmem:[#allocation87_spill] sm:$0xff] %v12303_v21  ;;  %v12315_v5 = vcombine.low %v2981_v25, %v2988_v56  ;;  %v5373_v35 = vcombine.low %v5365_v1, %v5372_v32  ;;  %v7275_v20 = vrot.slane %v11863_v37, %v10383_v63  ;;  %v12329_v42 = vpop.permute.xlu1 %1684  ;;  %v14315_v56 = vld [vmem:[#allocation37_spill] sm:$0xff]  ;;  %v14316_v1 = vld [vmem:[#allocation46_spill] sm:$0xff] }
 0x1a2   :  { %v7282_v30 = vrot.slane %v11865_v45, %v10383_v63  ;;  %v4877_v27 = vrot.slane %v11943_v4, %v10361_v38  ;;  %v4884_v62 = vrot.slane %v11943_v4, %v10368_v47  ;;  %v12325_v51 = vcombine.low %v6759_v55, %v6766_v31  ;;  %v14322_v21 = vld [vmem:[#allocation80_spill] sm:$0xff] }
 0x1a3   :  { %14314 = vst [vmem:[#allocation6_spill] sm:$0xff] %v12315_v5  ;;  %v12327_v28 = vcombine.low %v6773_v44, %v6780_v49  ;;  %7450 = vperm.xlu1 %9206, %v6977_v12   ;;  %v4891_v37 = vrot.slane %v11943_v4, %v10371_v13  ;;  %v4898_v45 = vrot.slane %v11943_v4, %v10374_v40 }
 0x1a4   :  { %v4429_v14 = vrot.slane %v11945_v3, %v10361_v38  ;;  %v4436_v25 = vrot.slane %v11945_v3, %v10368_v47  ;;  %5594 = vperm.xlu0 %9205, %v5373_v35   ;;  %v4443_v23 = vrot.slane %v11945_v3, %v10371_v13  ;;  %v3174_v29 = vcombine.low %v3166_v46, %v3173_v50  ;;  %v14319_v35 = vld [vmem:[#allocation53_spill] sm:$0xff] }
 0x1a5   :  { %v5076_v15 = vrot.slane %v14315_v56, %v10383_v63  ;;  %v5083_v32 = vrot.slane %v14316_v1, %v10383_v63  ;;  %v4450_v4 = vrot.slane %v11945_v3, %v10374_v40  ;;  %v7283_v55 = vcombine.low %v7275_v20, %v7282_v30  ;;  %v12362_v50 = vpop.permute.xlu1 %1687  ;;  %v12364_v3 = vpop.permute.xlu0 %1708  ;;  %v14321_v1 = vld [vmem:[#allocation50_spill] sm:$0xff] }
 0x1a6   :  { %v3472_v31 = vrot.slane %v11889_v10, %v10383_v63  ;;  %v3479_v44 = vrot.slane %v11891_v34, %v10383_v63  ;;  %v12353_v49 = vcombine.low %v4877_v27, %v4884_v62  ;;  %v6787_v12 = vrot.slane %v11977_v9, %v10361_v38 }
 0x1a7   :  { %v6794_v57 = vrot.slane %v11977_v9, %v10368_v47  ;;  %v14318_v46 = vlaneseq  ;;  %3633 = vperm.xlu1 %9206, %v3174_v29   ;;  %v6801_v10 = vrot.slane %v11977_v9, %v10371_v13  ;;  %v6808_v34 = vrot.slane %v11977_v9, %v10374_v40  ;;  %v14320_v29 = vld [vmem:[#allocation61_spill] sm:$0xff] }
 0x1a8   :  { %14317 = vst [vmem:[#allocation64_spill] sm:$0xff] %v12353_v49  ;;  %v6339_v20 = vrot.slane %v14319_v35, %v10361_v38  ;;  %v6346_v30 = vrot.slane %v14319_v35, %v10368_v47  ;;  %7504 = vperm.xlu0 %9205, %v7283_v55   ;;  %v6353_v27 = vrot.slane %v14319_v35, %v10371_v13 }
 0x1a9   :  { %v12360_v18 = vand.u32 127, %v14318_v46  ;;  %v5084_v62 = vcombine.low %v5076_v15, %v5083_v32  ;;  %v6986_v56 = vrot.slane %v14320_v29, %v10383_v63  ;;  %v6993_v46 = vrot.slane %v14321_v1, %v10383_v63  ;;  %v12394_v29 = vpop.permute.xlu1 %1690  ;;  %v12396_v1 = vpop.permute.xlu0 %1714 }
 0x1aa   :  { %v6360_v9 = vrot.slane %v14319_v35, %v10374_v40  ;;  %v3480_v2 = vcombine.low %v3472_v31, %v3479_v44  ;;  %v5382_v41 = vrot.slane %v14322_v21, %v10383_v63  ;;  %v5389_v55 = vrot.slane %v14323_v61, %v10383_v63  ;;  %v14329_v21 = vld [vmem:[#allocation41_spill] sm:$0xff] }
 0x1ab   :  { %v12386_v58 = vcombine.low %v4891_v37, %v4898_v45  ;;  %v12388_v49 = vcombine.low %v6787_v12, %v6794_v57  ;;  %v12390_v15 = vcombine.low %v4429_v14, %v4436_v25  ;;  %v12392_v32 = vcombine.low %v4443_v23, %v4450_v4  ;;  %5543 = vperm.xlu1 %9206, %v5084_v62   ;;  %v14331_v25 = vld [vmem:[#allocation66_spill] sm:$0xff]  ;;  %v14332_v4 = vld [vmem:[#allocation67_spill] sm:$0xff] }
 0x1ac   :  { %v12398_v31 = vcombine.low %v6801_v10, %v6808_v34  ;;  %v4457_v44 = vrot.slane %v14329_v21, %v10361_v38  ;;  %v4464_v61 = vrot.slane %v14329_v21, %v10368_v47  ;;  %v1776_v37 = vadd.s32 4294967288, %v12360_v18  ;;  %3687 = vperm.xlu0 %9205, %v3480_v2   ;;  %v14334_v34 = vld [vmem:[#allocation20_spill] sm:$0xff]  ;;  %v14335_v62 = vld [vmem:[#allocation11_spill] sm:$0xff] }
 0x1ad   :  { %14324 = vst [vmem:[#allocation17_spill] sm:$0xff] %v12386_v58  ;;  %14325 = vst [vmem:[#allocation19_spill] sm:$0xff] %v12388_v49  ;;  %v12405_v45 = vcombine.low %v6339_v20, %v6346_v30  ;;  %v6994_v14 = vcombine.low %v6986_v56, %v6993_v46  ;;  %v3183_v23 = vrot.slane %v14331_v25, %v10383_v63  ;;  %v14336_v30 = vld [vmem:[#allocation88_spill] sm:$0xff]  ;;  %v12425_v46 = vpop.permute.xlu1 %1693  ;;  %v14345_v49 = vld [vmem:[#allocation29_spill] sm:$0xff] }
 0x1ae   :  { %14326 = vst [vmem:[#allocation59_spill] sm:$0xff] %v12390_v15  ;;  %14327 = vst [vmem:[#allocation15_spill] sm:$0xff] %v12392_v32  ;;  %v3190_v12 = vrot.slane %v14332_v4, %v10383_v63  ;;  %v12411_v57 = vcombine.low %v6353_v27, %v6360_v9  ;;  %v5390_v10 = vcombine.low %v5382_v41, %v5389_v55  ;;  %v12427_v41 = vpop.permute.xlu0 %1720  ;;  %v14342_v15 = vld [vmem:[#allocation52_spill] sm:$0xff] }
 0x1af   :  { %14328 = vst [vmem:[#allocation45_spill] sm:$0xff] %v12398_v31  ;;  %14330 = vst [vmem:[#allocation27_spill] sm:$0xff] %v12405_v45  ;;  %v7292_v35 = vrot.slane %v14334_v34, %v10383_v63  ;;  %v7299_v32 = vrot.slane %v14335_v62, %v10383_v63  ;;  %v4471_v2 = vrot.slane %v14329_v21, %v10371_v13  ;;  %7453 = vperm.xlu1 %9206, %v6994_v14   ;;  %v14339_v62 = vld [vmem:[#allocation22_spill] sm:$0xff] }
 0x1b0   :  { %14333 = vst [vmem:[#allocation37_spill] sm:$0xff] %v12411_v57  ;;  %v4478_v20 = vrot.slane %v14329_v21, %v10374_v40  ;;  %v2995_v56 = vrot.slane %v14336_v30, %v10361_v38  ;;  %v3002_v27 = vrot.slane %v14336_v30, %v10368_v47  ;;  %14337 = vst [vmem:[#allocation46_spill] sm:$0xff] %v12427_v41  ;;  %v1783_v21 = vadd.s32 4294967280, %v12360_v18  ;;  %v14340_v57 = vld [vmem:[#allocation43_spill] sm:$0xff]  ;;  %v14341_v45 = vld [vmem:[#allocation82_spill] sm:$0xff] }
 0x1b1   :  { %v12429_v9 = vcombine.low %v4457_v44, %v4464_v61  ;;  %v3009_v55 = vrot.slane %v14336_v30, %v10371_v13  ;;  %v3016_v25 = vrot.slane %v14336_v30, %v10374_v40  ;;  %5597 = vperm.xlu0 %9205, %v5390_v10   ;;  %v6367_v4 = vrot.slane %v12043_v19, %v10361_v38  ;;  %v14348_v41 = vld [vmem:[#allocation40_spill] sm:$0xff] }
 0x1b2   :  { %v3191_v34 = vcombine.low %v3183_v23, %v3190_v12  ;;  %v5093_v14 = vrot.slane %v14339_v62, %v10383_v63  ;;  %v5100_v44 = vrot.slane %v14340_v57, %v10383_v63  ;;  %v6374_v61 = vrot.slane %v12043_v19, %v10368_v47  ;;  %v12456_v62 = vpop.permute.xlu1 %1696 }
 0x1b3   :  { %14338 = vst [vmem:[#allocation53_spill] sm:$0xff] %v12429_v9  ;;  %v7300_v9 = vcombine.low %v7292_v35, %v7299_v32  ;;  %v3489_v30 = vrot.slane %v14341_v45, %v10383_v63  ;;  %v3496_v10 = vrot.slane %v14342_v15, %v10383_v63  ;;  %v6381_v31 = vrot.slane %v12043_v19, %v10371_v13  ;;  %v12458_v32 = vpop.permute.xlu0 %1726 }
 0x1b4   :  { %v6388_v23 = vrot.slane %v12043_v19, %v10374_v40  ;;  %v4905_v12 = vrot.slane %v12045_v24, %v10361_v38  ;;  %v4912_v57 = vrot.slane %v12045_v24, %v10368_v47  ;;  %3636 = vperm.xlu1 %9206, %v3191_v34   ;;  %v12460_v45 = vcombine.low %v4471_v2, %v4478_v20 }
 0x1b5   :  { %v12462_v15 = vcombine.low %v2995_v56, %v3002_v27  ;;  %v4919_v35 = vrot.slane %v12045_v24, %v10371_v13  ;;  %v12467_v19 = vsub.s32 %v1776_v37, %v14345_v49  ;;  %7507 = vperm.xlu0 %9205, %v7300_v9   ;;  %v4926_v58 = vrot.slane %v12045_v24, %v10374_v40  ;;  %v14350_v27 = vld [vmem:[#allocation12_spill] sm:$0xff]  ;;  %v14351_v37 = vld [vmem:[#allocation39_spill] sm:$0xff] }
 0x1b6   :  { %14343 = vst [vmem:[#allocation61_spill] sm:$0xff] %v12460_v45  ;;  %v5101_v17 = vcombine.low %v5093_v14, %v5100_v44  ;;  %v7003_v34 = vrot.slane %v14347_v54, %v10383_v63  ;;  %v7010_v2 = vrot.slane %v14348_v41, %v10383_v63  ;;  %v12475_v20 = vcombine.low %v3009_v55, %v3016_v25  ;;  %v12490_v14 = vpop.permute.xlu1 %1699 }
 0x1b7   :  { %14344 = vst [vmem:[#allocation50_spill] sm:$0xff] %v12462_v15  ;;  %14346 = vst [vmem:[#allocation80_spill] sm:$0xff] %v12467_v19  ;;  %v3497_v56 = vcombine.low %v3489_v30, %v3496_v10  ;;  %v5399_v45 = vrot.slane %v14350_v27, %v10383_v63  ;;  %v5406_v15 = vrot.slane %v14351_v37, %v10383_v63  ;;  %v12492_v41 = vpop.permute.xlu0 %1732  ;;  %v14357_v30 = vld [vmem:[#allocation65_spill] sm:$0xff] }
 0x1b8   :  { %14349 = vst [vmem:[#allocation57_spill] sm:$0xff] %v12475_v20  ;;  %v12481_v9 = vcombine.low %v6367_v4, %v6374_v61  ;;  %v12483_v5 = vcombine.low %v6381_v31, %v6388_v23  ;;  %v12485_v24 = vcombine.low %v4905_v12, %v4912_v57  ;;  %v12488_v54 = vsub.s32 %v1783_v21, %v14345_v49 }
 0x1b9   :  { %5546 = vperm.xlu1 %9206, %v5101_v17   ;;  %v3023_v55 = vrot.slane %v12075_v22, %v10361_v38  ;;  %v3030_v25 = vrot.slane %v12075_v22, %v10368_v47  ;;  %v3037_v31 = vrot.slane %v12075_v22, %v10371_v13  ;;  %v3044_v4 = vrot.slane %v12075_v22, %v10374_v40  ;;  %v14356_v17 = vld [vmem:[#allocation44_spill] sm:$0xff]  ;;  %v14374_v13 = vld [vmem:[#allocation85_spill] sm:$0xff] }
 0x1ba   :  { %14352 = vst [vmem:[#allocation41_spill] sm:$0xff] %v12481_v9  ;;  %14353 = vst [vmem:[#allocation66_spill] sm:$0xff] %v12483_v5  ;;  %3690 = vperm.xlu0 %9205, %v3497_v56   ;;  %v12502_v21 = vcombine.low %v4919_v35, %v4926_v58  ;;  %v7011_v44 = vcombine.low %v7003_v34, %v7010_v2  ;;  %v3200_v61 = vrot.slane %v14356_v17, %v10383_v63  ;;  %v12522_v56 = vpop.permute.xlu1 %1705  ;;  %v14361_v17 = vld [vmem:[#allocation14_spill] sm:$0xff]  ;;  %v9478_v5 = vmov 0.0   ;;  %v14368_v9 = vld [vmem:[#allocation21_spill] sm:$0xff] }
 0x1bb   :  { %14354 = vst [vmem:[#allocation67_spill] sm:$0xff] %v12485_v24  ;;  %v3207_v10 = vrot.slane %v14357_v30, %v10383_v63  ;;  %v12510_v23 = vsub.s32 %v12360_v18, %v14345_v49  ;;  %v5407_v12 = vcombine.low %v5399_v45, %v5406_v15  ;;  %v7309_v57 = vrot.slane %v12023_v0, %v10383_v63  ;;  %v12524_v45 = vpop.permute.xlu0 %1738 }
 0x1bc   :  { %14355 = vst [vmem:[#allocation20_spill] sm:$0xff] %v12502_v21  ;;  %v7316_v22 = vrot.slane %v12025_v16, %v10383_v63  ;;  %v1790_v34 = vadd.s32 4294967272, %v12360_v18  ;;  %v1832_v2 = vadd.s32 4294967224, %v12360_v18  ;;  %v12526_v15 = vcombine.low %v3023_v55, %v3030_v25  ;;  %v14363_v25 = vld [vmem:[#allocation92_spill] sm:$0xff]  ;;  %28 = vst [vmem:[#allocation2] sm:$0xff] %v9478_v5 }
 0x1bd   :  { %14358 = vst [vmem:[#allocation11_spill] sm:$0xff] %v12510_v23  ;;  %7456 = vperm.xlu1 %9206, %v7011_v44   ;;  %v12528_v0 = vcombine.low %v3037_v31, %v3044_v4  ;;  %v3208_v37 = vcombine.low %v3200_v61, %v3207_v10  ;;  %v5110_v30 = vrot.slane %v14361_v17, %v10383_v63  ;;  %v14362_v44 = vld [vmem:[#allocation35_spill] sm:$0xff]  ;;  %v1797_v61 = vadd.s32 4294967264, %v12360_v18 }
 0x1be   :  { %14359 = vst [vmem:[#allocation88_spill] sm:$0xff] %v12526_v15  ;;  %5600 = vperm.xlu0 %9205, %v5407_v12   ;;  %v5117_v58 = vrot.slane %v14362_v44, %v10383_v63  ;;  %v7317_v55 = vcombine.low %v7309_v57, %v7316_v22  ;;  %v3506_v31 = vrot.slane %v14363_v25, %v10383_v63  ;;  %v14364_v4 = vld [vmem:[#allocation7_spill] sm:$0xff]  ;;  %v1846_v10 = vadd.s32 4294967208, %v12360_v18  ;;  %v12550_v17 = vpop.permute.xlu1 %1711  ;;  %v14369_v15 = vld [vmem:[#allocation38_spill] sm:$0xff] }
 0x1bf   :  { %14360 = vst [vmem:[#allocation22_spill] sm:$0xff] %v12528_v0  ;;  %v3513_v16 = vrot.slane %v14364_v4, %v10383_v63  ;;  %v12543_v35 = vsub.s32 %v1790_v34, %v14345_v49  ;;  %v12546_v12 = vsub.s32 %v1832_v2, %v14345_v49  ;;  %v12552_v57 = vpop.permute.xlu0 %1744  ;;  %v1775_v22 = vrot.slane %v12299_v11, %v12510_v23  ;;  %v14365_v2 = vld [vmem:[#allocation56_spill] sm:$0xff]  ;;  %v14366_v4 = vld [vmem:[#allocation9_spill] sm:$0xff] }
 0x1c0   :  { %v1804_v44 = vadd.s32 4294967256, %v12360_v18  ;;  %v5118_v34 = vcombine.low %v5110_v30, %v5117_v58  ;;  %v7020_v25 = vrot.slane %v14365_v2, %v10383_v63  ;;  %v7027_v27 = vrot.slane %v14366_v4, %v10383_v63  ;;  %v14371_v4 = vld [vmem:[#allocation30_spill] sm:$0xff] }
 0x1c1   :  { %3639 = vperm.xlu1 %9206, %v3208_v37   ;;  %v14367_v37 = vld [vmem:[#allocation25_spill] sm:$0xff]  ;;  %v3514_v11 = vcombine.low %v3506_v31, %v3513_v16  ;;  %v5416_v21 = vrot.slane %v14369_v15, %v10383_v63  ;;  %v1780_v30 = vrot.slane %v12267_v52, %v12467_v19  ;;  %v12574_v5 = vsub.s32 %v1797_v61, %v14345_v49 }
 0x1c2   :  { %7510 = vperm.xlu0 %9205, %v7317_v55   ;;  %v7707_v0 = vsel %vm1960_vm3, %v14368_v9, %v14367_v37  ;;  %v14370_v55 = vld [vmem:[#allocation55_spill] sm:$0xff]  ;;  %v12577_v9 = vsub.s32 %v1846_v10, %v14345_v49  ;;  %v1811_v16 = vadd.s32 4294967248, %v12360_v18  ;;  %v12580_v31 = vpop.permute.xlu1 %1717  ;;  %v1787_v2 = vrot.slane %v12297_v26, %v12488_v54 }
 0x1c3   :  { %v5423_v58 = vrot.slane %v14370_v55, %v10383_v63  ;;  %7712 = vst [vmem:[%s13829_s5] sm:$0x3] %v7707_v0  ;;  %v12582_v15 = vpop.permute.xlu0 %1750  ;;  %v12587_v0 = vsub.s32 %v1804_v44, %v14345_v49  ;;  %v12590_v52 = vadd.s32 4294967192, %v12360_v18  ;;  %v1782_v61 = vsel %vm1781_vm0, %v1780_v30, %v1775_v22  ;;  %v14373_v44 = vld [vmem:[#allocation90_spill] sm:$0xff] }
 0x1c4   :  { %v7028_v10 = vcombine.low %v7020_v25, %v7027_v27  ;;  %v3217_v37 = vrot.slane %v14371_v4, %v10383_v63  ;;  %v1818_v24 = vadd.s32 4294967240, %v12360_v18  ;;  %v7326_v20 = vrot.slane %v14373_v44, %v10383_v63  ;;  %v14375_v4 = vld [vmem:[#allocation51_spill] sm:$0xff] }
 0x1c5   :  { %5549 = vperm.xlu1 %9206, %v5118_v34   ;;  %v14372_v34 = vld [vmem:[#allocation47_spill] sm:$0xff]  ;;  %v5424_v26 = vcombine.low %v5416_v21, %v5423_v58  ;;  %v7333_v40 = vrot.slane %v14374_v13, %v10383_v63  ;;  %v12605_v27 = vsub.s32 %v1811_v16, %v14345_v49  ;;  %v1825_v22 = vadd.s32 4294967232, %v12360_v18 }
 0x1c6   :  { %3693 = vperm.xlu0 %9205, %v3514_v11   ;;  %v3224_v55 = vrot.slane %v14372_v34, %v10383_v63  ;;  %v1794_v11 = vrot.slane %v12329_v42, %v12543_v35  ;;  %v1724_v25 = vpop.permute.xlu1 %1723  ;;  %v1789_v21 = vsel %vm1788_vm1, %v1787_v2, %v1782_v61  ;;  %v1801_v13 = vrot.slane %v12362_v50, %v12574_v5  ;;  %v14377_v61 = vld [vmem:[#allocation42_spill] sm:$0xff]  ;;  %v14378_v50 = vld [vmem:[#allocation83_spill] sm:$0xff] }
 0x1c7   :  { %v12608_v30 = vpop.permute.xlu0 %1756  ;;  %v1884_v42 = vrot.slane %v1724_v25, %v12510_v23  ;;  %v5127_v34 = vrot.slane %v14375_v4, %v10383_v63  ;;  %v12621_v38 = vsub.s32 %v1818_v24, %v14345_v49  ;;  %v7334_v2 = vcombine.low %v7326_v20, %v7333_v40 }
 0x1c8   :  { %v3225_v16 = vcombine.low %v3217_v37, %v3224_v55  ;;  %v3523_v58 = vrot.slane %v14377_v61, %v10383_v63  ;;  %v3530_v47 = vrot.slane %v14378_v50, %v10383_v63  ;;  %v1808_v37 = vrot.slane %v12394_v29, %v12587_v0 }
 0x1c9   :  { %7459 = vperm.xlu1 %9206, %v7028_v10   ;;  %v14376_v10 = vld [vmem:[#allocation93_spill] sm:$0xff]  ;;  %v1888_v55 = vrot.slane %v12458_v32, %v12467_v19  ;;  %v12633_v25 = vsub.s32 %v1825_v22, %v14345_v49  ;;  %v1815_v4 = vrot.slane %v12425_v46, %v12605_v27  ;;  %v14382_v19 = vld [vmem:[#allocation10_spill] sm:$0xff] }
 0x1ca   :  { %5603 = vperm.xlu0 %9205, %v5424_v26   ;;  %v5134_v44 = vrot.slane %v14376_v10, %v10383_v63  ;;  %v1796_v26 = vsel %vm1795_vm2, %v1794_v11, %v1789_v21  ;;  %v1730_v24 = vpop.permute.xlu1 %1729  ;;  %v1839_v11 = vadd.s32 4294967216, %v12360_v18  ;;  %v14379_v22 = vld [vmem:[#allocation81_spill] sm:$0xff]  ;;  %v5440_v23 = vrot.slane %v14382_v19, %v10383_v63 }
 0x1cb   :  { %v12635_v40 = vpop.permute.xlu0 %1762  ;;  %v1803_v20 = vsel %vm1802_vm4, %v1801_v13, %v1796_v26  ;;  %v1893_v21 = vrot.slane %v1730_v24, %v12488_v54  ;;  %v1889_v29 = vsel %vm1781_vm0, %v1888_v55, %v1884_v42  ;;  %v7037_v10 = vrot.slane %v14379_v22, %v10383_v63  ;;  %v14381_v26 = vld [vmem:[#allocation86_spill] sm:$0xff] }
 0x1cc   :  { %v5135_v32 = vcombine.low %v5127_v34, %v5134_v44  ;;  %v3531_v13 = vcombine.low %v3523_v58, %v3530_v47  ;;  %v5433_v46 = vrot.slane %v14381_v26, %v10383_v63  ;;  %v1822_v42 = vrot.slane %v12456_v62, %v12621_v38 }
 0x1cd   :  { %3642 = vperm.xlu1 %9206, %v3225_v16   ;;  %v14380_v16 = vld [vmem:[#allocation36_spill] sm:$0xff]  ;;  %v1894_v50 = vsel %vm1788_vm1, %v1893_v21, %v1889_v29  ;;  %v1898_v34 = vrot.slane %v12492_v41, %v12543_v35  ;;  %v1829_v58 = vrot.slane %v12490_v14, %v12633_v25  ;;  %v12663_v19 = vsub.s32 %v1839_v11, %v14345_v49  ;;  %v14384_v21 = vld [vmem:[#allocation69_spill] sm:$0xff] }
 0x1ce   :  { %7513 = vperm.xlu0 %9205, %v7334_v2   ;;  %v7044_v61 = vrot.slane %v14380_v16, %v10383_v63  ;;  %v1810_v2 = vsel %vm1809_vm5, %v1808_v37, %v1803_v20  ;;  %v1736_v44 = vpop.permute.xlu1 %1735  ;;  %v14383_v41 = vld [vmem:[#allocation68_spill] sm:$0xff]  ;;  %v3241_v29 = vrot.slane %v14384_v21, %v10383_v63  ;;  %v7343_v14 = vrot.slane %v12227_v33, %v10383_v63  ;;  %v14388_v21 = vld [vmem:[#allocation54_spill] sm:$0xff] }
 0x1cf   :  { %v12657_v55 = vpop.permute.xlu0 %1768  ;;  %v1817_v47 = vsel %vm1816_vm6, %v1815_v4, %v1810_v2  ;;  %v1903_v37 = vrot.slane %v1736_v44, %v12574_v5  ;;  %v1899_v62 = vsel %vm1795_vm2, %v1898_v34, %v1894_v50  ;;  %v3234_v20 = vrot.slane %v14383_v41, %v10383_v63  ;;  %v14386_v2 = vld [vmem:[#allocation91_spill] sm:$0xff] }
 0x1d0   :  { %v7045_v24 = vcombine.low %v7037_v10, %v7044_v61  ;;  %v7350_v11 = vrot.slane %v12229_v59, %v10383_v63  ;;  %v1824_v22 = vsel %vm1823_vm7, %v1822_v42, %v1817_v47  ;;  %v1908_v10 = vrot.slane %v12524_v45, %v12587_v0  ;;  %v14385_v59 = vld [vmem:[#allocation18_spill] sm:$0xff] }
 0x1d1   :  { %5552 = vperm.xlu1 %9206, %v5135_v32   ;;  %v1904_v4 = vsel %vm1802_vm4, %v1903_v37, %v1899_v62  ;;  %v5441_v32 = vcombine.low %v5433_v46, %v5440_v23  ;;  %v1853_v16 = vadd.s32 4294967200, %v12360_v18  ;;  %v1831_v23 = vsel %vm1830_vm8, %v1829_v58, %v1824_v22 }
 0x1d2   :  { %3696 = vperm.xlu0 %9205, %v3531_v13   ;;  %v1742_v61 = vpop.permute.xlu1 %1741  ;;  %v5144_v13 = vrot.slane %v14385_v59, %v10383_v63  ;;  %v1843_v26 = vrot.slane %v12522_v56, %v12663_v19  ;;  %v1909_v45 = vsel %vm1809_vm5, %v1908_v10, %v1904_v4  ;;  %v3242_v46 = vcombine.low %v3234_v20, %v3241_v29 }
 0x1d3   :  { %v12680_v50 = vpop.permute.xlu0 %3618  ;;  %v1913_v33 = vrot.slane %v1742_v61, %v12605_v27  ;;  %v5151_v42 = vrot.slane %v14386_v2, %v10383_v63  ;;  %v7351_v44 = vcombine.low %v7343_v14, %v7350_v11  ;;  %v3540_v47 = vrot.slane %v12241_v48, %v10383_v63  ;;  %v14389_v14 = vld [vmem:[#allocation26_spill] sm:$0xff] }
 0x1d4   :  { %v3547_v58 = vrot.slane %v12243_v36, %v10383_v63  ;;  %v1850_v37 = vrot.slane %v12364_v3, %v12577_v9  ;;  %v12699_v56 = vsub.s32 %v1853_v16, %v14345_v49  ;;  %v1918_v62 = vrot.slane %v12552_v57, %v12621_v38 }
 0x1d5   :  { %7462 = vperm.xlu1 %9206, %v7045_v24   ;;  %v1914_v34 = vsel %vm1816_vm6, %v1913_v33, %v1909_v45  ;;  %v14387_v48 = vrot.slane %v12331_v43, %v12546_v12  ;;  %v1867_v36 = vadd.s32 4294967184, %v12360_v18  ;;  %v7054_v29 = vrot.slane %v14388_v21, %v10383_v63 }
 0x1d6   :  { %5606 = vperm.xlu0 %9205, %v5441_v32   ;;  %v1748_v24 = vpop.permute.xlu1 %1747  ;;  %v1919_v57 = vsel %vm1823_vm7, %v1918_v62, %v1914_v34  ;;  %v5152_v32 = vcombine.low %v5144_v13, %v5151_v42  ;;  %v7061_v11 = vrot.slane %v14389_v14, %v10383_v63  ;;  %v3548_v22 = vcombine.low %v3540_v47, %v3547_v58 }
 0x1d7   :  { %v12703_v41 = vpop.permute.xlu0 %3669  ;;  %v1838_v20 = vsel %vm1837_vm9, %v14387_v48, %v1831_v23  ;;  %v1923_v3 = vrot.slane %v1748_v24, %v12633_v25  ;;  %v5450_v10 = vrot.slane %v12305_v6, %v10383_v63  ;;  %v5457_v16 = vrot.slane %v12307_v7, %v10383_v63 }
 0x1d8   :  { %v1845_v4 = vsel %vm1844_vm10, %v1843_v26, %v1838_v20  ;;  %v12724_v61 = vsub.s32 %v12590_v52, %v14345_v49  ;;  %v1874_v23 = vadd.s32 4294967176, %v12360_v18  ;;  %v1857_v33 = vrot.slane %v12550_v17, %v12699_v56  ;;  %v14390_v17 = vld [vmem:[#allocation70_spill] sm:$0xff] }
 0x1d9   :  { %3645 = vperm.xlu1 %9206, %v3242_v46   ;;  %v1924_v43 = vsel %vm1830_vm8, %v1923_v3, %v1919_v57  ;;  %v1928_v59 = vrot.slane %v12582_v15, %v12546_v12  ;;  %v1852_v6 = vsel %vm1851_vm11, %v1850_v37, %v1845_v4  ;;  %v12735_v7 = vsub.s32 %v1867_v36, %v14345_v49  ;;  %v14391_v15 = vld [vmem:[#allocation71_spill] sm:$0xff]  ;;  %v14392_v57 = vld [vmem:[#allocation6_spill] sm:$0xff] }
 0x1da   :  { %7516 = vperm.xlu0 %9205, %v7351_v44   ;;  %v1754_v13 = vpop.permute.xlu1 %1753  ;;  %v7062_v45 = vcombine.low %v7054_v29, %v7061_v11  ;;  %v3251_v46 = vrot.slane %v14390_v17, %v10383_v63  ;;  %v3258_v2 = vrot.slane %v14391_v15, %v10383_v63  ;;  %v5458_v34 = vcombine.low %v5450_v10, %v5457_v16 }
 0x1db   :  { %v12731_v26 = vpop.permute.xlu0 %5531  ;;  %v1933_v52 = vrot.slane %v1754_v13, %v12663_v19  ;;  %v1929_v18 = vsel %vm1837_vm9, %v1928_v59, %v1924_v43  ;;  %v7360_v44 = vrot.slane %v12325_v51, %v10383_v63  ;;  %v7367_v47 = vrot.slane %v12327_v28, %v10383_v63  ;;  %v14397_v43 = vld [vmem:[#allocation46_spill] sm:$0xff] }
 0x1dc   :  { %v12749_v58 = vsub.s32 %v1874_v23, %v14345_v49  ;;  %v1859_v37 = vsel %vm1858_vm12, %v1857_v33, %v1852_v6  ;;  %v1938_v62 = vrot.slane %v12608_v30, %v12577_v9  ;;  %v1871_v20 = vrot.slane %v12580_v31, %v12735_v7 }
 0x1dd   :  { %5555 = vperm.xlu1 %9206, %v5152_v32   ;;  %v1934_v42 = vsel %vm1844_vm10, %v1933_v52, %v1929_v18  ;;  %v5161_v28 = vrot.slane %v12215_v60, %v10383_v63  ;;  %v5168_v36 = vrot.slane %v12221_v8, %v10383_v63  ;;  %v1864_v3 = vrot.slane %v12396_v1, %v12724_v61  ;;  %v14393_v60 = vld [vmem:[#allocation32_spill] sm:$0xff]  ;;  %v14395_v8 = vld [vmem:[#allocation31_spill] sm:$0xff] }
 0x1de   :  { %3699 = vperm.xlu0 %9205, %v3548_v22   ;;  %v1760_v24 = vpop.permute.xlu1 %1759  ;;  %v1939_v30 = vsel %vm1851_vm11, %v1938_v62, %v1934_v42  ;;  %v3259_v21 = vcombine.low %v3251_v46, %v3258_v2  ;;  %v7368_v4 = vcombine.low %v7360_v44, %v7367_v47  ;;  %v3557_v31 = vrot.slane %v12309_v53, %v10383_v63  ;;  %v14398_v18 = vld [vmem:[#allocation48_spill] sm:$0xff]  ;;  %v14402_v47 = vld [vmem:[#allocation94_spill] sm:$0xff] }
 0x1df   :  { %v12754_v48 = vpop.permute.xlu0 %5579  ;;  %v1943_v51 = vrot.slane %v1760_v24, %v12699_v56  ;;  %v3564_v32 = vrot.slane %v14392_v57, %v10383_v63  ;;  %v14394_v14 = vrot.slane %v12077_v39, %v14393_v60  ;;  %v14396_v11 = vrot.slane %v12077_v39, %v14395_v8  ;;  %v14400_v2 = vld [vmem:[#allocation64_spill] sm:$0xff]  ;;  %v14405_v24 = vld [vmem:[#allocation33_spill] sm:$0xff] }
 0x1e0   :  { %v1878_v22 = vrot.slane %v14397_v43, %v12749_v58  ;;  %v1866_v10 = vsel %vm1865_vm13, %v1864_v3, %v1859_v37  ;;  %v1948_v16 = vrot.slane %v12635_v40, %v12724_v61  ;;  %v5169_v13 = vcombine.low %v5161_v28, %v5168_v36  ;;  %v14399_v40 = vld [vmem:[#allocation60_spill] sm:$0xff]  ;;  %v14403_v37 = vld [vmem:[#allocation34_spill] sm:$0xff] }
 0x1e1   :  { %7465 = vperm.xlu1 %9206, %v7062_v45   ;;  %v1944_v29 = vsel %vm1858_vm12, %v1943_v51, %v1939_v30  ;;  %v12777_v1 = vcombine.low %v14396_v11, %v14394_v14  ;;  %v1873_v33 = vsel %vm1872_vm14, %v1871_v20, %v1866_v10  ;;  %v1958_v6 = vrot.slane %v12657_v55, %v12749_v58  ;;  %v14409_v43 = vld [vmem:[#allocation28_spill] sm:$0xff]  ;;  %v14410_v10 = vld [vmem:[#allocation13_spill] sm:$0xff] }
 0x1e2   :  { %5609 = vperm.xlu0 %9205, %v5458_v34   ;;  %v1766_v53 = vpop.permute.xlu1 %1765  ;;  %v1949_v52 = vsel %vm1865_vm13, %v1948_v16, %v1944_v29  ;;  %v7071_v45 = vrot.slane %v14398_v18, %v10383_v63  ;;  %v7078_v17 = vrot.slane %v14399_v40, %v10383_v63  ;;  %v3565_v15 = vcombine.low %v3557_v31, %v3564_v32  ;;  %v14401_v34 = vld [vmem:[#allocation17_spill] sm:$0xff]  ;;  %v14407_v29 = vld [vmem:[#allocation11_spill] sm:$0xff] }
 0x1e3   :  { %v12784_v23 = vpop.permute.xlu0 %7441  ;;  %v1953_v59 = vrot.slane %v1766_v53, %v12735_v7  ;;  %v5467_v42 = vrot.slane %v14400_v2, %v10383_v63  ;;  %v5474_v44 = vrot.slane %v14401_v34, %v10383_v63  ;;  %v4933_v55 = vrot.slane %v14402_v47, %v14395_v8  ;;  %v137_v31 = vld [vmem:[#allocation2] sm:$0x3] }
 0x1e4   :  { %v14404_v62 = vrot.slane %v12077_v39, %v14403_v37  ;;  %v14406_v20 = vrot.slane %v12077_v39, %v14405_v24  ;;  %v1880_v28 = vsel %vm1879_vm15, %v1878_v22, %v1873_v33  ;;  %v14408_v39 = vld [vmem:[#allocation80_spill] sm:$0xff]  ;;  %v7079_v11 = vcombine.low %v7071_v45, %v7078_v17  ;;  %v14413_v45 = vld [vmem:[#allocation95_spill] sm:$0xff] }
 0x1e5   :  { %3648 = vperm.xlu1 %9206, %v3259_v21   ;;  %v1954_v46 = vsel %vm1872_vm14, %v1953_v59, %v1949_v52  ;;  %v4940_v21 = vrot.slane %v14402_v47, %v14393_v60  ;;  %v3268_v22 = vrot.slane %v14409_v43, %v10383_v63  ;;  %v3275_v16 = vrot.slane %v14410_v10, %v10383_v63 }
 0x1e6   :  { %7519 = vperm.xlu0 %9205, %v7368_v4   ;;  %v12808_v51 = vcombine.low %v14406_v20, %v14404_v62  ;;  %v1959_v36 = vsel %vm1879_vm15, %v1958_v6, %v1954_v46  ;;  %v3622_v3 = vpop.permute.xlu1 %3621  ;;  %v3716_v4 = vrot.slane %v12680_v50, %v14407_v29  ;;  %v5475_v33 = vcombine.low %v5467_v42, %v5474_v44  ;;  %v14411_v50 = vld [vmem:[#allocation19_spill] sm:$0xff]  ;;  %v14414_v20 = vld [vmem:[#allocation24_spill] sm:$0xff] }
 0x1e7   :  { %v12812_v30 = vpop.permute.xlu0 %7489  ;;  %v1961_v57 = vsel %vm1960_vm3, %v1959_v36, %v1880_v28  ;;  %v3720_v32 = vrot.slane %v3622_v3, %v14408_v39  ;;  %v7377_v59 = vrot.slane %v14411_v50, %v10383_v63  ;;  %v4947_v52 = vrot.slane %v14402_v47, %v14405_v24  ;;  %v14415_v36 = vld [vmem:[#allocation23_spill] sm:$0xff] }
 0x1e8   :  { %v1968_v14 = vrot.slane %v1961_v57, %v10383_v63  ;;  %v4954_v18 = vrot.slane %v14402_v47, %v14403_v37  ;;  %v4485_v40 = vrot.slane %v14413_v45, %v14395_v8  ;;  %v4492_v2 = vrot.slane %v14413_v45, %v14393_v60 }
 0x1e9   :  { %5558 = vperm.xlu1 %9206, %v5169_v13   ;;  %v12826_v53 = vsel %vm1781_vm0, %v3720_v32, %v3716_v4  ;;  %v14412_v13 = vld [vmem:[#allocation45_spill] sm:$0xff]  ;;  %v3799_v42 = vrot.slane %v12703_v41, %v14408_v39  ;;  %v4499_v47 = vrot.slane %v14413_v45, %v14405_v24  ;;  %v3276_v62 = vcombine.low %v3268_v22, %v3275_v16  ;;  %v14416_v41 = vld [vmem:[#allocation50_spill] sm:$0xff] }
 0x1ea   :  { %3702 = vperm.xlu0 %9205, %v3565_v15   ;;  %v7384_v6 = vrot.slane %v14412_v13, %v10383_v63  ;;  %v1970_v17 = vadd.f32 %v1968_v14, %v137_v31  ;;  %v3667_v46 = vpop.permute.xlu1 %3666  ;;  %v5178_v28 = vrot.slane %v14414_v20, %v10383_v63  ;;  %v5185_v3 = vrot.slane %v14415_v36, %v10383_v63  ;;  %v14417_v32 = vld [vmem:[#allocation57_spill] sm:$0xff] }
 0x1eb   :  { %v3673_v15 = vpop.permute.xlu0 %3672  ;;  %v3795_v34 = vrot.slane %v3667_v46, %v14407_v29  ;;  %v3574_v57 = vrot.slane %v14416_v41, %v10383_v63  ;;  %v3581_v14 = vrot.slane %v14417_v32, %v10383_v63  ;;  %v4506_v10 = vrot.slane %v14413_v45, %v14403_v37  ;;  %v14419_v45 = vld [vmem:[#allocation77_spill] sm:$0xff] }
 0x1ec   :  { %v3804_v44 = vrot.slane %v3673_v15, %v12488_v54  ;;  %1971 = vst [vmem:[#allocation2] sm:$0x3] %v1970_v17  ;;  %v7385_v31 = vcombine.low %v7377_v59, %v7384_v6  ;;  %v12862_v59 = vcombine.low %v4933_v55, %v4940_v21  ;;  %v12864_v13 = vcombine.low %v4947_v52, %v4954_v18  ;;  %v14421_v52 = vld [vmem:[#allocation67_spill] sm:$0xff] }
 0x1ed   :  { %7468 = vperm.xlu1 %9206, %v7079_v11   ;;  %v3800_v4 = vsel %vm1781_vm0, %v3799_v42, %v3795_v34  ;;  %v14418_v11 = vld [vmem:[#allocation84_spill] sm:$0xff]  ;;  %v5630_v6 = vrot.slane %v12731_v26, %v14408_v39  ;;  %v12869_v46 = vcombine.low %v4485_v40, %v4492_v2  ;;  %v5186_v15 = vcombine.low %v5178_v28, %v5185_v3  ;;  %v14420_v34 = vld [vmem:[#allocation87_spill] sm:$0xff] }
 0x1ee   :  { %5612 = vperm.xlu0 %9205, %v5475_v33   ;;  %v6843_v43 = vrot.slane %v14418_v11, %v14395_v8  ;;  %v6850_v22 = vrot.slane %v14418_v11, %v14393_v60  ;;  %v3805_v16 = vsel %vm1788_vm1, %v3804_v44, %v3800_v4  ;;  %v5529_v33 = vpop.permute.xlu1 %5528  ;;  %v7088_v42 = vrot.slane %v14419_v45, %v10383_v63  ;;  %v14422_v26 = vld [vmem:[#allocation20_spill] sm:$0xff]  ;;  %v14423_v4 = vld [vmem:[#allocation62_spill] sm:$0xff] }
 0x1ef   :  { %v5583_v50 = vpop.permute.xlu0 %5582  ;;  %v5626_v17 = vrot.slane %v5529_v33, %v14407_v29  ;;  %v7095_v44 = vrot.slane %v14420_v34, %v10383_v63  ;;  %v3582_v21 = vcombine.low %v3574_v57, %v3581_v14  ;;  %v5484_v18 = vrot.slane %v14421_v52, %v10383_v63 }
 0x1f0   :  { %v6857_v40 = vrot.slane %v14418_v11, %v14405_v24  ;;  %v6864_v2 = vrot.slane %v14418_v11, %v14403_v37  ;;  %v12886_v20 = vcombine.low %v6843_v43, %v6850_v22  ;;  %v12888_v28 = vcombine.low %v4499_v47, %v4506_v10  ;;  %v14424_v11 = vld [vmem:[#allocation74_spill] sm:$0xff]  ;;  %v14425_v22 = vld [vmem:[#allocation75_spill] sm:$0xff] }
 0x1f1   :  { %3651 = vperm.xlu1 %9206, %v3276_v62   ;;  %v12876_v55 = vsel %vm1781_vm0, %v5630_v6, %v5626_v17  ;;  %v5491_v62 = vrot.slane %v14422_v26, %v10383_v63  ;;  %v3058_v41 = vrot.slane %v14423_v4, %v14393_v60  ;;  %v5709_v57 = vrot.slane %v12754_v48, %v14408_v39 }
 0x1f2   :  { %7522 = vperm.xlu0 %9205, %v7385_v31   ;;  %v5577_v36 = vpop.permute.xlu1 %5576  ;;  %v3051_v31 = vrot.slane %v14423_v4, %v14395_v8  ;;  %v5714_v14 = vrot.slane %v5583_v50, %v12488_v54  ;;  %v7096_v47 = vcombine.low %v7088_v42, %v7095_v44  ;;  %v3285_v43 = vrot.slane %v14424_v11, %v10383_v63  ;;  %v14426_v44 = vld [vmem:[#allocation59_spill] sm:$0xff] }
 0x1f3   :  { %v12890_v3 = vpop.permute.xlu0 %7492  ;;  %v5705_v32 = vrot.slane %v5577_v36, %v14407_v29  ;;  %v3292_v10 = vrot.slane %v14425_v22, %v10383_v63  ;;  %v5492_v6 = vcombine.low %v5484_v18, %v5491_v62  ;;  %v7394_v17 = vrot.slane %v12777_v1, %v10383_v63  ;;  %v14427_v18 = vld [vmem:[#allocation15_spill] sm:$0xff]  ;;  %v14430_v22 = vld [vmem:[#allocation8_spill] sm:$0xff] }
 0x1f4   :  { %v7401_v48 = vrot.slane %v12808_v51, %v10383_v63  ;;  %v3065_v50 = vrot.slane %v14423_v4, %v14405_v24  ;;  %v7540_v52 = vrot.slane %v12784_v23, %v14408_v39  ;;  %v5202_v26 = vrot.slane %v14427_v18, %v10383_v63 }
 0x1f5   :  { %5561 = vperm.xlu1 %9206, %v5186_v15   ;;  %v5710_v33 = vsel %vm1781_vm0, %v5709_v57, %v5705_v32  ;;  %v12909_v15 = vcombine.low %v6857_v40, %v6864_v2  ;;  %v3072_v62 = vrot.slane %v14423_v4, %v14403_v37  ;;  %v3293_v40 = vcombine.low %v3285_v43, %v3292_v10  ;;  %v14428_v2 = vld [vmem:[#allocation88_spill] sm:$0xff]  ;;  %v14429_v57 = vld [vmem:[#allocation22_spill] sm:$0xff] }
 0x1f6   :  { %3705 = vperm.xlu0 %9205, %v3582_v21   ;;  %v7439_v45 = vpop.permute.xlu1 %7438  ;;  %v5715_v34 = vsel %vm1788_vm1, %v5714_v14, %v5710_v33  ;;  %v5195_v21 = vrot.slane %v14426_v44, %v10383_v63  ;;  %v3591_v36 = vrot.slane %v14428_v2, %v10383_v63  ;;  %v3598_v32 = vrot.slane %v14429_v57, %v10383_v63  ;;  %v14431_v44 = vld [vmem:[#allocation27_spill] sm:$0xff] }
 0x1f7   :  { %v3676_v42 = vpop.permute.xlu0 %3675  ;;  %v7536_v1 = vrot.slane %v7439_v45, %v14407_v29  ;;  %v12928_v14 = vcombine.low %v3051_v31, %v3058_v41  ;;  %v7402_v11 = vcombine.low %v7394_v17, %v7401_v48  ;;  %v4961_v33 = vrot.slane %v14430_v22, %v14395_v8 }
 0x1f8   :  { %v3809_v51 = vrot.slane %v3676_v42, %v12543_v35  ;;  %v4968_v4 = vrot.slane %v14430_v22, %v14393_v60  ;;  %v4975_v43 = vrot.slane %v14430_v22, %v14405_v24  ;;  %v4982_v31 = vrot.slane %v14430_v22, %v14403_v37  ;;  %v14434_v22 = vld [vmem:[#allocation73_spill] sm:$0xff] }
 0x1f9   :  { %7471 = vperm.xlu1 %9206, %v7096_v47   ;;  %v12931_v23 = vsel %vm1781_vm0, %v7540_v52, %v7536_v1  ;;  %v5203_v48 = vcombine.low %v5195_v21, %v5202_v26  ;;  %v7624_v45 = vrot.slane %v12890_v3, %v12488_v54  ;;  %v3599_v42 = vcombine.low %v3591_v36, %v3598_v32  ;;  %v14432_v1 = vld [vmem:[#allocation37_spill] sm:$0xff]  ;;  %v9207_v3 = vld [vmem:[%s13825_s1 + $0x74] ss:$8 sps:$4 sm:$0xff]   ;;  %v14433_v36 = vld [vmem:[#allocation72_spill] sm:$0xff] }
 0x1fa   :  { %5615 = vperm.xlu0 %9205, %v5492_v6   ;;  %v12934_v47 = vsel %vm1795_vm2, %v3809_v51, %v3805_v16  ;;  %v7487_v41 = vpop.permute.xlu1 %7486  ;;  %v7619_v16 = vrot.slane %v12812_v30, %v14408_v39  ;;  %v7105_v52 = vrot.slane %v14431_v44, %v10383_v63  ;;  %v7112_v51 = vrot.slane %v14432_v1, %v10383_v63  ;;  %v9209_v21 = vld [vmem:[%s13825_s1 + $0x70] ss:$8 sps:$4 sm:$0xff]   ;;  %v9210_v26 = vld [vmem:[%s13825_s1 + $0x174] ss:$8 sps:$4 sm:$0xff]  }
 0x1fb   :  { %v5586_v10 = vpop.permute.xlu0 %5585  ;;  %v7615_v6 = vrot.slane %v7487_v41, %v14407_v29  ;;  %v5501_v29 = vrot.slane %v12862_v59, %v10383_v63  ;;  %v5508_v39 = vrot.slane %v12864_v13, %v10383_v63  ;;  %v3302_v57 = vrot.slane %v14433_v36, %v10383_v63  ;;  %8150 = vmatprep.subr.bf16.mxu0 %v9207_v3 }
 0x1fc   :  { %v5719_v17 = vrot.slane %v5586_v10, %v12543_v35  ;;  %v3309_v41 = vrot.slane %v14434_v22, %v10383_v63  ;;  %8151 = vmatpush1.bf16.msra.mxu0 %v9209_v21  ;;  %8191 = vmatprep.subr.bf16.mxu1 %v9210_v26  ;;  %v14437_v21 = vld [vmem:[#allocation61_spill] sm:$0xff] }
 0x1fd   :  { %3654 = vperm.xlu1 %9206, %v3293_v40   ;;  %v7620_v18 = vsel %vm1781_vm0, %v7619_v16, %v7615_v6  ;;  %v12973_v40 = vcombine.low %v4961_v33, %v4968_v4  ;;  %v7418_v33 = vrot.slane %v12909_v15, %v10383_v63  ;;  %v12986_v4 = vcombine.low %v4975_v43, %v4982_v31  ;;  %v9215_v15 = vld [vmem:[%s13825_s1 + $0x60] ss:$8 sps:$4 sm:$0xff]  }
 0x1fe   :  { %7525 = vperm.xlu0 %9205, %v7402_v11   ;;  %v12956_v30 = vsel %vm1795_vm2, %v5719_v17, %v5715_v34  ;;  %v12971_v34 = vcombine.low %v3065_v50, %v3072_v62  ;;  %v3625_v59 = vpop.permute.xlu1 %3624  ;;  %v7625_v13 = vsel %vm1788_vm1, %v7624_v45, %v7620_v18  ;;  %v7113_v50 = vcombine.low %v7105_v52, %v7112_v51  ;;  %v9212_v17 = vld [vmem:[%s13825_s1 + $0x170] ss:$8 sps:$4 sm:$0xff]   ;;  %v14435_v43 = vld [vmem:[#allocation16_spill] sm:$0xff] }
 0x1ff   :  { %v7496_v2 = vpop.permute.xlu0 %7495  ;;  %v3725_v32 = vrot.slane %v3625_v59, %v12488_v54  ;;  %v7411_v62 = vrot.slane %v12886_v20, %v10383_v63  ;;  %v5509_v6 = vcombine.low %v5501_v29, %v5508_v39  ;;  %v9213_v20 = vld [vmem:[%s13825_s1 + $0x64] ss:$8 sps:$4 sm:$0xff]   ;;  %v6878_v31 = vrot.slane %v14435_v43, %v14393_v60  ;;  %8192 = vmatpush1.bf16.msra.mxu1 %v9212_v17 }
 0x200   :  { %v7629_v11 = vrot.slane %v7496_v2, %v12543_v35  ;;  %v6892_v45 = vrot.slane %v14435_v43, %v14403_v37  ;;  %v9216_v52 = vld [vmem:[%s13825_s1 + $0x164] ss:$8 sps:$4 sm:$0xff]   ;;  %v3310_v18 = vcombine.low %v3302_v57, %v3309_v41  ;;  %v5219_v26 = vrot.slane %v14437_v21, %v10383_v63  ;;  %8152 = vmatprep.subr.bf16.mxu0 %v9213_v20  ;;  %v9218_v57 = vld [vmem:[%s13825_s1 + $0x160] ss:$8 sps:$4 sm:$0xff]   ;;  %v14440_v20 = vld [vmem:[#allocation66_spill] sm:$0xff] }
 0x201   :  { %5564 = vperm.xlu1 %9206, %v5203_v48   ;;  %v12990_v10 = vsel %vm1788_vm1, %v3725_v32, %v12826_v53  ;;  %v6871_v53 = vrot.slane %v14435_v43, %v14395_v8  ;;  %v6885_v48 = vrot.slane %v14435_v43, %v14405_v24  ;;  %v7419_v29 = vcombine.low %v7411_v62, %v7418_v33  ;;  %v14436_v39 = vld [vmem:[#allocation53_spill] sm:$0xff]  ;;  %v9222_v33 = vld [vmem:[%s13825_s1 + $0x154] ss:$8 sps:$4 sm:$0xff]  }
 0x202   :  { %3708 = vperm.xlu0 %9205, %v3599_v42   ;;  %v12993_v16 = vsel %vm1795_vm2, %v7629_v11, %v7625_v13  ;;  %v5535_v42 = vpop.permute.xlu1 %5534  ;;  %v5212_v3 = vrot.slane %v14436_v39, %v10383_v63  ;;  %8193 = vmatprep.subr.bf16.mxu1 %v9216_v52  ;;  %v3608_v2 = vrot.slane %v12928_v14, %v10383_v63  ;;  %v14438_v32 = vld [vmem:[#allocation89_spill] sm:$0xff]  ;;  %vm7718_vm0 = vcmask 1041408  }
 0x203   :  { %v3679_v44 = vpop.permute.xlu0 %3678  ;;  %v5635_v1 = vrot.slane %v5535_v42, %v12488_v54  ;;  %v3615_v36 = vrot.slane %v12971_v34, %v10383_v63  ;;  %8153 = vmatpush1.bf16.msra.mxu0 %v9215_v15  ;;  %v6395_v11 = vrot.slane %v14438_v32, %v14395_v8  ;;  %v6402_v14 = vrot.slane %v14438_v32, %v14393_v60  ;;  %v9228_v39 = vld [vmem:[%s13825_s1 + $0x144] ss:$8 sps:$4 sm:$0xff]  }
 0x204   :  { %v3814_v51 = vrot.slane %v3679_v44, %v12574_v5  ;;  %v13046_v34 = vcombine.low %v6871_v53, %v6878_v31  ;;  %v7129_v15 = vrot.slane %v14440_v20, %v10383_v63  ;;  %8194 = vmatpush1.bf16.msra.mxu1 %v9218_v57  ;;  %v5220_v43 = vcombine.low %v5212_v3, %v5219_v26 }
 0x205   :  { %7474 = vperm.xlu1 %9206, %v7113_v50   ;;  %v13023_v59 = vsel %vm1788_vm1, %v5635_v1, %v12876_v55  ;;  %v9219_v55 = vld [vmem:[%s13825_s1 + $0x54] ss:$8 sps:$4 sm:$0xff]   ;;  %v14439_v50 = vld [vmem:[#allocation41_spill] sm:$0xff]  ;;  %v5518_v53 = vrot.slane %v12973_v40, %v10383_v63  ;;  %v5525_v31 = vrot.slane %v12986_v4, %v10383_v63  ;;  %8195 = vmatprep.subr.bf16.mxu1 %v9222_v33 }
 0x206   :  { %5618 = vperm.xlu0 %9205, %v5509_v6   ;;  %v13027_v13 = vsel %vm1802_vm4, %v3814_v51, %v12934_v47  ;;  %v9221_v47 = vld [vmem:[%s13825_s1 + $0x50] ss:$8 sps:$4 sm:$0xff]   ;;  %v7445_v22 = vpop.permute.xlu1 %7444  ;;  %v7122_v62 = vrot.slane %v14439_v50, %v10383_v63  ;;  %8154 = vmatprep.subr.bf16.mxu0 %v9219_v55  ;;  %v7421_v42 = vcombine.low %v6885_v48, %v6892_v45  ;;  %v9225_v4 = vld [vmem:[%s13825_s1 + $0x44] ss:$8 sps:$4 sm:$0xff]   ;;  %v9227_v48 = vld [vmem:[%s13825_s1 + $0x40] ss:$8 sps:$4 sm:$0xff]  }
 0x207   :  { %v5589_v41 = vpop.permute.xlu0 %5588  ;;  %v7545_v6 = vrot.slane %v7445_v22, %v12488_v54  ;;  %v3616_v52 = vcombine.low %v3608_v2, %v3615_v36  ;;  %8155 = vmatpush1.bf16.msra.mxu0 %v9221_v47  ;;  %v9224_v40 = vld [vmem:[%s13825_s1 + $0x150] ss:$8 sps:$4 sm:$0xff]   ;;  %v14441_v45 = vld [vmem:[#allocation63_spill] sm:$0xff]  ;;  %v5526_v2 = vcombine.low %v5518_v53, %v5525_v31  ;;  %v5229_v31 = vrot.slane %v12869_v46, %v10383_v63 }
 0x208   :  { %v5724_v17 = vrot.slane %v5589_v41, %v12574_v5  ;;  %v2603_v1 = vrot.slane %v14441_v45, %v14395_v8  ;;  %v2610_v51 = vrot.slane %v14441_v45, %v14393_v60  ;;  %v7130_v26 = vcombine.low %v7122_v62, %v7129_v15  ;;  %8196 = vmatpush1.bf16.msra.mxu1 %v9224_v40  ;;  %v14442_v36 = vld [vmem:[#allocation78_spill] sm:$0xff]  ;;  %v14443_v55 = vld [vmem:[#allocation79_spill] sm:$0xff] }
 0x209   :  { %3657 = vperm.xlu1 %9206, %v3310_v18   ;;  %v13063_v54 = vsel %vm1788_vm1, %v7545_v6, %v12931_v23  ;;  %v6409_v23 = vrot.slane %v14438_v32, %v14405_v24  ;;  %v3319_v57 = vrot.slane %v14442_v36, %v10383_v63  ;;  %v3326_v47 = vrot.slane %v14443_v55, %v10383_v63  ;;  %v9230_v62 = vld [vmem:[%s13825_s1 + $0x140] ss:$8 sps:$4 sm:$0xff]   ;;  %v9231_v33 = vld [vmem:[%s13825_s1 + $0x34] ss:$8 sps:$4 sm:$0xff]   ;;  %v9236_v46 = vld [vmem:[%s13825_s1 + $0x130] ss:$8 sps:$4 sm:$0xff]  }
 0x20a   :  { %7528 = vperm.xlu0 %9205, %v7419_v29   ;;  %v13067_v44 = vsel %vm1802_vm4, %v5724_v17, %v12956_v30  ;;  %v6416_v30 = vrot.slane %v14438_v32, %v14403_v37  ;;  %v3628_v18 = vpop.permute.xlu1 %3627  ;;  %8156 = vmatprep.subr.bf16.mxu0 %v9225_v4  ;;  %v7428_v41 = vrot.slane %v13046_v34, %v10383_v63  ;;  %v9234_v15 = vld [vmem:[%s13825_s1 + $0x134] ss:$8 sps:$4 sm:$0xff]  }
 0x20b   :  { %v7499_v29 = vpop.permute.xlu0 %7498  ;;  %v3730_v3 = vrot.slane %v3628_v18, %v12543_v35  ;;  %8197 = vmatprep.subr.bf16.mxu1 %v9228_v39  ;;  %v7435_v50 = vrot.slane %v7421_v42, %v10383_v63  ;;  %8157 = vmatpush1.bf16.msra.mxu0 %v9227_v48  ;;  %v2617_v34 = vrot.slane %v14441_v45, %v14405_v24 }
 0x20c   :  { %v7634_v21 = vrot.slane %v7499_v29, %v12574_v5  ;;  %v13117_v6 = vcombine.low %v6409_v23, %v6416_v30  ;;  %8198 = vmatpush1.bf16.msra.mxu1 %v9230_v62  ;;  %v5236_v42 = vrot.slane %v12888_v28, %v10383_v63  ;;  %8158 = vmatprep.subr.bf16.mxu0 %v9231_v33  ;;  %v9237_v28 = vld [vmem:[%s13825_s1 + $0x24] ss:$8 sps:$4 sm:$0xff]   ;;  %v9239_v23 = vld [vmem:[%s13825_s1 + $0x20] ss:$8 sps:$4 sm:$0xff]  }
 0x20d   :  { %5567 = vperm.xlu1 %9206, %v5220_v43   ;;  %v13097_v32 = vsel %vm1795_vm2, %v3730_v3, %v12990_v10  ;;  %v9233_v10 = vld [vmem:[%s13825_s1 + $0x30] ss:$8 sps:$4 sm:$0xff]   ;;  %v2624_v43 = vrot.slane %v14441_v45, %v14403_v37  ;;  %8199 = vmatprep.subr.bf16.mxu1 %v9234_v15  ;;  %v7436_v48 = vcombine.low %v7428_v41, %v7435_v50  ;;  %v9240_v29 = vld [vmem:[%s13825_s1 + $0x124] ss:$8 sps:$4 sm:$0xff]  }
 0x20e   :  { %3711 = vperm.xlu0 %9205, %v3616_v52   ;;  %v13101_v22 = vsel %vm1802_vm4, %v7634_v21, %v12993_v16  ;;  %v13115_v16 = vcombine.low %v6395_v11, %v6402_v14  ;;  %v5538_v17 = vpop.permute.xlu1 %5537  ;;  %v3327_v14 = vcombine.low %v3319_v57, %v3326_v47  ;;  %v13132_v52 = vcombine.low %v2603_v1, %v2610_v51  ;;  %v9243_v47 = vld [vmem:[%s13825_s1 + $0x14] ss:$8 sps:$4 sm:$0xff]   ;;  %v9245_v41 = vld [vmem:[%s13825_s1 + $0x10] ss:$8 sps:$4 sm:$0xff]  }
 0x20f   :  { %v3682_v20 = vpop.permute.xlu0 %3681  ;;  %v5640_v53 = vrot.slane %v5538_v17, %v12543_v35  ;;  %8159 = vmatpush1.bf16.msra.mxu0 %v9233_v10  ;;  %v3329_v39 = vcombine.low %v2617_v34, %v2624_v43  ;;  %v7146_v36 = vrot.slane %v13117_v6, %v10383_v63  ;;  %v9246_v6 = vld [vmem:[%s13825_s1 + $0x114] ss:$8 sps:$4 sm:$0xff]  }
 0x210   :  { %v3819_v11 = vrot.slane %v3682_v20, %v12587_v0  ;;  %8200 = vmatpush1.bf16.msra.mxu1 %v9236_v46  ;;  %8160 = vmatprep.subr.bf16.mxu0 %v9237_v28  ;;  %v3336_v15 = vrot.slane %v13132_v52, %v10383_v63 }
 0x211   :  { %7477 = vperm.xlu1 %9206, %v7130_v26   ;;  %v13136_v40 = vsel %vm1795_vm2, %v5640_v53, %v13023_v59  ;;  %v14444_v59 = vld [vmem:[#allocation76_spill] sm:$0xff]  ;;  %v5237_v26 = vcombine.low %v5229_v31, %v5236_v42  ;;  %8201 = vmatprep.subr.bf16.mxu1 %v9240_v29  ;;  %v3343_v43 = vrot.slane %v3329_v39, %v10383_v63 }
 0x212   :  { %5621 = vperm.xlu0 %9205, %v5526_v2   ;;  %v13140_v4 = vsel %vm1809_vm5, %v3819_v11, %v13027_v13  ;;  %v4513_v30 = vrot.slane %v14444_v59, %v14395_v8  ;;  %v4520_v13 = vrot.slane %v14444_v59, %v14393_v60  ;;  %v4527_v45 = vrot.slane %v14444_v59, %v14405_v24  ;;  %v7448_v51 = vpop.permute.xlu1 %7447  ;;  %v9248_v11 = vld [vmem:[%s13825_s1 + $0x110] ss:$8 sps:$4 sm:$0xff]  }
 0x213   :  { %v4534_v1 = vrot.slane %v14444_v59, %v14403_v37  ;;  %v5592_v18 = vpop.permute.xlu0 %5591  ;;  %v7550_v3 = vrot.slane %v7448_v51, %v12543_v35  ;;  %v7139_v2 = vrot.slane %v13115_v16, %v10383_v63  ;;  %8161 = vmatpush1.bf16.msra.mxu0 %v9239_v23  ;;  %v9242_v35 = vld [vmem:[%s13825_s1 + $0x120] ss:$8 sps:$4 sm:$0xff]   ;;  %v3344_v28 = vcombine.low %v3336_v15, %v3343_v43 }
 0x214   :  { %v5729_v21 = vrot.slane %v5592_v18, %v12587_v0  ;;  %v5238_v50 = vcombine.low %v4513_v30, %v4520_v13  ;;  %8202 = vmatpush1.bf16.msra.mxu1 %v9242_v35  ;;  %8162 = vmatprep.subr.bf16.mxu0 %v9243_v47  ;;  %v9255_v35 = vld [vmem:[%s13825_s1 + $0xf4] ss:$8 sps:$4 sm:$0xff]  }
 0x215   :  { %3660 = vperm.xlu1 %9206, %v3327_v14   ;;  %v7551_v57 = vsel %vm1795_vm2, %v7550_v3, %v13063_v54  ;;  %v5239_v62 = vcombine.low %v4527_v45, %v4534_v1  ;;  %v14445_v54 = vld [vmem:[#allocation49_spill] sm:$0xff]  ;;  %8203 = vmatprep.subr.bf16.mxu1 %v9246_v6  ;;  %v9251_v14 = vld [vmem:[%s13825_s1] ss:$8 sps:$4 sm:$0xff]   ;;  %v9258_v47 = vld [vmem:[%s13825_s1 + $0x1f4] ss:$8 sps:$4 sm:$0xff]  }
 0x216   :  { %7531 = vperm.xlu0 %9205, %v7436_v48   ;;  %v5730_v55 = vsel %vm1809_vm5, %v5729_v21, %v13067_v44  ;;  %v6423_v33 = vrot.slane %v14445_v54, %v14395_v8  ;;  %v6430_v44 = vrot.slane %v14445_v54, %v14393_v60  ;;  %v3631_v10 = vpop.permute.xlu1 %3630  ;;  %v6437_v34 = vrot.slane %v14445_v54, %v14405_v24  ;;  %v9263_v6 = vld [vmem:[%s13825_s1 + $0xe0] ss:$8 sps:$4 sm:$0xff]  }
 0x217   :  { %v7502_v16 = vpop.permute.xlu0 %7501  ;;  %v3735_v17 = vrot.slane %v3631_v10, %v12574_v5  ;;  %v6444_v8 = vrot.slane %v14445_v54, %v14403_v37  ;;  %v7147_v60 = vcombine.low %v7139_v2, %v7146_v36  ;;  %8163 = vmatpush1.bf16.msra.mxu0 %v9245_v41  ;;  %v9249_v37 = vld [vmem:[%s13825_s1 + $0x4] ss:$8 sps:$4 sm:$0xff]   ;;  %v5246_v23 = vrot.slane %v5238_v50, %v10383_v63  ;;  %v9260_v10 = vld [vmem:[%s13825_s1 + $0x1f0] ss:$8 sps:$4 sm:$0xff]  }
 0x218   :  { %v7639_v20 = vrot.slane %v7502_v16, %v12587_v0  ;;  %8204 = vmatpush1.bf16.msra.mxu1 %v9248_v11  ;;  %8164 = vmatprep.subr.bf16.mxu0 %v9249_v37  ;;  %v5253_v59 = vrot.slane %v5239_v62, %v10383_v63  ;;  %v9261_v16 = vld [vmem:[%s13825_s1 + $0xe4] ss:$8 sps:$4 sm:$0xff]   ;;  %v9269_v11 = vld [vmem:[%s13825_s1 + $0xd0] ss:$8 sps:$4 sm:$0xff]   ;;  %v9270_v37 = vld [vmem:[%s13825_s1 + $0x1d4] ss:$8 sps:$4 sm:$0xff]  }
 0x219   :  { %5570 = vperm.xlu1 %9206, %v5237_v26   ;;  %v3736_v53 = vsel %vm1802_vm4, %v3735_v17, %v13097_v32  ;;  %v9252_v32 = vld [vmem:[%s13825_s1 + $0x104] ss:$8 sps:$4 sm:$0xff]   ;;  %v7149_v46 = vcombine.low %v6437_v34, %v6444_v8 }
 0x21a   :  { %v7640_v24 = vsel %vm1809_vm5, %v7639_v20, %v13101_v22  ;;  %v5541_v31 = vpop.permute.xlu1 %5540  ;;  %v7148_v22 = vcombine.low %v6423_v33, %v6430_v44  ;;  %8205 = vmatprep.subr.bf16.mxu1 %v9252_v32  ;;  %v5254_v29 = vcombine.low %v5246_v23, %v5253_v59  ;;  %v9264_v34 = vld [vmem:[%s13825_s1 + $0x1e4] ss:$8 sps:$4 sm:$0xff]   ;;  %v9279_v23 = vld [vmem:[%s13825_s1 + $0xb4] ss:$8 sps:$4 sm:$0xff]  }
 0x21b   :  { %v3685_v42 = vpop.permute.xlu0 %3684  ;;  %v5645_v52 = vrot.slane %v5541_v31, %v12574_v5  ;;  %8165 = vmatpush1.bf16.msra.mxu0 %v9251_v14  ;;  %v7163_v3 = vrot.slane %v7149_v46, %v10383_v63 }
 0x21c   :  { %v3824_v48 = vrot.slane %v3685_v42, %v12605_v27  ;;  %v7156_v39 = vrot.slane %v7148_v22, %v10383_v63  ;;  %8166 = vmatprep.subr.bf16.mxu0 %v9255_v35  ;;  %v9272_v42 = vld [vmem:[%s13825_s1 + $0x1d0] ss:$8 sps:$4 sm:$0xff]  }
 0x21d   :  { %7480 = vperm.xlu1 %9206, %v7147_v60   ;;  %v5646_v30 = vsel %vm1802_vm4, %v5645_v52, %v13136_v40  ;;  %v9275_v52 = vld [vmem:[%s13825_s1 + $0xc0] ss:$8 sps:$4 sm:$0xff]  }
 0x21e   :  { %v3825_v13 = vsel %vm1816_vm6, %v3824_v48, %v13140_v4  ;;  %v7451_v45 = vpop.permute.xlu1 %7450  ;;  %v9276_v48 = vld [vmem:[%s13825_s1 + $0x1c4] ss:$8 sps:$4 sm:$0xff]  }
 0x21f   :  { %v5595_v1 = vpop.permute.xlu0 %5594  ;;  %v7555_v51 = vrot.slane %v7451_v45, %v12574_v5  ;;  %v9254_v5 = vld [vmem:[%s13825_s1 + $0x100] ss:$8 sps:$4 sm:$0xff]  }
 0x220   :  { %v5734_v18 = vrot.slane %v5595_v1, %v12605_v27  ;;  %8206 = vmatpush1.bf16.msra.mxu1 %v9254_v5  ;;  %v9288_v5 = vld [vmem:[%s13825_s1 + $0x1a4] ss:$8 sps:$4 sm:$0xff]  }
 0x221   :  { %3663 = vperm.xlu1 %9206, %v3344_v28   ;;  %v7556_v21 = vsel %vm1802_vm4, %v7555_v51, %v7551_v57  ;;  %v9257_v57 = vld [vmem:[%s13825_s1 + $0xf0] ss:$8 sps:$4 sm:$0xff]   ;;  %8207 = vmatprep.subr.bf16.mxu1 %v9258_v47 }
 0x222   :  { %v5735_v40 = vsel %vm1816_vm6, %v5734_v18, %v5730_v55  ;;  %v3634_v26 = vpop.permute.xlu1 %3633  ;;  %v7164_v55 = vcombine.low %v7156_v39, %v7163_v3  ;;  %8167 = vmatpush2.bf16.msra.mxu0 %v9257_v57  ;;  %v9281_v51 = vld [vmem:[%s13825_s1 + $0xb0] ss:$8 sps:$4 sm:$0xff]   ;;  %v9282_v18 = vld [vmem:[%s13825_s1 + $0x1b4] ss:$8 sps:$4 sm:$0xff]   ;;  %v9285_v3 = vld [vmem:[%s13825_s1 + $0xa4] ss:$8 sps:$4 sm:$0xff]  }
 0x223   :  { %v7505_v4 = vpop.permute.xlu0 %7504  ;;  %v3740_v2 = vrot.slane %v3634_v26, %v12587_v0  ;;  %8168 = vmatprep.subr.bf16.mxu0 %v9261_v16  ;;  %v9284_v26 = vld [vmem:[%s13825_s1 + $0x1b0] ss:$8 sps:$4 sm:$0xff]   ;;  %v9297_v16 = vld [vmem:[%s13825_s1 + $0x84] ss:$8 sps:$4 sm:$0xff]  }
 0x224   :  { %v7644_v36 = vrot.slane %v7505_v4, %v12605_v27  ;;  %8208 = vmatpush2.bf16.msra.mxu1 %v9260_v10 }
 0x225   :  { %5573 = vperm.xlu1 %9206, %v5254_v29   ;;  %v3741_v41 = vsel %vm1809_vm5, %v3740_v2, %v3736_v53  ;;  %8209 = vmatprep.subr.bf16.mxu1 %v9264_v34  ;;  %v9266_v53 = vld [vmem:[%s13825_s1 + $0x1e0] ss:$8 sps:$4 sm:$0xff]  }
 0x226   :  { %v7645_v50 = vsel %vm1816_vm6, %v7644_v36, %v7640_v24  ;;  %v5544_v62 = vpop.permute.xlu1 %5543  ;;  %8169 = vmatpush2.bf16.msra.mxu0 %v9263_v6  ;;  %v9267_v24 = vld [vmem:[%s13825_s1 + $0xd4] ss:$8 sps:$4 sm:$0xff]   ;;  %v9287_v36 = vld [vmem:[%s13825_s1 + $0xa0] ss:$8 sps:$4 sm:$0xff]  }
 0x227   :  { %v3688_v54 = vpop.permute.xlu0 %3687  ;;  %v5650_v33 = vrot.slane %v5544_v62, %v12587_v0  ;;  %8170 = vmatprep.subr.bf16.mxu0 %v9267_v24  ;;  %v9305_v24 = vld [vmem:[%s13827_s3 + $0x154] ss:$24 sps:$4 sm:$0xff]  }
 0x228   :  { %v3829_v44 = vrot.slane %v3688_v54, %v12621_v38  ;;  %8210 = vmatpush2.bf16.msra.mxu1 %v9266_v53 }
 0x229   :  { %7483 = vperm.xlu1 %9206, %v7164_v55   ;;  %v5651_v17 = vsel %vm1809_vm5, %v5650_v33, %v5646_v30  ;;  %8211 = vmatprep.subr.bf16.mxu1 %v9270_v37  ;;  %v9291_v55 = vld [vmem:[%s13825_s1 + $0x94] ss:$8 sps:$4 sm:$0xff]  }
 0x22a   :  { %v3830_v20 = vsel %vm1823_vm7, %v3829_v44, %v3825_v13  ;;  %v7454_v8 = vpop.permute.xlu1 %7453  ;;  %8171 = vmatpush2.bf16.msra.mxu0 %v9269_v11  ;;  %v9278_v13 = vld [vmem:[%s13825_s1 + $0x1c0] ss:$8 sps:$4 sm:$0xff]   ;;  %v9294_v33 = vld [vmem:[%s13825_s1 + $0x194] ss:$8 sps:$4 sm:$0xff]  }
 0x22b   :  { %v7560_v15 = vrot.slane %v7454_v8, %v12587_v0  ;;  %v9273_v0 = vld [vmem:[%s13825_s1 + $0xc4] ss:$8 sps:$4 sm:$0xff]  }
 0x22c   :  { %v5598_v60 = vpop.permute.xlu0 %5597  ;;  %8172 = vmatprep.subr.bf16.mxu0 %v9273_v0  ;;  %8212 = vmatpush2.bf16.msra.mxu1 %v9272_v42  ;;  %v9302_v0 = vld [vmem:[%s13825_s1 + $0x180] ss:$8 sps:$4 sm:$0xff]   ;;  %v9308_v42 = vld [vmem:[%s13827_s3 + $0x15c] ss:$24 sps:$4 sm:$0xff]  }
 0x22d   :  { %v5739_v43 = vrot.slane %v5598_v60, %v12621_v38  ;;  %v7561_v14 = vsel %vm1809_vm5, %v7560_v15, %v7556_v21  ;;  %8213 = vmatprep.subr.bf16.mxu1 %v9276_v48  ;;  %v9299_v60 = vld [vmem:[%s13825_s1 + $0x80] ss:$8 sps:$4 sm:$0xff]   ;;  %v9300_v15 = vld [vmem:[%s13825_s1 + $0x184] ss:$8 sps:$4 sm:$0xff]  }
 0x22e   :  { %8173 = vmatpush2.bf16.msra.mxu0 %v9275_v52 }
 0x22f   :  { %v5740_v31 = vsel %vm1823_vm7, %v5739_v43, %v5735_v40  ;;  %v3637_v32 = vpop.permute.xlu1 %3636  ;;  %8174 = vmatprep.subr.bf16.mxu0 %v9279_v23 }
 0x230   :  { %v7508_v22 = vpop.permute.xlu0 %7507  ;;  %v3745_v46 = vrot.slane %v3637_v32, %v12605_v27  ;;  %8214 = vmatpush2.bf16.msra.mxu1 %v9278_v13 }
 0x231   :  { %v7649_v28 = vrot.slane %v7508_v22, %v12621_v38  ;;  %8215 = vmatprep.subr.bf16.mxu1 %v9282_v18 }
 0x232   :  { %v3746_v59 = vsel %vm1816_vm6, %v3745_v46, %v3741_v41  ;;  %8175 = vmatpush2.bf16.msra.mxu0 %v9281_v51 }
 0x233   :  { %v7650_v30 = vsel %vm1823_vm7, %v7649_v28, %v7645_v50  ;;  %8176 = vmatprep.subr.bf16.mxu0 %v9285_v3  ;;  %v9290_v50 = vld [vmem:[%s13825_s1 + $0x1a0] ss:$8 sps:$4 sm:$0xff]  }
 0x234   :  { %v5547_v45 = vpop.permute.xlu1 %5546  ;;  %8216 = vmatpush2.bf16.msra.mxu1 %v9284_v26 }
 0x235   :  { %v3691_v1 = vpop.permute.xlu0 %3690  ;;  %v5655_v29 = vrot.slane %v5547_v45, %v12605_v27  ;;  %8217 = vmatprep.subr.bf16.mxu1 %v9288_v5 }
 0x236   :  { %v3834_v39 = vrot.slane %v3691_v1, %v12633_v25  ;;  %8177 = vmatpush2.bf16.msra.mxu0 %v9287_v36 }
 0x237   :  { %v5656_v21 = vsel %vm1816_vm6, %v5655_v29, %v5651_v17  ;;  %8178 = vmatprep.subr.bf16.mxu0 %v9291_v55  ;;  %v9296_v17 = vld [vmem:[%s13825_s1 + $0x190] ss:$8 sps:$4 sm:$0xff]  }
 0x238   :  { %v3835_v40 = vsel %vm1830_vm8, %v3834_v39, %v3830_v20  ;;  %v7457_v4 = vpop.permute.xlu1 %7456  ;;  %8218 = vmatpush2.bf16.msra.mxu1 %v9290_v50 }
 0x239   :  { %v5601_v2 = vpop.permute.xlu0 %5600  ;;  %v7565_v35 = vrot.slane %v7457_v4, %v12605_v27  ;;  %v9293_v27 = vld [vmem:[%s13825_s1 + $0x90] ss:$8 sps:$4 sm:$0xff]   ;;  %8219 = vmatprep.subr.bf16.mxu1 %v9294_v33 }
 0x23a   :  { %v5744_v57 = vrot.slane %v5601_v2, %v12633_v25  ;;  %8179 = vmatpush2.bf16.msra.mxu0 %v9293_v27 }
 0x23b   :  { %v7566_v47 = vsel %vm1816_vm6, %v7565_v35, %v7561_v14  ;;  %8180 = vmatprep.subr.bf16.mxu0 %v9297_v16 }
 0x23c   :  { %v5745_v41 = vsel %vm1830_vm8, %v5744_v57, %v5740_v31  ;;  %v3640_v62 = vpop.permute.xlu1 %3639  ;;  %8220 = vmatpush2.bf16.msra.mxu1 %v9296_v17 }
 0x23d   :  { %v7511_v54 = vpop.permute.xlu0 %7510  ;;  %v3750_v44 = vrot.slane %v3640_v62, %v12621_v38  ;;  %8221 = vmatprep.subr.bf16.mxu1 %v9300_v15 }
 0x23e   :  { %v7654_v10 = vrot.slane %v7511_v54, %v12633_v25  ;;  %8181 = vmatpush2.bf16.msra.mxu0 %v9299_v60 }
 0x23f   :  { %v3751_v6 = vsel %vm1823_vm7, %v3750_v44, %v3746_v59  ;;  %8854 = vmatprep.subr.bf16.mxu0 %v9305_v24 }
 0x240   :  { %v7655_v34 = vsel %vm1830_vm8, %v7654_v10, %v7650_v30  ;;  %v5550_v20 = vpop.permute.xlu1 %5549  ;;  %8222 = vmatpush2.bf16.msra.mxu1 %v9302_v0 }
 0x241   :  { %v3694_v8 = vpop.permute.xlu0 %3693  ;;  %v5660_v43 = vrot.slane %v5550_v20, %v12621_v38  ;;  %8895 = vmatprep.subr.bf16.mxu1 %v9308_v42 }
 0x242   :  { %v3839_v53 = vrot.slane %v3694_v8, %v12546_v12 }
 0x243   :  { %v5661_v11 = vsel %vm1823_vm7, %v5660_v43, %v5656_v21 }
 0x244   :  { %v13358_v37 = vsel %vm1837_vm9, %v3839_v53, %v3835_v40  ;;  %v7460_v14 = vpop.permute.xlu1 %7459 }
 0x245   :  { %v5604_v31 = vpop.permute.xlu0 %5603  ;;  %v7570_v32 = vrot.slane %v7460_v14, %v12621_v38 }
 0x246   :  { %v5749_v22 = vrot.slane %v5604_v31, %v12546_v12 }
 0x247   :  { %v7571_v52 = vsel %vm1823_vm7, %v7570_v32, %v7566_v47 }
 0x248   :  { %v13370_v48 = vsel %vm1837_vm9, %v5749_v22, %v5745_v41  ;;  %v3643_v46 = vpop.permute.xlu1 %3642 }
 0x249   :  { %v7514_v28 = vpop.permute.xlu0 %7513  ;;  %v3755_v23 = vrot.slane %v3643_v46, %v12633_v25 }
 0x24a   :  { %v7659_v59 = vrot.slane %v7514_v28, %v12546_v12 }
 0x24b   :  { %v3756_v30 = vsel %vm1830_vm8, %v3755_v23, %v3751_v6 }
 0x24c   :  { %v7660_v38 = vsel %vm1837_vm9, %v7659_v59, %v7655_v34  ;;  %v5553_v13 = vpop.permute.xlu1 %5552 }
 0x24d   :  { %v3697_v45 = vpop.permute.xlu0 %3696  ;;  %v5665_v1 = vrot.slane %v5553_v13, %v12633_v25 }
 0x24e   :  { %v3844_v31 = vrot.slane %v3697_v45, %v12663_v19 }
 0x24f   :  { %v5666_v51 = vsel %vm1830_vm8, %v5665_v1, %v5661_v11 }
 0x250   :  { %v7463_v18 = vpop.permute.xlu1 %7462 }
 0x251   :  { %v5607_v29 = vpop.permute.xlu0 %5606  ;;  %v7575_v39 = vrot.slane %v7463_v18, %v12633_v25 }
 0x252   :  { %v5754_v42 = vrot.slane %v5607_v29, %v12663_v19 }
 0x253   :  { %v7576_v3 = vsel %vm1830_vm8, %v7575_v39, %v7571_v52 }
 0x254   :  { %v3646_v21 = vpop.permute.xlu1 %3645  ;;  %v5755_v1 = vsel %vm1844_vm10, %v5754_v42, %v13370_v48 }
 0x255   :  { %v7517_v40 = vpop.permute.xlu0 %7516  ;;  %v3760_v26 = vrot.slane %v3646_v21, %v12546_v12 }
 0x256   :  { %v7664_v32 = vrot.slane %v7517_v40, %v12663_v19 }
 0x257   :  { %v3761_v4 = vsel %vm1837_vm9, %v3760_v26, %v3756_v30  ;;  %v3845_v30 = vsel %vm1844_vm10, %v3844_v31, %v13358_v37 }
 0x258   :  { %v5556_v2 = vpop.permute.xlu1 %5555 }
 0x259   :  { %v3700_v36 = vpop.permute.xlu0 %3699  ;;  %v5670_v5 = vrot.slane %v5556_v2, %v12546_v12 }
 0x25a   :  { %v3849_v22 = vrot.slane %v3700_v36, %v12577_v9 }
 0x25b   :  { %v5671_v35 = vsel %vm1837_vm9, %v5670_v5, %v5666_v51  ;;  %v7665_v51 = vsel %vm1844_vm10, %v7664_v32, %v7660_v38 }
 0x25c   :  { %v7466_v57 = vpop.permute.xlu1 %7465  ;;  %v3850_v39 = vsel %vm1851_vm11, %v3849_v22, %v3845_v30 }
 0x25d   :  { %v5610_v55 = vpop.permute.xlu0 %5609  ;;  %v7580_v47 = vrot.slane %v7466_v57, %v12546_v12 }
 0x25e   :  { %v5759_v52 = vrot.slane %v5610_v55, %v12577_v9 }
 0x25f   :  { %v7581_v25 = vsel %vm1837_vm9, %v7580_v47, %v7576_v3 }
 0x260   :  { %v3649_v41 = vpop.permute.xlu1 %3648  ;;  %v5760_v3 = vsel %vm1851_vm11, %v5759_v52, %v5755_v1 }
 0x261   :  { %v7520_v50 = vpop.permute.xlu0 %7519  ;;  %v3765_v46 = vrot.slane %v3649_v41, %v12663_v19 }
 0x262   :  { %v7669_v28 = vrot.slane %v7520_v50, %v12577_v9 }
 0x263   :  { %v3766_v21 = vsel %vm1844_vm10, %v3765_v46, %v3761_v4  ;;  %v2080_v46 = vld [vmem:[#allocation2 + $0x2] sm:$0x3] }
 0x264   :  { %v5559_v62 = vpop.permute.xlu1 %5558  ;;  %v7670_v40 = vsel %vm1851_vm11, %v7669_v28, %v7665_v51 }
 0x265   :  { %v3703_v54 = vpop.permute.xlu0 %3702  ;;  %v5675_v13 = vrot.slane %v5559_v62, %v12663_v19 }
 0x266   :  { %v3854_v45 = vrot.slane %v3703_v54, %v12699_v56 }
 0x268   :  { %v7469_v27 = vpop.permute.xlu1 %7468  ;;  %v3855_v36 = vsel %vm1858_vm12, %v3854_v45, %v3850_v39 }
 0x269   :  { %v5613_v33 = vpop.permute.xlu0 %5612  ;;  %v7585_v18 = vrot.slane %v7469_v27, %v12663_v19  ;;  %v5676_v19 = vsel %vm1844_vm10, %v5675_v13, %v5671_v35 }
 0x26a   :  { %v5764_v29 = vrot.slane %v5613_v33, %v12699_v56 }
 0x26b   :  { %v7586_v57 = vsel %vm1844_vm10, %v7585_v18, %v7581_v25 }
 0x26c   :  { %v3652_v44 = vpop.permute.xlu1 %3651  ;;  %v5765_v55 = vsel %vm1858_vm12, %v5764_v29, %v5760_v3  ;;  %v3990_v3 = vld [vmem:[#allocation2 + $0x4] sm:$0x3] }
 0x26d   :  { %v13386_v10 = vpop.permute.xlu0 %7522  ;;  %v3770_v37 = vrot.slane %v3652_v44, %v12577_v9 }
 0x26e   :  { %v7674_v35 = vrot.slane %v13386_v10, %v12699_v56 }
 0x26f   :  { %v3771_v62 = vsel %vm1851_vm11, %v3770_v37, %v3766_v21 }
 0x270   :  { %v5562_v16 = vpop.permute.xlu1 %5561 }
 0x271   :  { %v3706_v6 = vpop.permute.xlu0 %3705  ;;  %v5680_v26 = vrot.slane %v5562_v16, %v12577_v9 }
 0x272   :  { %v3859_v48 = vrot.slane %v3706_v6, %v12724_v61 }
 0x273   :  { %v5681_v27 = vsel %vm1851_vm11, %v5680_v26, %v5676_v19 }
 0x274   :  { %v7472_v34 = vpop.permute.xlu1 %7471  ;;  %v3860_v25 = vsel %vm1865_vm13, %v3859_v48, %v3855_v36 }
 0x275   :  { %v13388_v17 = vpop.permute.xlu0 %5615  ;;  %v7590_v5 = vrot.slane %v7472_v34, %v12577_v9 }
 0x276   :  { %v5769_v54 = vrot.slane %v13388_v17, %v12724_v61 }
 0x277   :  { %v7591_v6 = vsel %vm1851_vm11, %v7590_v5, %v7586_v57  ;;  %v5900_v5 = vld [vmem:[#allocation2 + $0x6] sm:$0x3] }
 0x278   :  { %v3655_v20 = vpop.permute.xlu1 %3654 }
 0x279   :  { %v13390_v8 = vpop.permute.xlu0 %7525  ;;  %v3775_v38 = vrot.slane %v3655_v20, %v12699_v56 }
 0x27b   :  { %v3776_v33 = vsel %vm1858_vm12, %v3775_v38, %v3771_v62 }
 0x27c   :  { %v13392_v12 = vpop.permute.xlu1 %5564 }
 0x27d   :  { %v3709_v15 = vpop.permute.xlu0 %3708  ;;  %v5685_v44 = vrot.slane %v13392_v12, %v12699_v56  ;;  %v5770_v12 = vsel %vm1865_vm13, %v5769_v54, %v5765_v55 }
 0x27e   :  { %v3864_v47 = vrot.slane %v3709_v15, %v12735_v7 }
 0x27f   :  { %v5686_v22 = vsel %vm1858_vm12, %v5685_v44, %v5681_v27  ;;  %v9303_v27 = vld [vmem:[%s13827_s3 + $0x150] ss:$24 sps:$4 sm:$0xff]  }
 0x280   :  { %v13394_v60 = vpop.permute.xlu1 %7474  ;;  %v3865_v20 = vsel %vm1872_vm14, %v3864_v47, %v3860_v25 }
 0x281   :  { %v13396_v53 = vpop.permute.xlu0 %5618 }
 0x282   :  { %v5774_v15 = vrot.slane %v13396_v53, %v12735_v7  ;;  %v7595_v53 = vrot.slane %v13394_v60, %v12699_v56 }
 0x284   :  { %v3658_v43 = vpop.permute.xlu1 %3657  ;;  %v7596_v39 = vsel %vm1858_vm12, %v7595_v53, %v7591_v6  ;;  %v9327_v53 = vld [vmem:[%s13827_s3 + $0x90] ss:$24 sps:$4 sm:$0xff]  }
 0x285   :  { %v13402_v0 = vpop.permute.xlu0 %7528  ;;  %v3780_v4 = vrot.slane %v3658_v43, %v12724_v61 }
 0x286   :  { %v7684_v1 = vrot.slane %v13402_v0, %v12735_v7 }
 0x287   :  { %v3781_v34 = vsel %vm1865_vm13, %v3780_v4, %v3776_v33  ;;  %v9311_v33 = vld [vmem:[%s13827_s3 + $0x124] ss:$24 sps:$4 sm:$0xff]  }
 0x288   :  { %v13398_v24 = vpop.permute.xlu1 %5567 }
 0x289   :  { %v3712_v23 = vpop.permute.xlu0 %3711  ;;  %v5690_v10 = vrot.slane %v13398_v24, %v12724_v61  ;;  %v7679_v24 = vrot.slane %v13390_v8, %v12724_v61  ;;  %v5775_v8 = vsel %vm1872_vm14, %v5774_v15, %v5770_v12  ;;  %v9320_v15 = vld [vmem:[%s13827_s3 + $0xfc] ss:$24 sps:$4 sm:$0xff]   ;;  %v9318_v12 = vld [vmem:[%s13827_s3 + $0xf8] ss:$24 sps:$4 sm:$0xff]  }
 0x28a   :  { %v3869_v9 = vrot.slane %v3712_v23, %v12749_v58 }
 0x28c   :  { %v13400_v11 = vpop.permute.xlu1 %7477  ;;  %v3870_v31 = vsel %vm1879_vm15, %v3869_v9, %v3865_v20  ;;  %v9312_v20 = vld [vmem:[%s13827_s3 + $0x128] ss:$24 sps:$4 sm:$0xff]  }
 0x28d   :  { %v5622_v41 = vpop.permute.xlu0 %5621  ;;  %v7600_v30 = vrot.slane %v13400_v11, %v12724_v61  ;;  %v7675_v11 = vsel %vm1858_vm12, %v7674_v35, %v7670_v40 }
 0x28e   :  { %v5779_v42 = vrot.slane %v5622_v41, %v12749_v58  ;;  %v7680_v37 = vsel %vm1865_vm13, %v7679_v24, %v7675_v11  ;;  %v9324_v24 = vld [vmem:[%s13827_s3 + $0xc8] ss:$24 sps:$4 sm:$0xff]   ;;  %v9359_v11 = vld [vmem:[%s13827_s3 + $0x2a4] ss:$24 sps:$4 sm:$0xff]  }
 0x28f   :  { %v7601_v26 = vsel %vm1865_vm13, %v7600_v30, %v7596_v39  ;;  %v7685_v38 = vsel %vm1872_vm14, %v7684_v1, %v7680_v37  ;;  %v9336_v30 = vld [vmem:[%s13827_s3 + $0x68] ss:$24 sps:$4 sm:$0xff]   ;;  %v9342_v1 = vld [vmem:[%s13827_s3 + $0x38] ss:$24 sps:$4 sm:$0xff]  }
 0x290   :  { %v3661_v14 = vpop.permute.xlu1 %3660  ;;  %v5780_v51 = vsel %vm1879_vm15, %v5779_v42, %v5775_v8  ;;  %v9321_v42 = vld [vmem:[%s13827_s3 + $0xc0] ss:$24 sps:$4 sm:$0xff]   ;;  %v9347_v8 = vld [vmem:[%s13827_s3 + $0x4] ss:$24 sps:$4 sm:$0xff]  }
 0x291   :  { %v3785_v50 = vrot.slane %v3661_v14, %v12735_v7  ;;  %v7532_v52 = vpop.permute.xlu0 %7531  ;;  %v9354_v39 = vld [vmem:[%s13827_s3 + $0x2d8] ss:$24 sps:$4 sm:$0xff]   ;;  %v9360_v37 = vld [vmem:[%s13827_s3 + $0x2a8] ss:$24 sps:$4 sm:$0xff]  }
 0x292   :  { %v7689_v18 = vrot.slane %v7532_v52, %v12749_v58  ;;  %v9335_v52 = vld [vmem:[%s13827_s3 + $0x64] ss:$24 sps:$4 sm:$0xff]  }
 0x293   :  { %v3786_v43 = vsel %vm1872_vm14, %v3785_v50, %v3781_v34  ;;  %v9314_v34 = vld [vmem:[%s13827_s3 + $0x12c] ss:$24 sps:$4 sm:$0xff]  }
 0x294   :  { %v5571_v59 = vpop.permute.xlu1 %5570  ;;  %v7690_v40 = vsel %vm1879_vm15, %v7689_v18, %v7685_v38  ;;  %v9348_v18 = vld [vmem:[%s13827_s3 + $0x8] ss:$24 sps:$4 sm:$0xff]   ;;  %v9366_v38 = vld [vmem:[%s13827_s3 + $0x278] ss:$24 sps:$4 sm:$0xff]  }
 0x295   :  { %v5695_v14 = vrot.slane %v5571_v59, %v12735_v7  ;;  %v5691_v59 = vsel %vm1865_vm13, %v5690_v10, %v5686_v22  ;;  %v9309_v10 = vld [vmem:[%s13827_s3 + $0x120] ss:$24 sps:$4 sm:$0xff]   ;;  %v9332_v22 = vld [vmem:[%s13827_s3 + $0x9c] ss:$24 sps:$4 sm:$0xff]  }
 0x297   :  { %v5696_v56 = vsel %vm1872_vm14, %v5695_v14, %v5691_v59  ;;  %v9323_v14 = vld [vmem:[%s13827_s3 + $0xc4] ss:$24 sps:$4 sm:$0xff]   ;;  %v9341_v59 = vld [vmem:[%s13827_s3 + $0x34] ss:$24 sps:$4 sm:$0xff]  }
 0x298   :  { %v13428_v2 = vpop.permute.xlu1 %7480 }
 0x299   :  { %v7605_v60 = vrot.slane %v13428_v2, %v12735_v7 }
 0x29b   :  { %v7606_v2 = vsel %vm1872_vm14, %v7605_v60, %v7601_v26  ;;  %v9345_v60 = vld [vmem:[%s13827_s3] ss:$24 sps:$4 sm:$0xff]   ;;  %v9368_v26 = vld [vmem:[%s13827_s3 + $0x27c] ss:$24 sps:$4 sm:$0xff]  }
 0x29c   :  { %v3664_v16 = vpop.permute.xlu1 %3663 }
 0x29d   :  { %v3790_v17 = vrot.slane %v3664_v16, %v12749_v58  ;;  %v9306_v16 = vld [vmem:[%s13827_s3 + $0x158] ss:$24 sps:$4 sm:$0xff]  }
 0x29f   :  { %v3791_v32 = vsel %vm1879_vm15, %v3790_v17, %v3786_v43  ;;  %v9317_v17 = vld [vmem:[%s13827_s3 + $0xf4] ss:$24 sps:$4 sm:$0xff]   ;;  %v9315_v43 = vld [vmem:[%s13827_s3 + $0xf0] ss:$24 sps:$4 sm:$0xff]  }
 0x2a0   :  { %v3871_v28 = vsel %vm1960_vm3, %v3870_v31, %v3791_v32  ;;  %v5574_v23 = vpop.permute.xlu1 %5573  ;;  %v9326_v31 = vld [vmem:[%s13827_s3 + $0xcc] ss:$24 sps:$4 sm:$0xff]  }
 0x2a1   :  { %v3878_v13 = vrot.slane %v3871_v28, %v10383_v63  ;;  %v5700_v45 = vrot.slane %v5574_v23, %v12749_v58  ;;  %v9329_v32 = vld [vmem:[%s13827_s3 + $0x94] ss:$24 sps:$4 sm:$0xff]   ;;  %v9333_v23 = vld [vmem:[%s13827_s3 + $0x60] ss:$24 sps:$4 sm:$0xff]  }
 0x2a2   :  { %v9338_v28 = vld [vmem:[%s13827_s3 + $0x6c] ss:$24 sps:$4 sm:$0xff]  }
 0x2a3   :  { %v3880_v29 = vadd.f32 %v3878_v13, %v2080_v46  ;;  %v5701_v61 = vsel %vm1879_vm15, %v5700_v45, %v5696_v56  ;;  %v9330_v46 = vld [vmem:[%s13827_s3 + $0x98] ss:$24 sps:$4 sm:$0xff]   ;;  %v9344_v13 = vld [vmem:[%s13827_s3 + $0x3c] ss:$24 sps:$4 sm:$0xff]   ;;  %v9350_v56 = vld [vmem:[%s13827_s3 + $0xc] ss:$24 sps:$4 sm:$0xff]  }
 0x2a4   :  { %v5781_v21 = vsel %vm1960_vm3, %v5780_v51, %v5701_v61  ;;  %v7484_v0 = vpop.permute.xlu1 %7483  ;;  %v9339_v45 = vld [vmem:[%s13827_s3 + $0x30] ss:$24 sps:$4 sm:$0xff]   ;;  %v9353_v51 = vld [vmem:[%s13827_s3 + $0x2d4] ss:$24 sps:$4 sm:$0xff]  }
 0x2a5   :  { %3881 = vst [vmem:[#allocation2 + $0x2] sm:$0x3] %v3880_v29  ;;  %v5788_v7 = vrot.slane %v5781_v21, %v10383_v63  ;;  %v7610_v48 = vrot.slane %v7484_v0, %v12749_v58  ;;  %v9356_v29 = vld [vmem:[%s13827_s3 + $0x2dc] ss:$24 sps:$4 sm:$0xff]   ;;  %v9351_v61 = vld [vmem:[%s13827_s3 + $0x2d0] ss:$24 sps:$4 sm:$0xff]  }
 0x2a6   :  { %v9357_v21 = vld [vmem:[%s13827_s3 + $0x2a0] ss:$24 sps:$4 sm:$0xff]   ;;  %v9365_v0 = vld [vmem:[%s13827_s3 + $0x274] ss:$24 sps:$4 sm:$0xff]  }
 0x2a7   :  { %v5790_v19 = vadd.f32 %v5788_v7, %v3990_v3  ;;  %v7611_v36 = vsel %vm1879_vm15, %v7610_v48, %v7606_v2  ;;  %v9362_v3 = vld [vmem:[%s13827_s3 + $0x2ac] ss:$24 sps:$4 sm:$0xff]   ;;  %v9363_v7 = vld [vmem:[%s13827_s3 + $0x270] ss:$24 sps:$4 sm:$0xff]  }
 0x2a8   :  { %v7691_v4 = vsel %vm1960_vm3, %v7690_v40, %v7611_v36  ;;  %v9371_v48 = vld [vmem:[%s13827_s3 + $0x244] ss:$24 sps:$4 sm:$0xff]   ;;  %v9369_v40 = vld [vmem:[%s13827_s3 + $0x240] ss:$24 sps:$4 sm:$0xff]  }
 0x2a9   :  { %5791 = vst [vmem:[#allocation2 + $0x4] sm:$0x3] %v5790_v19  ;;  %v7698_v57 = vrot.slane %v7691_v4, %v10383_v63  ;;  %v9374_v2 = vld [vmem:[%s13827_s3 + $0x24c] ss:$24 sps:$4 sm:$0xff]   ;;  %v9372_v36 = vld [vmem:[%s13827_s3 + $0x248] ss:$24 sps:$4 sm:$0xff]  }
 0x2aa   :  { %v9377_v19 = vld [vmem:[%s13827_s3 + $0x214] ss:$24 sps:$4 sm:$0xff]   ;;  %v9375_v4 = vld [vmem:[%s13827_s3 + $0x210] ss:$24 sps:$4 sm:$0xff]  }
 0x2ab   :  { %v7700_v55 = vadd.f32 %v7698_v57, %v5900_v5  ;;  %v9380_v5 = vld [vmem:[%s13827_s3 + $0x21c] ss:$24 sps:$4 sm:$0xff]  }
 0x2ac   :  { %v9383_v57 = vld [vmem:[%s13827_s3 + $0x1e4] ss:$24 sps:$4 sm:$0xff]  }
 0x2ad   :  { %7701 = vst [vmem:[#allocation2 + $0x6] sm:$0x3] %v7700_v55  ;;  %v9378_v55 = vld [vmem:[%s13827_s3 + $0x218] ss:$24 sps:$4 sm:$0xff]  }
 0x2b4   :  { %v7726_v47 = vld [vmem:[#allocation2] sm:$0xff] }
 0x2b5   :  { %v7727_v41 = vmul.f32 0.015625, %v7726_v47  ;;  %v9386_v47 = vld [vmem:[%s13827_s3 + $0x1ec] ss:$24 sps:$4 sm:$0xff]  }
 0x2b7   :  { %v7736_v58 = vrot.slane %v7727_v41, %v10383_v63  ;;  %v7729_v50 = vcombine.high %v7727_v41, %v7727_v41  ;;  %v9381_v41 = vld [vmem:[%s13827_s3 + $0x1e0] ss:$24 sps:$4 sm:$0xff]  }
 0x2b9   :  { %v7744_v62 = vcombine.high %v7736_v58, %v7736_v58  ;;  %v7743_v35 = vrot.slane %v7729_v50, %v10383_v63  ;;  %v7750_v25 = vpack.c.bf16 %v7736_v58, %v7736_v58  ;;  %v9384_v58 = vld [vmem:[%s13827_s3 + $0x1e8] ss:$24 sps:$4 sm:$0xff]  }
 0x2ba   :  { %v9387_v50 = vld [vmem:[%s13827_s3 + $0x1b0] ss:$24 sps:$4 sm:$0xff]  }
 0x2bb   :  { %v7751_v54 = vpack.c.bf16 %v7744_v62, %v7744_v62  ;;  %v7745_v9 = vcombine.high %v7743_v35, %v7743_v35  ;;  %v7752_v6 = vpack.c.bf16 %v7743_v35, %v7743_v35  ;;  %v9389_v62 = vld [vmem:[%s13827_s3 + $0x1b4] ss:$24 sps:$4 sm:$0xff]   ;;  %v9390_v35 = vld [vmem:[%s13827_s3 + $0x1b8] ss:$24 sps:$4 sm:$0xff]  }
 0x2bd   :  { %8182 = vmatprep.mubr.bf16.mxu0 %v7751_v54  ;;  %v7753_v44 = vpack.c.bf16 %v7745_v9, %v7745_v9  ;;  %v9392_v54 = vld [vmem:[%s13827_s3 + $0x1bc] ss:$24 sps:$4 sm:$0xff]   ;;  %v9393_v9 = vld [vmem:[%s13827_s3 + $0x180] ss:$24 sps:$4 sm:$0xff]  }
 0x2be   :  { %8183 = vmatmul.mubr.bf16.vlgmr.msra.gmra.mxu0 %v7750_v25  ;;  %v9396_v25 = vld [vmem:[%s13827_s3 + $0x188] ss:$24 sps:$4 sm:$0xff]  }
 0x2bf   :  { %8223 = vmatprep.mubr.bf16.mxu1 %v7753_v44  ;;  %8855 = vmatpush1.bf16.msra.mxu0 %v9303_v27  ;;  %v9395_v27 = vld [vmem:[%s13827_s3 + $0x184] ss:$24 sps:$4 sm:$0xff]  }
 0x2c0   :  { %8224 = vmatmul.mubr.bf16.vlgmr.msra.gmra.mxu1 %v7752_v6  ;;  %8856 = vmatprep.subr.bf16.mxu0 %v9311_v33  ;;  %v9398_v33 = vld [vmem:[%s13827_s3 + $0x18c] ss:$24 sps:$4 sm:$0xff]  }
 0x2c1   :  { %8896 = vmatpush1.bf16.msra.mxu1 %v9306_v16  ;;  %v9401_v44 = vld [vmem:[%s13827_s3 + $0x164] ss:$24 sps:$4 sm:$0xff]   ;;  %v13690_v16 = vld [vmem:[%s13829_s5] sm:$0x3] }
 0x2c2   :  { %8897 = vmatprep.subr.bf16.mxu1 %v9314_v34  ;;  %v7717_v6 = vmul.f32 %v13690_v16, %v13690_v16 }
 0x2c3   :  { %8857 = vmatpush1.bf16.msra.mxu0 %v9309_v10  ;;  %v7822_v10 = vsub.s32 0, %v14345_v49 }
 0x2c4   :  { %8858 = vmatprep.subr.bf16.mxu0 %v9317_v17  ;;  %v7719_v34 = vsel %vm7718_vm0, %v7717_v6, 0.0  ;;  %v7818_v17 = vld [vmem:[%s13826_s2] sm:$0x3] }
 0x2c5   :  { %8898 = vmatpush1.bf16.msra.mxu1 %v9312_v20  ;;  %7720 = vadd.xlane.f32.xlu1 %v7719_v34  ;;  %v7826_v20 = vsub.s32 1, %v14345_v49 }
 0x2c6   :  { %8899 = vmatprep.subr.bf16.mxu1 %v9320_v15  ;;  %v7823_v15 = vrot.slane %v7818_v17, %v7822_v10 }
 0x2c7   :  { %8859 = vmatpush1.bf16.msra.mxu0 %v9315_v43  ;;  %v7827_v43 = vrot.slane %v7818_v17, %v7826_v20 }
 0x2c8   :  { %8860 = vmatprep.subr.bf16.mxu0 %v9323_v14 }
 0x2c9   :  { %8900 = vmatpush1.bf16.msra.mxu1 %v9318_v12 }
 0x2ca   :  { %8901 = vmatprep.subr.bf16.mxu1 %v9326_v31 }
 0x2cb   :  { %8861 = vmatpush1.bf16.msra.mxu0 %v9321_v42 }
 0x2cc   :  { %8862 = vmatprep.subr.bf16.mxu0 %v9329_v32 }
 0x2cd   :  { %8902 = vmatpush1.bf16.msra.mxu1 %v9324_v24 }
 0x2ce   :  { %8903 = vmatprep.subr.bf16.mxu1 %v9332_v22 }
 0x2cf   :  { %8863 = vmatpush1.bf16.msra.mxu0 %v9327_v53 }
 0x2d0   :  { %8864 = vmatprep.subr.bf16.mxu0 %v9335_v52 }
 0x2d1   :  { %8904 = vmatpush1.bf16.msra.mxu1 %v9330_v46 }
 0x2d2   :  { %8905 = vmatprep.subr.bf16.mxu1 %v9338_v28 }
 0x2d3   :  { %8865 = vmatpush1.bf16.msra.mxu0 %v9333_v23 }
 0x2d4   :  { %8866 = vmatprep.subr.bf16.mxu0 %v9341_v59 }
 0x2d5   :  { %8906 = vmatpush1.bf16.msra.mxu1 %v9336_v30  ;;  %v9399_v30 = vld [vmem:[%s13827_s3 + $0x160] ss:$24 sps:$4 sm:$0xff]  }
 0x2d6   :  { %8907 = vmatprep.subr.bf16.mxu1 %v9344_v13 }
 0x2d7   :  { %8867 = vmatpush1.bf16.msra.mxu0 %v9339_v45 }
 0x2d8   :  { %8868 = vmatprep.subr.bf16.mxu0 %v9347_v8  ;;  %v9404_v8 = vld [vmem:[%s13827_s3 + $0x134] ss:$24 sps:$4 sm:$0xff]  }
 0x2d9   :  { %8908 = vmatpush1.bf16.msra.mxu1 %v9342_v1  ;;  %v9402_v1 = vld [vmem:[%s13827_s3 + $0x130] ss:$24 sps:$4 sm:$0xff]  }
 0x2da   :  { %8909 = vmatprep.subr.bf16.mxu1 %v9350_v56  ;;  %v9407_v56 = vld [vmem:[%s13827_s3 + $0x104] ss:$24 sps:$4 sm:$0xff]  }
 0x2db   :  { %8869 = vmatpush1.bf16.msra.mxu0 %v9345_v60  ;;  %v9405_v60 = vld [vmem:[%s13827_s3 + $0x100] ss:$24 sps:$4 sm:$0xff]  }
 0x2dc   :  { %8870 = vmatprep.subr.bf16.mxu0 %v9353_v51  ;;  %v9410_v51 = vld [vmem:[%s13827_s3 + $0xd4] ss:$24 sps:$4 sm:$0xff]  }
 0x2dd   :  { %8910 = vmatpush1.bf16.msra.mxu1 %v9348_v18  ;;  %v9408_v18 = vld [vmem:[%s13827_s3 + $0xd0] ss:$24 sps:$4 sm:$0xff]  }
 0x2de   :  { %8911 = vmatprep.subr.bf16.mxu1 %v9356_v29  ;;  %v9413_v29 = vld [vmem:[%s13827_s3 + $0xa4] ss:$24 sps:$4 sm:$0xff]  }
 0x2df   :  { %8871 = vmatpush2.bf16.msra.mxu0 %v9351_v61  ;;  %v9411_v61 = vld [vmem:[%s13827_s3 + $0xa0] ss:$24 sps:$4 sm:$0xff]  }
 0x2e0   :  { %8872 = vmatprep.subr.bf16.mxu0 %v9359_v11  ;;  %v9416_v11 = vld [vmem:[%s13827_s3 + $0x74] ss:$24 sps:$4 sm:$0xff]  }
 0x2e1   :  { %8912 = vmatpush2.bf16.msra.mxu1 %v9354_v39  ;;  %v9414_v39 = vld [vmem:[%s13827_s3 + $0x70] ss:$24 sps:$4 sm:$0xff]  }
 0x2e2   :  { %8913 = vmatprep.subr.bf16.mxu1 %v9362_v3  ;;  %v9419_v3 = vld [vmem:[%s13827_s3 + $0x44] ss:$24 sps:$4 sm:$0xff]  }
 0x2e3   :  { %8873 = vmatpush2.bf16.msra.mxu0 %v9357_v21  ;;  %v9417_v21 = vld [vmem:[%s13827_s3 + $0x40] ss:$24 sps:$4 sm:$0xff]  }
 0x2e4   :  { %8874 = vmatprep.subr.bf16.mxu0 %v9365_v0  ;;  %v9422_v0 = vld [vmem:[%s13827_s3 + $0x14] ss:$24 sps:$4 sm:$0xff]  }
 0x2e5   :  { %8914 = vmatpush2.bf16.msra.mxu1 %v9360_v37  ;;  %v9420_v37 = vld [vmem:[%s13827_s3 + $0x10] ss:$24 sps:$4 sm:$0xff]  }
 0x2e6   :  { %8915 = vmatprep.subr.bf16.mxu1 %v9368_v26  ;;  %v9425_v26 = vld [vmem:[%s13827_s3 + $0x2e4] ss:$24 sps:$4 sm:$0xff]  }
 0x2e7   :  { %8875 = vmatpush2.bf16.msra.mxu0 %v9363_v7  ;;  %v9423_v7 = vld [vmem:[%s13827_s3 + $0x2e0] ss:$24 sps:$4 sm:$0xff]  }
 0x2e8   :  { %8876 = vmatprep.subr.bf16.mxu0 %v9371_v48  ;;  %v9428_v48 = vld [vmem:[%s13827_s3 + $0x2b4] ss:$24 sps:$4 sm:$0xff]  }
 0x2e9   :  { %8916 = vmatpush2.bf16.msra.mxu1 %v9366_v38  ;;  %v9426_v38 = vld [vmem:[%s13827_s3 + $0x2b0] ss:$24 sps:$4 sm:$0xff]  }
 0x2ea   :  { %8917 = vmatprep.subr.bf16.mxu1 %v9374_v2  ;;  %v9431_v2 = vld [vmem:[%s13827_s3 + $0x284] ss:$24 sps:$4 sm:$0xff]  }
 0x2eb   :  { %8877 = vmatpush2.bf16.msra.mxu0 %v9369_v40  ;;  %v9429_v40 = vld [vmem:[%s13827_s3 + $0x280] ss:$24 sps:$4 sm:$0xff]  }
 0x2ec   :  { %8878 = vmatprep.subr.bf16.mxu0 %v9377_v19  ;;  %v9434_v19 = vld [vmem:[%s13827_s3 + $0x254] ss:$24 sps:$4 sm:$0xff]  }
 0x2ed   :  { %8918 = vmatpush2.bf16.msra.mxu1 %v9372_v36  ;;  %v9432_v36 = vld [vmem:[%s13827_s3 + $0x250] ss:$24 sps:$4 sm:$0xff]  }
 0x2ee   :  { %8919 = vmatprep.subr.bf16.mxu1 %v9380_v5  ;;  %v9437_v5 = vld [vmem:[%s13827_s3 + $0x224] ss:$24 sps:$4 sm:$0xff]  }
 0x2ef   :  { %8879 = vmatpush2.bf16.msra.mxu0 %v9375_v4  ;;  %v9435_v4 = vld [vmem:[%s13827_s3 + $0x220] ss:$24 sps:$4 sm:$0xff]  }
 0x2f0   :  { %8880 = vmatprep.subr.bf16.mxu0 %v9383_v57  ;;  %v9440_v57 = vld [vmem:[%s13827_s3 + $0x1f4] ss:$24 sps:$4 sm:$0xff]  }
 0x2f1   :  { %8920 = vmatpush2.bf16.msra.mxu1 %v9378_v55  ;;  %v9438_v55 = vld [vmem:[%s13827_s3 + $0x1f0] ss:$24 sps:$4 sm:$0xff]  }
 0x2f2   :  { %8921 = vmatprep.subr.bf16.mxu1 %v9386_v47  ;;  %v9443_v47 = vld [vmem:[%s13827_s3 + $0x1c4] ss:$24 sps:$4 sm:$0xff]  }
 0x2f3   :  { %8881 = vmatpush2.bf16.msra.mxu0 %v9381_v41  ;;  %v9441_v41 = vld [vmem:[%s13827_s3 + $0x1c0] ss:$24 sps:$4 sm:$0xff]  }
 0x2f4   :  { %8882 = vmatprep.subr.bf16.mxu0 %v9389_v62 }
 0x2f5   :  { %8922 = vmatpush2.bf16.msra.mxu1 %v9384_v58  ;;  %v9446_v58 = vld [vmem:[%s13827_s3 + $0x194] ss:$24 sps:$4 sm:$0xff]  }
 0x2f6   :  { %8923 = vmatprep.subr.bf16.mxu1 %v9392_v54 }
 0x2f7   :  { %8883 = vmatpush2.bf16.msra.mxu0 %v9387_v50  ;;  %v9444_v50 = vld [vmem:[%s13827_s3 + $0x190] ss:$24 sps:$4 sm:$0xff]  }
 0x2f8   :  { %8884 = vmatprep.subr.bf16.mxu0 %v9395_v27  ;;  %v8354_v27 = vsub.s32 2, %v14345_v49 }
 0x2f9   :  { %8924 = vmatpush2.bf16.msra.mxu1 %v9390_v35 }
 0x2fa   :  { %8925 = vmatprep.subr.bf16.mxu1 %v9398_v33  ;;  %v8342_v33 = vld [vmem:[%s13828_s4] sm:$0x3f]  ;;  %s9479_s4 = smov [#allocation3]  }
 0x2fb   :  { %8885 = vmatpush2.bf16.msra.mxu0 %v9393_v9  ;;  %v8355_v6 = vrot.slane %v8342_v33, %v8354_v27  ;;  %v8351_v34 = vrot.slane %v8342_v33, %v7826_v20 }
 0x2fc   :  { %8936 = vmatprep.subr.bf16.mxu0 %v9401_v44  ;;  %v8347_v44 = vrot.slane %v8342_v33, %v7822_v10 }
 0x2fd   :  { %8926 = vmatpush2.bf16.msra.mxu1 %v9396_v25  ;;  %v8358_v25 = vsub.s32 3, %v14345_v49 }
 0x34e   :  { %v7721_v62 = vpop.xlane.xlu1 %7720 }
 0x34f   :  { %v7722_v35 = vmax.f32 %v7721_v62, 1e-24 }
 0x351   :  { %9447 = vrsqrt.f32 %v7722_v35 }
 0x35e   :  { %v9448_v54 = vpop.eup %9447 }
 0x35f   :  { %v7724_v9 = vmul.f32 %v9448_v54, %v13690_v16  ;;  %v8359_v16 = vrot.slane %v8342_v33, %v8358_v25 }
 0x361   :  { %7725 = vst [vmem:[%s13829_s5] sm:$0x3] %v7724_v9  ;;  %s9022_s5 = sshll.u32 %s9479_s4, 4  ;;  %s9023_s5 = int_to_ptr.vmem [resolvable:$true] %s9022_s5 }
 0x362   :  { %s9450_s10 = scalar_lea.vmem %s9023_s5, 192  ;;  %p9455_p1 = scmp.lt.s32.totalorder %s9023_s5, %s9023_s5 }
 0x363   :  { %p9451_p0 = scmp.ne.s32.totalorder %s9023_s5, %s9450_s10  ;;  %p9456_p2 = scmp.lt.s32.totalorder %s9450_s10, %s9450_s10 }
 0x365   :  { %p9457_p3 = por %p9456_p2, %p9455_p1 }
 0x367   :  { %p9458_p4 = pnand %p9457_p3, %p9451_p0 }
 0x37e   :  { %v8184_v14 = vpop.f32.mrf.mxu0 }
 0x37f   :  { %v8185_v12 = vadd.f32 %v8184_v14, %v7823_v15 }
 0x380   :  { %v8186_v31 = vpop.f32.mrf.mxu0  ;;  %v8225_v42 = vpop.f32.mrf.mxu1 }
 0x381   :  { %v8187_v32 = vadd.f32 %v8186_v31, %v7827_v43  ;;  %v8226_v24 = vadd.f32 %v8225_v42, %v8185_v12 }
 0x382   :  { %v8188_v22 = vpop.f32.mrf.mxu0  ;;  %v8227_v53 = vpop.f32.mrf.mxu1 }
 0x383   :  { %v8228_v52 = vadd.f32 %v8227_v53, %v8187_v32  ;;  %v13706_v13 = vpack.c.bf16 %v8226_v24, %v8226_v24 }
 0x384   :  { %v8189_v46 = vpop.f32.mrf.mxu0  ;;  %v8229_v28 = vpop.f32.mrf.mxu1 }
 0x385   :  { %v8234_v23 = vcombine.low %v8226_v24, %v8228_v52  ;;  %v8245_v59 = vpack.c.bf16 %v8228_v52, %v8228_v52 }
 0x386   :  { %v8230_v45 = vpop.f32.mrf.mxu1 }
 0x387   :  { %9099 = vst.sshfl [vmem:[%s13830_s6] sm:$0x33 pattern:$0x76325410] %v8234_v23  ;;  %8886 = vmatprep.mubr.bf16.mxu0 %v8245_v59  ;;  %8927 = vmatprep.mubr.bf16.mxu1 %v8245_v59 }
 0x388   :  { %8887 = vmatmul.mubr.bf16.vlgmr.msra.gmra.mxu0 %v13706_v13  ;;  %8928 = vmatmul.mubr.bf16.vlgmr.msra.gmra.mxu1 %v13706_v13 }
 0x389   :  { %8937 = vmatpush1.bf16.msra.mxu0 %v9399_v30  ;;  %8968 = vmatprep.mubr.bf16.mxu0 %v8245_v59  ;;  %v8362_v59 = vsub.s32 4, %v14345_v49  ;;  %v8366_v30 = vsub.s32 5, %v14345_v49 }
 0x38a   :  { %8938 = vmatprep.subr.bf16.mxu0 %v9404_v8 }
 0x38b   :  { %v8367_v45 = vrot.slane %v8342_v33, %v8366_v30 }
 0x38d   :  { %8939 = vmatpush1.bf16.msra.mxu0 %v9402_v1 }
 0x38e   :  { %8940 = vmatprep.subr.bf16.mxu0 %v9407_v56 }
 0x391   :  { %8941 = vmatpush1.bf16.msra.mxu0 %v9405_v60 }
 0x392   :  { %8942 = vmatprep.subr.bf16.mxu0 %v9410_v51 }
 0x395   :  { %8943 = vmatpush1.bf16.msra.mxu0 %v9408_v18 }
 0x396   :  { %8944 = vmatprep.subr.bf16.mxu0 %v9413_v29 }
 0x399   :  { %8945 = vmatpush1.bf16.msra.mxu0 %v9411_v61 }
 0x39a   :  { %8946 = vmatprep.subr.bf16.mxu0 %v9416_v11 }
 0x39d   :  { %8947 = vmatpush1.bf16.msra.mxu0 %v9414_v39 }
 0x39e   :  { %8948 = vmatprep.subr.bf16.mxu0 %v9419_v3 }
 0x3a1   :  { %8949 = vmatpush1.bf16.msra.mxu0 %v9417_v21 }
 0x3a2   :  { %8950 = vmatprep.subr.bf16.mxu0 %v9422_v0 }
 0x3a5   :  { %8951 = vmatpush1.bf16.msra.mxu0 %v9420_v37 }
 0x3a6   :  { %8952 = vmatprep.subr.bf16.mxu0 %v9425_v26 }
 0x3a9   :  { %8953 = vmatpush2.bf16.msra.mxu0 %v9423_v7 }
 0x3aa   :  { %8954 = vmatprep.subr.bf16.mxu0 %v9428_v48 }
 0x3ad   :  { %8955 = vmatpush2.bf16.msra.mxu0 %v9426_v38 }
 0x3ae   :  { %8956 = vmatprep.subr.bf16.mxu0 %v9431_v2 }
 0x3b1   :  { %8957 = vmatpush2.bf16.msra.mxu0 %v9429_v40 }
 0x3b2   :  { %8958 = vmatprep.subr.bf16.mxu0 %v9434_v19 }
 0x3b5   :  { %8959 = vmatpush2.bf16.msra.mxu0 %v9432_v36 }
 0x3b6   :  { %8960 = vmatprep.subr.bf16.mxu0 %v9437_v5 }
 0x3b9   :  { %8961 = vmatpush2.bf16.msra.mxu0 %v9435_v4 }
 0x3ba   :  { %8962 = vmatprep.subr.bf16.mxu0 %v9440_v57 }
 0x3bd   :  { %8963 = vmatpush2.bf16.msra.mxu0 %v9438_v55 }
 0x3be   :  { %8964 = vmatprep.subr.bf16.mxu0 %v9443_v47 }
 0x3c1   :  { %8965 = vmatpush2.bf16.msra.mxu0 %v9441_v41 }
 0x3c2   :  { %8966 = vmatprep.subr.bf16.mxu0 %v9446_v58 }
 0x3c5   :  { %8967 = vmatpush2.bf16.msra.mxu0 %v9444_v50 }
 0x3c8   :  { %8969 = vmatmul.mubr.bf16.vlgmr.msra.gmra.mxu0 %v13706_v13  ;;  %v8363_v13 = vrot.slane %v8342_v33, %v8362_v59 }
 0x448   :  { %v8888_v17 = vpop.f32.mrf.mxu0  ;;  %v8929_v15 = vpop.f32.mrf.mxu1 }
 0x449   :  { %v8889_v12 = vadd.f32 %v8888_v17, %v8347_v44  ;;  %v8930_v31 = vadd.f32 %v8929_v15, %v8355_v6 }
 0x44a   :  { %v8890_v43 = vpop.f32.mrf.mxu0  ;;  %v8931_v14 = vpop.f32.mrf.mxu1 }
 0x44b   :  { %v8891_v42 = vadd.f32 %v8890_v43, %v8351_v34  ;;  %v8932_v32 = vadd.f32 %v8931_v14, %v8359_v16 }
 0x44c   :  { %v8892_v24 = vpop.f32.mrf.mxu0  ;;  %v8933_v22 = vpop.f32.mrf.mxu1 }
 0x44d   :  { %v8983_v53 = vcombine.low %v8889_v12, %v8891_v42  ;;  %v8984_v52 = vcombine.low %v8930_v31, %v8932_v32 }
 0x44e   :  { %v8893_v46 = vpop.f32.mrf.mxu0  ;;  %v8934_v28 = vpop.f32.mrf.mxu1 }
 0x44f   :  { %v8991_v10 = vrot.slane %v8983_v53, %v10383_v63  ;;  %v8998_v23 = vrot.slane %v8984_v52, %v10383_v63 }
 0x451   :  { %v8999_v20 = vcombine.low %v8991_v10, %v8998_v23 }
 0x453   :  { %9010 = vst [vmem:[#allocation3] sm:$0xff] %v8999_v20 }
 0x488   :  { %v8970_v8 = vpop.f32.mrf.mxu0 }
 0x489   :  { %v8971_v56 = vadd.f32 %v8970_v8, %v8363_v13 }
 0x48a   :  { %v8972_v1 = vpop.f32.mrf.mxu0 }
 0x48b   :  { %v8973_v60 = vadd.f32 %v8972_v1, %v8367_v45 }
 0x48c   :  { %v8974_v51 = vpop.f32.mrf.mxu0 }
 0x48d   :  { %v9000_v18 = vcombine.low %v8971_v56, %v8973_v60 }
 0x48e   :  { %v8975_v29 = vpop.f32.mrf.mxu0 }
 0x48f   :  { %9196 = vst.sshfl [vmem:[#allocation3 + $0x8] sm:$0x33 pattern:$0x76325410] %v9000_v18 }
 0x490   :  { %9461 = shalt.err (!%p9458_p4)
}
 0x491   :  { %9025 = dma.vmem_to_hbm [thread:$0]  %s9023_s5, 192, %s13831_s7, [#allocation4]  }
 0x492   :  { %9470 = dma.done.wait [#allocation4], 192  }
 0x493   :  { %9471 = vsyncadd [#allocation4], 4294967104 }
 0x494   :  { %9033 = vsyncpa [#allocation4], 1 }

</bundles_post_ra>
